<compile_context>
chip_gen: v7x
topology: tpu7x:2x2x1
jax: 0.10.0
libtpu: 0.0.40
codegen_flags: <defaults>
</compile_context>

<pallas_src>
import functools

import jax
import jax.numpy as jnp
from jax.experimental import pallas as pl
from jax.experimental.pallas import tpu as pltpu


def _round_up(x, m):
    return (x + m - 1) // m * m


def _cnn_kernel(*refs, filters_length):
    """One batch tile, fully VMEM resident.

    refs = (x, [conv_w_k, conv_b_k, fc_w_k] * n_filters,
            fc_b, out_w, out_b, o)
      x        : (TB, S, V)   bf16 embedded tokens
      conv_w_k : (K*V, Fp)    bf16, tap-major im2col conv weight
      conv_b_k : (1, Fp)      f32
      fc_w_k   : (Fp, Hp)     bf16, per-filter slice of the fc weight
      fc_b     : (1, Hp)      f32
      out_w    : (Hp, Lp)     bf16
      out_b    : (1, Lp)      f32
      o        : (TB, Lp)     f32 sigmoid probabilities (padded labels)
    """
    n = len(filters_length)
    x_ref = refs[0]
    filt_refs = refs[1:1 + 3 * n]
    fcb_ref, ow_ref, ob_ref = refs[1 + 3 * n:4 + 3 * n]
    o_ref = refs[-1]

    TB, S, V = x_ref.shape
    Hp = fcb_ref.shape[-1]
    x = x_ref[...]                                        # (TB, S, V) bf16

    h_acc = jnp.zeros((TB, Hp), jnp.float32)
    for i, K in enumerate(filters_length):
        w_ref = filt_refs[3 * i]
        b_ref = filt_refs[3 * i + 1]
        fw_ref = filt_refs[3 * i + 2]
        Fp = w_ref.shape[-1]
        L = S - K + 1                                     # valid conv length

        # im2col: fold the K taps into the contraction axis -> one deep
        # (K*V) MXU matmul per filter instead of K shallow V-deep matmuls.
        xs = jnp.concatenate([x[:, k:k + L, :] for k in range(K)], axis=-1)
        xs = xs.reshape(TB * L, K * V)                    # (TB*L, K*V) bf16
        acc = jnp.dot(xs, w_ref[...],
                      preferred_element_type=jnp.float32)  # (TB*L, Fp) f32
        acc = acc.reshape(TB, L, Fp)

        # bias is constant over time, so add it after the global max pool
        pooled = jnp.max(acc, axis=1) + b_ref[...]        # (TB, Fp) f32
        pooled = jnp.maximum(pooled, 0.0)                 # relu (f32)

        # per-filter fc slice accumulated directly -> no lane-misaligned concat
        h_acc = h_acc + jnp.dot(pooled.astype(fw_ref.dtype), fw_ref[...],
                                preferred_element_type=jnp.float32)

    h = jnp.maximum(h_acc + fcb_ref[...], 0.0)            # relu(fc)
    z = jnp.dot(h.astype(ow_ref.dtype), ow_ref[...],
                preferred_element_type=jnp.float32) + ob_ref[...]
    # sigmoid via EUP exp + approximate EUP reciprocal (no VPU divide)
    o_ref[...] = pl.reciprocal(1.0 + jnp.exp(-z), approx=True)


def cnn_classifier_forward(tokens, params, filters_length, *, batch_tile=8):
    """Embedding gather + weight packing/padding, then one gridded pallas_call."""
    # TODO(synk): the embedding gather could be moved in-kernel with
    # PrefetchScalarGridSpec(num_scalar_prefetch=1) + a pl.Element row-gather
    # spec on the HBM-resident table; kept as XLA glue here.
    emb = params["embeddings"].astype(jnp.bfloat16)
    x = jnp.take(emb, tokens, axis=0)                     # (B, S, V) bf16
    B, S, V = x.shape
    n = len(filters_length)
    F = params["conv_w"][0].shape[-1]
    H = params["fc_w"].shape[-1]
    n_labels = params["out_w"].shape[-1]

    Fp = _round_up(F, 128)            # lane-dense filter count
    Hp = _round_up(H, 128)            # lane-dense hidden width
    Lp = _round_up(n_labels, 128)     # lane-dense (padded) label width

    # Batch tile: multiple of 8 sublanes.  Re-derive per generation for real
    # workloads (v7x has 64 MiB VMEM per TC vs 128 MiB on v5e/v6e).
    TB = _round_up(min(batch_tile, B), 8)
    Bp = _round_up(B, TB)
    if Bp != B:
        x = jnp.pad(x, ((0, Bp - B), (0, 0), (0, 0)))

    def resident(shape):
        return pl.BlockSpec(shape, lambda i: tuple(0 for _ in shape))

    inputs = [x]
    in_specs = [pl.BlockSpec((TB, S, V), lambda i: (i, 0, 0))]

    fc_w = params["fc_w"]
    for idx, (K, w, b) in enumerate(zip(filters_length, params["conv_w"],
                                        params["conv_b"])):
        wp = jnp.zeros((K, V, Fp), jnp.float32).at[..., :F].set(w)
        inputs.append(wp.reshape(K * V, Fp).astype(jnp.bfloat16))
        in_specs.append(resident((K * V, Fp)))
        inputs.append(jnp.zeros((1, Fp), jnp.float32).at[0, :F].set(b))
        in_specs.append(resident((1, Fp)))
        fwi = fc_w[idx * F:(idx + 1) * F, :]
        fwp = jnp.zeros((Fp, Hp), jnp.float32).at[:F, :H].set(fwi)
        inputs.append(fwp.astype(jnp.bfloat16))
        in_specs.append(resident((Fp, Hp)))

    inputs.append(jnp.zeros((1, Hp), jnp.float32).at[0, :H].set(params["fc_b"]))
    in_specs.append(resident((1, Hp)))
    owp = jnp.zeros((Hp, Lp), jnp.float32).at[:H, :n_labels].set(params["out_w"])
    inputs.append(owp.astype(jnp.bfloat16))
    in_specs.append(resident((Hp, Lp)))
    inputs.append(jnp.zeros((1, Lp), jnp.float32)
                  .at[0, :n_labels].set(params["out_b"]))
    in_specs.append(resident((1, Lp)))

    out_spec = pl.BlockSpec((TB, Lp), lambda i: (i, 0))

    # Advisory cost estimate for XLA scheduling around the custom call.
    flops = 0
    for K in filters_length:
        L = S - K + 1
        flops += 2 * Bp * L * (K * V) * Fp
    flops += 2 * Bp * n * Fp * Hp + 2 * Bp * Hp * Lp
    bytes_accessed = int(sum(a.size * a.dtype.itemsize for a in inputs)
                         + Bp * Lp * 4)
    cost = pl.CostEstimate(flops=int(flops), transcendentals=int(Bp * Lp),
                           bytes_accessed=bytes_accessed)

    kernel = functools.partial(_cnn_kernel,
                               filters_length=tuple(filters_length))
    out_padded = pl.pallas_call(
        kernel,
        out_shape=jax.ShapeDtypeStruct((Bp, Lp), jnp.float32),
        grid_spec=pltpu.PrefetchScalarGridSpec(
            num_scalar_prefetch=0,
            grid=(Bp // TB,),
            in_specs=in_specs,
            out_specs=out_spec),
        compiler_params=pltpu.CompilerParams(
            dimension_semantics=("parallel",),
            vmem_limit_bytes=48 * 1024 * 1024),
        cost_estimate=cost,
    )(*inputs)

    return out_padded[:B, :n_labels]


def init_params(key, vocab_size, vector_size, filters_length, filters_count,
                n_labels, hidden=128):
    """Deterministic synthetic parameters (module shapes, no checkpoint)."""
    keys = jax.random.split(key, 4 + 2 * len(filters_length))
    emb = jax.random.normal(keys[0], (vocab_size, vector_size), jnp.float32)
    emb = emb.at[0].set(0.0)                              # padding_idx = 0

    conv_w, conv_b = [], []
    for i, K in enumerate(filters_length):
        # PyTorch Conv1d weight is (F, V, K); stored kernel-tap major (K, V, F)
        # so each tap is a ready-to-use (V, F) matmul operand.
        kw = 0.05 * jax.random.normal(keys[1 + 2 * i],
                                      (K, vector_size, filters_count),
                                      jnp.float32)
        kb = 0.05 * jax.random.normal(keys[2 + 2 * i], (filters_count,),
                                      jnp.float32)
        conv_w.append(kw)
        conv_b.append(kb)

    fc_in = filters_count * len(filters_length)
    fc_w = 0.05 * jax.random.normal(keys[-3], (fc_in, hidden), jnp.float32)
    fc_b = 0.05 * jax.random.normal(keys[-2], (hidden,), jnp.float32)
    out_w = 0.05 * jax.random.normal(keys[-1], (hidden, n_labels), jnp.float32)
    out_b = jnp.zeros((n_labels,), jnp.float32)

    return {
        "embeddings": emb,
        "conv_w": conv_w,
        "conv_b": conv_b,
        "fc_w": fc_w,
        "fc_b": fc_b,
        "out_w": out_w,
        "out_b": out_b,
    }


def reference_forward(tokens, params, filters_length):
    """Pure-JAX f32 reference with identical semantics (for verification)."""
    x = jnp.take(params["embeddings"], tokens, axis=0)    # (B, S, V)
    feats = []
    for K, w, b in zip(filters_length, params["conv_w"], params["conv_b"]):
        B, S, V = x.shape
        L = S - K + 1
        acc = jnp.zeros((B, L, w.shape[-1]), jnp.float32)
        for k in range(K):
            acc = acc + jnp.einsum("blv,vf->blf", x[:, k:k + L, :], w[k])
        acc = acc + b[None, None, :]
        feats.append(jnp.maximum(jnp.max(acc, axis=1), 0.0))
    feats = jnp.concatenate(feats, axis=-1)
    h = jnp.maximum(feats @ params["fc_w"] + params["fc_b"], 0.0)
    z = h @ params["out_w"] + params["out_b"]
    return jax.nn.sigmoid(z)


if __name__ == "__main__":
    # Small, module-consistent shapes (grid of 2 batch tiles).
    batch = 16
    seq = 16
    vocab_size = 50
    vector_size = 32
    filters_length = (2, 3, 4)
    filters_count = 64
    n_labels = 8

    key = jax.random.PRNGKey(0)
    pkey, tkey = jax.random.split(key)
    params = init_params(pkey, vocab_size, vector_size, filters_length,
                         filters_count, n_labels)

    tokens = jax.random.randint(tkey, (batch, seq), 0, vocab_size,
                                dtype=jnp.int32)

    out = cnn_classifier_forward(tokens, params, filters_length, batch_tile=8)
    out = jax.block_until_ready(out)

    ref = reference_forward(tokens, params, filters_length)
    assert out.shape == (batch, n_labels), out.shape
    err = jnp.max(jnp.abs(out - ref))
    # bf16 matmul operands + approximate reciprocal => loosened tolerance
    assert jnp.allclose(out, ref, atol=2e-2, rtol=2e-2), f"max abs err {err}"

    print("KERNEL_OK")
</pallas_src>

<mosaic_0001>
module attributes {stable_mosaic.version = 11 : i64} {
  func.func @_cnn_kernel(%arg0: i32, %arg1: memref<8x16x32xbf16, #tpu.memory_space<vmem>>, %arg2: memref<64x128xbf16, #tpu.memory_space<vmem>>, %arg3: memref<1x128xf32, #tpu.memory_space<vmem>>, %arg4: memref<128x128xbf16, #tpu.memory_space<vmem>>, %arg5: memref<96x128xbf16, #tpu.memory_space<vmem>>, %arg6: memref<1x128xf32, #tpu.memory_space<vmem>>, %arg7: memref<128x128xbf16, #tpu.memory_space<vmem>>, %arg8: memref<128x128xbf16, #tpu.memory_space<vmem>>, %arg9: memref<1x128xf32, #tpu.memory_space<vmem>>, %arg10: memref<128x128xbf16, #tpu.memory_space<vmem>>, %arg11: memref<1x128xf32, #tpu.memory_space<vmem>>, %arg12: memref<128x128xbf16, #tpu.memory_space<vmem>>, %arg13: memref<1x128xf32, #tpu.memory_space<vmem>>, %arg14: memref<8x128xf32, #tpu.memory_space<vmem>>) attributes {dimension_semantics = [#tpu.dimension_semantics<parallel>], iteration_bounds = array<i64: 2>, scalar_prefetch = 0 : i64, scratch_operands = 0 : i64, tpu.core_type = #tpu.core_type<tc>, window_params = [{transform_indices = @transform_0, window_bounds = array<i64: 8, 16, 32>}, {pipeline_mode = #tpu.pipeline_mode<synchronous>, transform_indices = @transform_1, window_bounds = array<i64: 64, 128>}, {pipeline_mode = #tpu.pipeline_mode<synchronous>, transform_indices = @transform_2, window_bounds = array<i64: 1, 128>}, {pipeline_mode = #tpu.pipeline_mode<synchronous>, transform_indices = @transform_3, window_bounds = array<i64: 128, 128>}, {pipeline_mode = #tpu.pipeline_mode<synchronous>, transform_indices = @transform_4, window_bounds = array<i64: 96, 128>}, {pipeline_mode = #tpu.pipeline_mode<synchronous>, transform_indices = @transform_5, window_bounds = array<i64: 1, 128>}, {pipeline_mode = #tpu.pipeline_mode<synchronous>, transform_indices = @transform_6, window_bounds = array<i64: 128, 128>}, {pipeline_mode = #tpu.pipeline_mode<synchronous>, transform_indices = @transform_7, window_bounds = array<i64: 128, 128>}, {pipeline_mode = #tpu.pipeline_mode<synchronous>, transform_indices = @transform_8, window_bounds = array<i64: 1, 128>}, {pipeline_mode = #tpu.pipeline_mode<synchronous>, transform_indices = @transform_9, window_bounds = array<i64: 128, 128>}, {pipeline_mode = #tpu.pipeline_mode<synchronous>, transform_indices = @transform_10, window_bounds = array<i64: 1, 128>}, {pipeline_mode = #tpu.pipeline_mode<synchronous>, transform_indices = @transform_11, window_bounds = array<i64: 128, 128>}, {pipeline_mode = #tpu.pipeline_mode<synchronous>, transform_indices = @transform_12, window_bounds = array<i64: 1, 128>}, {transform_indices = @transform_13, window_bounds = array<i64: 8, 128>}]} {
    %c0 = arith.constant 0 : index
    %c0_0 = arith.constant 0 : index
    %c0_1 = arith.constant 0 : index
    %0 = vector.load %arg1[%c0, %c0_0, %c0_1] : memref<8x16x32xbf16, #tpu.memory_space<vmem>>, vector<8x16x32xbf16>
    %cst = arith.constant 0.000000e+00 : f32
    %1 = vector.broadcast %cst : f32 to vector<8x128xf32>
    %2 = vector.extract_strided_slice %0 {offsets = [0, 0, 0], sizes = [8, 15, 32], strides = [1, 1, 1]} : vector<8x16x32xbf16> to vector<8x15x32xbf16>
    %3 = vector.extract_strided_slice %0 {offsets = [0, 1, 0], sizes = [8, 15, 32], strides = [1, 1, 1]} : vector<8x16x32xbf16> to vector<8x15x32xbf16>
    %4 = tpu.concatenate %2, %3 in 2 : vector<8x15x32xbf16>, vector<8x15x32xbf16> -> vector<8x15x64xbf16>
    %5 = vector.shape_cast %4 : vector<8x15x64xbf16> to vector<120x64xbf16>
    %c0_2 = arith.constant 0 : index
    %c0_3 = arith.constant 0 : index
    %6 = vector.load %arg2[%c0_2, %c0_3] : memref<64x128xbf16, #tpu.memory_space<vmem>>, vector<64x128xbf16>
    %cst_4 = arith.constant dense<0.000000e+00> : vector<120x128xf32>
    %7 = tpu.matmul %5, %6, %cst_4 {dimension_numbers = #tpu.dot_dimension_numbers<[1], [0], [0], [1], [0, 0, 1, 1], [], []>} : vector<120x64xbf16>, vector<64x128xbf16>, vector<120x128xf32> -> vector<120x128xf32>
    %8 = vector.shape_cast %7 : vector<120x128xf32> to vector<8x15x128xf32>
    %cst_5 = arith.constant dense<0xFF800000> : vector<8x128xf32>
    %9 = vector.multi_reduction <maximumf>, %8, %cst_5 [1] : vector<8x15x128xf32> to vector<8x128xf32>
    %c0_6 = arith.constant 0 : index
    %c0_7 = arith.constant 0 : index
    %10 = vector.load %arg3[%c0_6, %c0_7] : memref<1x128xf32, #tpu.memory_space<vmem>>, vector<1x128xf32>
    %11 = vector.broadcast %10 : vector<1x128xf32> to vector<8x128xf32>
    %12 = arith.addf %9, %11 : vector<8x128xf32>
    %cst_8 = arith.constant 0.000000e+00 : f32
    %13 = vector.broadcast %cst_8 : f32 to vector<8x128xf32>
    %14 = arith.maximumf %12, %13 : vector<8x128xf32>
    %15 = arith.truncf %14 : vector<8x128xf32> to vector<8x128xbf16>
    %c0_9 = arith.constant 0 : index
    %c0_10 = arith.constant 0 : index
    %16 = vector.load %arg4[%c0_9, %c0_10] : memref<128x128xbf16, #tpu.memory_space<vmem>>, vector<128x128xbf16>
    %cst_11 = arith.constant dense<0.000000e+00> : vector<8x128xf32>
    %17 = tpu.matmul %15, %16, %cst_11 {dimension_numbers = #tpu.dot_dimension_numbers<[1], [0], [0], [1], [0, 0, 1, 1], [], []>} : vector<8x128xbf16>, vector<128x128xbf16>, vector<8x128xf32> -> vector<8x128xf32>
    %18 = arith.addf %1, %17 : vector<8x128xf32>
    %19 = vector.extract_strided_slice %0 {offsets = [0, 0, 0], sizes = [8, 14, 32], strides = [1, 1, 1]} : vector<8x16x32xbf16> to vector<8x14x32xbf16>
    %20 = vector.extract_strided_slice %0 {offsets = [0, 1, 0], sizes = [8, 14, 32], strides = [1, 1, 1]} : vector<8x16x32xbf16> to vector<8x14x32xbf16>
    %21 = vector.extract_strided_slice %0 {offsets = [0, 2, 0], sizes = [8, 14, 32], strides = [1, 1, 1]} : vector<8x16x32xbf16> to vector<8x14x32xbf16>
    %22 = tpu.concatenate %19, %20, %21 in 2 : vector<8x14x32xbf16>, vector<8x14x32xbf16>, vector<8x14x32xbf16> -> vector<8x14x96xbf16>
    %23 = vector.shape_cast %22 : vector<8x14x96xbf16> to vector<112x96xbf16>
    %c0_12 = arith.constant 0 : index
    %c0_13 = arith.constant 0 : index
    %24 = vector.load %arg5[%c0_12, %c0_13] : memref<96x128xbf16, #tpu.memory_space<vmem>>, vector<96x128xbf16>
    %cst_14 = arith.constant dense<0.000000e+00> : vector<112x128xf32>
    %25 = tpu.matmul %23, %24, %cst_14 {dimension_numbers = #tpu.dot_dimension_numbers<[1], [0], [0], [1], [0, 0, 1, 1], [], []>} : vector<112x96xbf16>, vector<96x128xbf16>, vector<112x128xf32> -> vector<112x128xf32>
    %26 = vector.shape_cast %25 : vector<112x128xf32> to vector<8x14x128xf32>
    %cst_15 = arith.constant dense<0xFF800000> : vector<8x128xf32>
    %27 = vector.multi_reduction <maximumf>, %26, %cst_15 [1] : vector<8x14x128xf32> to vector<8x128xf32>
    %c0_16 = arith.constant 0 : index
    %c0_17 = arith.constant 0 : index
    %28 = vector.load %arg6[%c0_16, %c0_17] : memref<1x128xf32, #tpu.memory_space<vmem>>, vector<1x128xf32>
    %29 = vector.broadcast %28 : vector<1x128xf32> to vector<8x128xf32>
    %30 = arith.addf %27, %29 : vector<8x128xf32>
    %cst_18 = arith.constant 0.000000e+00 : f32
    %31 = vector.broadcast %cst_18 : f32 to vector<8x128xf32>
    %32 = arith.maximumf %30, %31 : vector<8x128xf32>
    %33 = arith.truncf %32 : vector<8x128xf32> to vector<8x128xbf16>
    %c0_19 = arith.constant 0 : index
    %c0_20 = arith.constant 0 : index
    %34 = vector.load %arg7[%c0_19, %c0_20] : memref<128x128xbf16, #tpu.memory_space<vmem>>, vector<128x128xbf16>
    %cst_21 = arith.constant dense<0.000000e+00> : vector<8x128xf32>
    %35 = tpu.matmul %33, %34, %cst_21 {dimension_numbers = #tpu.dot_dimension_numbers<[1], [0], [0], [1], [0, 0, 1, 1], [], []>} : vector<8x128xbf16>, vector<128x128xbf16>, vector<8x128xf32> -> vector<8x128xf32>
    %36 = arith.addf %18, %35 : vector<8x128xf32>
    %37 = vector.extract_strided_slice %0 {offsets = [0, 0, 0], sizes = [8, 13, 32], strides = [1, 1, 1]} : vector<8x16x32xbf16> to vector<8x13x32xbf16>
    %38 = vector.extract_strided_slice %0 {offsets = [0, 1, 0], sizes = [8, 13, 32], strides = [1, 1, 1]} : vector<8x16x32xbf16> to vector<8x13x32xbf16>
    %39 = vector.extract_strided_slice %0 {offsets = [0, 2, 0], sizes = [8, 13, 32], strides = [1, 1, 1]} : vector<8x16x32xbf16> to vector<8x13x32xbf16>
    %40 = vector.extract_strided_slice %0 {offsets = [0, 3, 0], sizes = [8, 13, 32], strides = [1, 1, 1]} : vector<8x16x32xbf16> to vector<8x13x32xbf16>
    %41 = tpu.concatenate %37, %38, %39, %40 in 2 : vector<8x13x32xbf16>, vector<8x13x32xbf16>, vector<8x13x32xbf16>, vector<8x13x32xbf16> -> vector<8x13x128xbf16>
    %42 = vector.shape_cast %41 : vector<8x13x128xbf16> to vector<104x128xbf16>
    %c0_22 = arith.constant 0 : index
    %c0_23 = arith.constant 0 : index
    %43 = vector.load %arg8[%c0_22, %c0_23] : memref<128x128xbf16, #tpu.memory_space<vmem>>, vector<128x128xbf16>
    %cst_24 = arith.constant dense<0.000000e+00> : vector<104x128xf32>
    %44 = tpu.matmul %42, %43, %cst_24 {dimension_numbers = #tpu.dot_dimension_numbers<[1], [0], [0], [1], [0, 0, 1, 1], [], []>} : vector<104x128xbf16>, vector<128x128xbf16>, vector<104x128xf32> -> vector<104x128xf32>
    %45 = vector.shape_cast %44 : vector<104x128xf32> to vector<8x13x128xf32>
    %cst_25 = arith.constant dense<0xFF800000> : vector<8x128xf32>
    %46 = vector.multi_reduction <maximumf>, %45, %cst_25 [1] : vector<8x13x128xf32> to vector<8x128xf32>
    %c0_26 = arith.constant 0 : index
    %c0_27 = arith.constant 0 : index
    %47 = vector.load %arg9[%c0_26, %c0_27] : memref<1x128xf32, #tpu.memory_space<vmem>>, vector<1x128xf32>
    %48 = vector.broadcast %47 : vector<1x128xf32> to vector<8x128xf32>
    %49 = arith.addf %46, %48 : vector<8x128xf32>
    %cst_28 = arith.constant 0.000000e+00 : f32
    %50 = vector.broadcast %cst_28 : f32 to vector<8x128xf32>
    %51 = arith.maximumf %49, %50 : vector<8x128xf32>
    %52 = arith.truncf %51 : vector<8x128xf32> to vector<8x128xbf16>
    %c0_29 = arith.constant 0 : index
    %c0_30 = arith.constant 0 : index
    %53 = vector.load %arg10[%c0_29, %c0_30] : memref<128x128xbf16, #tpu.memory_space<vmem>>, vector<128x128xbf16>
    %cst_31 = arith.constant dense<0.000000e+00> : vector<8x128xf32>
    %54 = tpu.matmul %52, %53, %cst_31 {dimension_numbers = #tpu.dot_dimension_numbers<[1], [0], [0], [1], [0, 0, 1, 1], [], []>} : vector<8x128xbf16>, vector<128x128xbf16>, vector<8x128xf32> -> vector<8x128xf32>
    %55 = arith.addf %36, %54 : vector<8x128xf32>
    %c0_32 = arith.constant 0 : index
    %c0_33 = arith.constant 0 : index
    %56 = vector.load %arg11[%c0_32, %c0_33] : memref<1x128xf32, #tpu.memory_space<vmem>>, vector<1x128xf32>
    %57 = vector.broadcast %56 : vector<1x128xf32> to vector<8x128xf32>
    %58 = arith.addf %55, %57 : vector<8x128xf32>
    %cst_34 = arith.constant 0.000000e+00 : f32
    %59 = vector.broadcast %cst_34 : f32 to vector<8x128xf32>
    %60 = arith.maximumf %58, %59 : vector<8x128xf32>
    %61 = arith.truncf %60 : vector<8x128xf32> to vector<8x128xbf16>
    %c0_35 = arith.constant 0 : index
    %c0_36 = arith.constant 0 : index
    %62 = vector.load %arg12[%c0_35, %c0_36] : memref<128x128xbf16, #tpu.memory_space<vmem>>, vector<128x128xbf16>
    %cst_37 = arith.constant dense<0.000000e+00> : vector<8x128xf32>
    %63 = tpu.matmul %61, %62, %cst_37 {dimension_numbers = #tpu.dot_dimension_numbers<[1], [0], [0], [1], [0, 0, 1, 1], [], []>} : vector<8x128xbf16>, vector<128x128xbf16>, vector<8x128xf32> -> vector<8x128xf32>
    %c0_38 = arith.constant 0 : index
    %c0_39 = arith.constant 0 : index
    %64 = vector.load %arg13[%c0_38, %c0_39] : memref<1x128xf32, #tpu.memory_space<vmem>>, vector<1x128xf32>
    %65 = vector.broadcast %64 : vector<1x128xf32> to vector<8x128xf32>
    %66 = arith.addf %63, %65 : vector<8x128xf32>
    %cst_40 = arith.constant 0.000000e+00 : f32
    %67 = vector.broadcast %cst_40 : f32 to vector<8x128xf32>
    %68 = arith.subf %67, %66 : vector<8x128xf32>
    %69 = math.exp %68 : vector<8x128xf32>
    %cst_41 = arith.constant 1.000000e+00 : f32
    %70 = vector.broadcast %cst_41 : f32 to vector<8x128xf32>
    %71 = arith.addf %70, %69 : vector<8x128xf32>
    %72 = tpu.reciprocal %71 {approx = true} : vector<8x128xf32> -> vector<8x128xf32>
    %c0_42 = arith.constant 0 : index
    %c0_43 = arith.constant 0 : index
    %73 = vector.load %arg14[%c0_42, %c0_43] : memref<8x128xf32, #tpu.memory_space<vmem>>, vector<8x128xf32>
    tpu.vector_store %arg14[%c0_42, %c0_43], %72 {strides = array<i32>} : memref<8x128xf32, #tpu.memory_space<vmem>>, vector<8x128xf32>,
    return
  }
  func.func @transform_0(%arg0: i32) -> (i32, i32, i32) {
    %c0_i32 = arith.constant 0 : i32
    %c0_i32_0 = arith.constant 0 : i32
    %c0_i32_1 = arith.constant 0 : i32
    return %arg0, %c0_i32, %c0_i32_0 : i32, i32, i32
  }
  func.func @transform_1(%arg0: i32) -> (i32, i32) {
    %c0_i32 = arith.constant 0 : i32
    %c0_i32_0 = arith.constant 0 : i32
    %c0_i32_1 = arith.constant 0 : i32
    return %c0_i32, %c0_i32_0 : i32, i32
  }
  func.func @transform_2(%arg0: i32) -> (i32, i32) {
    %c0_i32 = arith.constant 0 : i32
    %c0_i32_0 = arith.constant 0 : i32
    %c0_i32_1 = arith.constant 0 : i32
    return %c0_i32, %c0_i32_0 : i32, i32
  }
  func.func @transform_3(%arg0: i32) -> (i32, i32) {
    %c0_i32 = arith.constant 0 : i32
    %c0_i32_0 = arith.constant 0 : i32
    %c0_i32_1 = arith.constant 0 : i32
    return %c0_i32, %c0_i32_0 : i32, i32
  }
  func.func @transform_4(%arg0: i32) -> (i32, i32) {
    %c0_i32 = arith.constant 0 : i32
    %c0_i32_0 = arith.constant 0 : i32
    %c0_i32_1 = arith.constant 0 : i32
    return %c0_i32, %c0_i32_0 : i32, i32
  }
  func.func @transform_5(%arg0: i32) -> (i32, i32) {
    %c0_i32 = arith.constant 0 : i32
    %c0_i32_0 = arith.constant 0 : i32
    %c0_i32_1 = arith.constant 0 : i32
    return %c0_i32, %c0_i32_0 : i32, i32
  }
  func.func @transform_6(%arg0: i32) -> (i32, i32) {
    %c0_i32 = arith.constant 0 : i32
    %c0_i32_0 = arith.constant 0 : i32
    %c0_i32_1 = arith.constant 0 : i32
    return %c0_i32, %c0_i32_0 : i32, i32
  }
  func.func @transform_7(%arg0: i32) -> (i32, i32) {
    %c0_i32 = arith.constant 0 : i32
    %c0_i32_0 = arith.constant 0 : i32
    %c0_i32_1 = arith.constant 0 : i32
    return %c0_i32, %c0_i32_0 : i32, i32
  }
  func.func @transform_8(%arg0: i32) -> (i32, i32) {
    %c0_i32 = arith.constant 0 : i32
    %c0_i32_0 = arith.constant 0 : i32
    %c0_i32_1 = arith.constant 0 : i32
    return %c0_i32, %c0_i32_0 : i32, i32
  }
  func.func @transform_9(%arg0: i32) -> (i32, i32) {
    %c0_i32 = arith.constant 0 : i32
    %c0_i32_0 = arith.constant 0 : i32
    %c0_i32_1 = arith.constant 0 : i32
    return %c0_i32, %c0_i32_0 : i32, i32
  }
  func.func @transform_10(%arg0: i32) -> (i32, i32) {
    %c0_i32 = arith.constant 0 : i32
    %c0_i32_0 = arith.constant 0 : i32
    %c0_i32_1 = arith.constant 0 : i32
    return %c0_i32, %c0_i32_0 : i32, i32
  }
  func.func @transform_11(%arg0: i32) -> (i32, i32) {
    %c0_i32 = arith.constant 0 : i32
    %c0_i32_0 = arith.constant 0 : i32
    %c0_i32_1 = arith.constant 0 : i32
    return %c0_i32, %c0_i32_0 : i32, i32
  }
  func.func @transform_12(%arg0: i32) -> (i32, i32) {
    %c0_i32 = arith.constant 0 : i32
    %c0_i32_0 = arith.constant 0 : i32
    %c0_i32_1 = arith.constant 0 : i32
    return %c0_i32, %c0_i32_0 : i32, i32
  }
  func.func @transform_13(%arg0: i32) -> (i32, i32) {
    %c0_i32 = arith.constant 0 : i32
    %c0_i32_0 = arith.constant 0 : i32
    return %arg0, %c0_i32 : i32, i32
  }
}

</mosaic_0001>

<bundles_post_ra>
// kernel: tpu_custom_call.1
= control target key start
LH: loop header
LB: loop body
LE: loop exit
PB: predicated region body
PF: predicated region fallthrough
CT: control target
= control target key end

     0   :  { %s11431_s0 = inlined_call_operand.hbm [shape: bf16[16,16,32], index: 0, kind: input, shape index: {}]   ;;  %s11432_s1 = inlined_call_operand.hbm [shape: bf16[64,128], index: 1, kind: input, shape index: {}]   ;;  %s11433_s2 = inlined_call_operand.vmem [shape: f32[1,128], index: 2, kind: input, shape index: {}]   ;;  %s11434_s3 = inlined_call_operand.hbm [shape: bf16[128,128], index: 3, kind: input, shape index: {}]   ;;  %s11435_s4 = inlined_call_operand.hbm [shape: bf16[96,128], index: 4, kind: input, shape index: {}]   ;;  %s11436_s5 = inlined_call_operand.vmem [shape: f32[1,128], index: 5, kind: input, shape index: {}]   ;;  %s11437_s6 = inlined_call_operand.hbm [shape: bf16[128,128], index: 6, kind: input, shape index: {}]   ;;  %s11438_s7 = inlined_call_operand.hbm [shape: bf16[128,128], index: 7, kind: input, shape index: {}]   ;;  %s11439_s8 = inlined_call_operand.vmem [shape: f32[1,128], index: 8, kind: input, shape index: {}]   ;;  %s11440_s9 = inlined_call_operand.hbm [shape: bf16[128,128], index: 9, kind: input, shape index: {}]   ;;  %s11441_s10 = inlined_call_operand.vmem [shape: f32[1,128], index: 10, kind: input, shape index: {}]   ;;  %s11442_s11 = inlined_call_operand.hbm [shape: bf16[128,128], index: 11, kind: input, shape index: {}]   ;;  %s11443_s12 = inlined_call_operand.vmem [shape: f32[1,128], index: 12, kind: input, shape index: {}]   ;;  %s11444_s13 = inlined_call_operand.hbm [shape: f32[16,128], index: 13, kind: output, shape index: {}]  }
   0x1   :  { %11454 = sst [smem:[#allocation24_spill]] %s11432_s1 }
   0x2   :  { %11455 = sst [smem:[#allocation25_spill]] %s11433_s2 }
   0x3   :  { %11456 = sst [smem:[#allocation26_spill]] %s11439_s8 }
   0x4   :  { %11457 = sst [smem:[#allocation27_spill]] %s11441_s10 }
   0x5   :  { %11458 = sst [smem:[#allocation28_spill]] %s11443_s12 }
   0x6   :  { %11459 = sst [smem:[#allocation29_spill]] %s11444_s13 }
   0x7   :  { %18 = vsyncpa [#allocation3], 0 }
   0x8   :  { %20 = vsyncpa [#allocation3 + $0x1], 0 }
   0x9   :  { %21 = vsyncpa [#allocation6], 0 }
   0xa   :  { %22 = vsyncpa [#allocation9], 0 }
   0xb   :  { %23 = vsyncpa [#allocation12], 0 }
   0xc   :  { %24 = vsyncpa [#allocation15], 0 }
   0xd   :  { %25 = vsyncpa [#allocation4], 0 }
   0xe   :  { %27 = vsyncpa [#allocation4 + $0x1], 0  ;;  %s9304_s25 = smov 0   ;;  %s9306_s26 = smov 0  }
   0xf   :  { %s9308_s27 = smov 0   ;;  %s9310_s28 = smov 0  }
  0x10 LB: > { %s9216_s29 = smov [#allocation5]   ;;  %s9325_s14 = sadd.s32 4294967295, %s9214_s28   ;;  %s9214_s28 = sphi %s9310_s28, %s11501_s28   ;;  %s9210_s27 = sphi %s9308_s27, %s11500_s27   ;;  %s9206_s26 = sphi %s9306_s26, %s11499_s26   ;;  %s9202_s25 = sphi %s9304_s25, %s11498_s25  }
  0x11   : > { %s354_s30 = sshll.u32 %s9216_s29, 4  ;;  %p8251_p0 = scmp.ge.s32.totalorder %s9214_s28, 1  ;;  %s9330_s30 = int_to_ptr.vmem [resolvable:$true] %s354_s30 }
  0x12   : > { %p11447_p1 = scmp.eq.s32.totalorder %s9325_s14, 0  ;;  %p342_p2 = scmp.lt.s32.totalorder %s9214_s28, 3 }
  0x13   : > { %s9217_s16 = smov [#allocation8]   ;;  %s9218_s19 = smov [#allocation11]  }
  0x14   : > { %p9332_p3 = pnand %p8251_p0, %p342_p2  ;;  %s383_s17 = sshll.u32 %s9217_s16, 4  ;;  %s9345_s17 = int_to_ptr.vmem [resolvable:$true] %s383_s17 }
  0x15   : > { %s412_s20 = sshll.u32 %s9218_s19, 4  ;;  %s11462_s1 = sld [smem:[#allocation24_spill]]  ;;  %s9347_s20 = int_to_ptr.vmem [resolvable:$true] %s412_s20 }
  0x16   : > { %s11460_s15 = scalar_select %p9332_p3, 1, 0 }
  0x17   : > { %p8748_p5 = pneg %p9332_p3 }
  0x19   : > { %p9341_p6 = pnand %p8748_p5, %p11447_p1 }
  0x1b   : > { %s8906_s23 = scalar_lea.hbm %s11462_s1, 512  ;;  %p9357_p8 = pneg %p9341_p6 }
  0x1c   : > { %p8907_p7 = scmp.ne.s32.totalorder %s11462_s1, %s8906_s23  ;;  %p8913_p11 = scmp.lt.u32.totalorder %s8906_s23, %s11462_s1 }
  0x1e   : > { %p8909_p9 = pnand %p9357_p8, %p8907_p7 }
  0x20   : > { %p8910_p10 = pneg %p8909_p9 }
  0x22   : > { %p8915_p12 = pnand %p8913_p11, %p8910_p10 }
  0x24   : > { %8918 = shalt.err (!%p8915_p12)
}
  0x25   : > { %s8919_s21 = scalar_lea.vmem %s9330_s30, 512  ;;  %p8927_p5 = scmp.lt.s32.totalorder %s9330_s30, %s9330_s30 }
  0x26   : > { %p8920_p13 = scmp.ne.s32.totalorder %s9330_s30, %s8919_s21  ;;  %p8928_p4 = scmp.lt.s32.totalorder %s8919_s21, %s8919_s21 }
  0x28   : > { %p8922_p0 = pnand %p8920_p13, %p9357_p8  ;;  %p8929_p7 = por %p8928_p4, %p8927_p5 }
  0x2a   : > { %p8923_p2 = pneg %p8922_p0 }
  0x2c   : > { %p8930_p9 = pnand %p8929_p7, %p8923_p2 }
  0x2e   : > { %8933 = shalt.err (!%p8930_p9)
}
  0x2f   : > { %s11449_s22 = smov 64   ;;  %s9220_s13 = smov 4  }
  0x30   : > { %8751 = dma.hbm_to_vmem [thread:$0]  (!%p9341_p6), %s11462_s1, 512, %s9330_s30, [#allocation6], %s11449_s22, %s11449_s22, %s9220_s13  }
  0x31   : > { %s8934_s21 = scalar_lea.hbm %s11435_s4, 768 }
  0x32   : > { %p8935_p4 = scmp.ne.s32.totalorder %s11435_s4, %s8934_s21  ;;  %p8941_p12 = scmp.lt.u32.totalorder %s8934_s21, %s11435_s4 }
  0x34   : > { %p8937_p10 = pnand %p8935_p4, %p9357_p8 }
  0x36   : > { %p8938_p11 = pneg %p8937_p10 }
  0x38   : > { %p8943_p13 = pnand %p8941_p12, %p8938_p11 }
  0x3a   : > { %8946 = shalt.err (!%p8943_p13)
}
  0x3b   : > { %s8947_s30 = scalar_lea.vmem %s9345_s17, 768  ;;  %p8955_p7 = scmp.lt.s32.totalorder %s9345_s17, %s9345_s17 }
  0x3c   : > { %p8948_p0 = scmp.ne.s32.totalorder %s9345_s17, %s8947_s30  ;;  %p8956_p9 = scmp.lt.s32.totalorder %s8947_s30, %s8947_s30 }
  0x3e   : > { %p8950_p2 = pnand %p8948_p0, %p9357_p8  ;;  %p8957_p4 = por %p8956_p9, %p8955_p7 }
  0x40   : > { %p8951_p5 = pneg %p8950_p2 }
  0x42   : > { %p8958_p10 = pnand %p8957_p4, %p8951_p5 }
  0x44   : > { %8961 = shalt.err (!%p8958_p10)
}
  0x45   : > { %8757 = dma.hbm_to_vmem [thread:$0]  (!%p9341_p6), %s11435_s4, 768, %s9345_s17, [#allocation9], %s11449_s22, %s11449_s22, %s9220_s13  }
  0x46   : > { %s8962_s23 = scalar_lea.hbm %s11438_s7, 1024 }
  0x47   : > { %p8963_p11 = scmp.ne.s32.totalorder %s11438_s7, %s8962_s23  ;;  %p8969_p0 = scmp.lt.u32.totalorder %s8962_s23, %s11438_s7 }
  0x49   : > { %p8965_p12 = pnand %p8963_p11, %p9357_p8 }
  0x4b   : > { %p8966_p13 = pneg %p8965_p12 }
  0x4d   : > { %p8971_p2 = pnand %p8969_p0, %p8966_p13 }
  0x4f   : > { %8974 = shalt.err (!%p8971_p2)
}
  0x50   : > { %s8975_s17 = scalar_lea.vmem %s9347_s20, 1024  ;;  %p8983_p4 = scmp.lt.s32.totalorder %s9347_s20, %s9347_s20 }
  0x51   : > { %p8976_p5 = scmp.ne.s32.totalorder %s9347_s20, %s8975_s17  ;;  %p8984_p10 = scmp.lt.s32.totalorder %s8975_s17, %s8975_s17 }
  0x53   : > { %p8978_p7 = pnand %p8976_p5, %p9357_p8  ;;  %p8985_p11 = por %p8984_p10, %p8983_p4 }
  0x55   : > { %p8979_p9 = pneg %p8978_p7 }
  0x57   : > { %p8986_p12 = pnand %p8985_p11, %p8979_p9 }
  0x59   : > { %8989 = shalt.err (!%p8986_p12)
}
  0x5a   : > { %8763 = dma.hbm_to_vmem [thread:$0]  (!%p9341_p6), %s11438_s7, 1024, %s9347_s20, [#allocation12], %s11449_s22, %s11449_s22, %s9220_s13  }
  0x5b   : > { %s9221_s8 = smov [#allocation7]   ;;  %s9222_s12 = smov [#allocation10]  }
  0x5c   : > { %s370_s10 = sshll.u32 %s9221_s8, 4  ;;  %s399_s23 = sshll.u32 %s9222_s12, 4  ;;  %s371_s10 = int_to_ptr.vmem [resolvable:$true] %s370_s10  ;;  %s400_s23 = int_to_ptr.vmem [resolvable:$true] %s399_s23 }
  0x5d   : > { %s8990_s19 = scalar_lea.hbm %s11434_s3, 1024 }
  0x5e   : > { %p8991_p13 = scmp.ne.s32.totalorder %s11434_s3, %s8990_s19  ;;  %p8997_p5 = scmp.lt.u32.totalorder %s8990_s19, %s11434_s3 }
  0x60   : > { %p8993_p0 = pnand %p8991_p13, %p9357_p8 }
  0x62   : > { %p8994_p2 = pneg %p8993_p0 }
  0x64   : > { %p8999_p7 = pnand %p8997_p5, %p8994_p2 }
  0x66   : > { %9002 = shalt.err (!%p8999_p7)
}
  0x67   : > { %s9003_s20 = scalar_lea.vmem %s371_s10, 1024  ;;  %p9011_p11 = scmp.lt.s32.totalorder %s371_s10, %s371_s10 }
  0x68   : > { %p9004_p9 = scmp.ne.s32.totalorder %s371_s10, %s9003_s20  ;;  %p9012_p12 = scmp.lt.s32.totalorder %s9003_s20, %s9003_s20 }
  0x6a   : > { %p9006_p4 = pnand %p9004_p9, %p9357_p8  ;;  %p9013_p1 = por %p9012_p12, %p9011_p11 }
  0x6c   : > { %p9007_p10 = pneg %p9006_p4 }
  0x6e   : > { %p9014_p3 = pnand %p9013_p1, %p9007_p10 }
  0x70   : > { %9017 = shalt.err (!%p9014_p3)
}
  0x71   : > { %8754 = dma.hbm_to_vmem [thread:$0]  (!%p9341_p6), %s11434_s3, 1024, %s371_s10, [#allocation6], %s11449_s22, %s11449_s22, %s9220_s13  }
  0x72   : > { %s9018_s24 = scalar_lea.hbm %s11437_s6, 1024 }
  0x73   : > { %p9019_p1 = scmp.ne.s32.totalorder %s11437_s6, %s9018_s24  ;;  %p9025_p0 = scmp.lt.u32.totalorder %s9018_s24, %s11437_s6 }
  0x75   : > { %p9021_p3 = pnand %p9019_p1, %p9357_p8 }
  0x77   : > { %p9022_p13 = pneg %p9021_p3 }
  0x79   : > { %p9027_p2 = pnand %p9025_p0, %p9022_p13 }
  0x7b   : > { %9030 = shalt.err (!%p9027_p2)
}
  0x7c   : > { %s9031_s30 = scalar_lea.vmem %s400_s23, 1024  ;;  %p9039_p4 = scmp.lt.s32.totalorder %s400_s23, %s400_s23 }
  0x7d   : > { %p9032_p5 = scmp.ne.s32.totalorder %s400_s23, %s9031_s30  ;;  %p9040_p10 = scmp.lt.s32.totalorder %s9031_s30, %s9031_s30 }
  0x7f   : > { %p9034_p7 = pnand %p9032_p5, %p9357_p8  ;;  %p9041_p11 = por %p9040_p10, %p9039_p4 }
  0x81   : > { %p9035_p9 = pneg %p9034_p7 }
  0x83   : > { %p9042_p12 = pnand %p9041_p11, %p9035_p9 }
  0x85   : > { %9045 = shalt.err (!%p9042_p12)
}
  0x86   : > { %8760 = dma.hbm_to_vmem [thread:$0]  (!%p9341_p6), %s11437_s6, 1024, %s400_s23, [#allocation9], %s11449_s22, %s11449_s22, %s9220_s13  }
  0x87   : > { %s9223_s1 = smov [#allocation13]   ;;  %s9224_s8 = smov [#allocation14]  }
  0x88   : > { %s428_s2 = sshll.u32 %s9223_s1, 4  ;;  %s444_s12 = sshll.u32 %s9224_s8, 4  ;;  %s429_s2 = int_to_ptr.vmem [resolvable:$true] %s428_s2  ;;  %s445_s12 = int_to_ptr.vmem [resolvable:$true] %s444_s12 }
  0x89   : > { %s9046_s19 = scalar_lea.hbm %s11440_s9, 1024 }
  0x8a   : > { %p9047_p1 = scmp.ne.s32.totalorder %s11440_s9, %s9046_s19  ;;  %p9053_p0 = scmp.lt.u32.totalorder %s9046_s19, %s11440_s9 }
  0x8c   : > { %p9049_p3 = pnand %p9047_p1, %p9357_p8 }
  0x8e   : > { %p9050_p13 = pneg %p9049_p3 }
  0x90   : > { %p9055_p2 = pnand %p9053_p0, %p9050_p13 }
  0x92   : > { %9058 = shalt.err (!%p9055_p2)
}
  0x93   : > { %s9059_s23 = scalar_lea.vmem %s429_s2, 1024  ;;  %p9067_p4 = scmp.lt.s32.totalorder %s429_s2, %s429_s2 }
  0x94   : > { %p9060_p5 = scmp.ne.s32.totalorder %s429_s2, %s9059_s23  ;;  %p9068_p10 = scmp.lt.s32.totalorder %s9059_s23, %s9059_s23 }
  0x96   : > { %p9062_p7 = pnand %p9060_p5, %p9357_p8  ;;  %p9069_p11 = por %p9068_p10, %p9067_p4 }
  0x98   : > { %p9063_p9 = pneg %p9062_p7 }
  0x9a   : > { %p9070_p12 = pnand %p9069_p11, %p9063_p9 }
  0x9c   : > { %9073 = shalt.err (!%p9070_p12)
}
  0x9d   : > { %8766 = dma.hbm_to_vmem [thread:$0]  (!%p9341_p6), %s11440_s9, 1024, %s429_s2, [#allocation12], %s11449_s22, %s11449_s22, %s9220_s13  }
  0x9e   : > { %s9074_s29 = scalar_lea.hbm %s11442_s11, 1024 }
  0x9f   : > { %p9075_p1 = scmp.ne.s32.totalorder %s11442_s11, %s9074_s29  ;;  %p9081_p0 = scmp.lt.u32.totalorder %s9074_s29, %s11442_s11 }
  0xa1   : > { %p9077_p3 = pnand %p9075_p1, %p9357_p8 }
  0xa3   : > { %p9078_p13 = pneg %p9077_p3 }
  0xa5   : > { %p9083_p2 = pnand %p9081_p0, %p9078_p13 }
  0xa7   : > { %9086 = shalt.err (!%p9083_p2)
}
  0xa8   : > { %s9087_s10 = scalar_lea.vmem %s445_s12, 1024  ;;  %p9095_p4 = scmp.lt.s32.totalorder %s445_s12, %s445_s12 }
  0xa9   : > { %p9088_p5 = scmp.ne.s32.totalorder %s445_s12, %s9087_s10  ;;  %p9096_p10 = scmp.lt.s32.totalorder %s9087_s10, %s9087_s10 }
  0xab   : > { %p9090_p7 = pnand %p9088_p5, %p9357_p8  ;;  %p9097_p11 = por %p9096_p10, %p9095_p4 }
  0xad   : > { %p9091_p9 = pneg %p9090_p7 }
  0xaf   : > { %p9098_p12 = pnand %p9097_p11, %p9091_p9 }
  0xb1   : > { %9101 = shalt.err (!%p9098_p12)
}
  0xb2   : > { %8769 = dma.hbm_to_vmem [thread:$0]  (!%p9341_p6), %s11442_s11, 1024, %s445_s12, [#allocation15], %s11449_s22, %s11449_s22, %s9220_s13  }
  0xb3   : > { %s8250_s18 = sadd.s32 4294967294, %s9214_s28   ;;  %s9519_s16 = sadd.s32 1, %s9214_s28  }
  0xb4   : > { %s40_s20 = sadd.s32 1, %s9210_s27  ;;  %s37_s1 = ssub.s32 %s9214_s28, %s9519_s16 }
  0xb5   : > { %p47_p8 = scmp.ne.s32.totalorder %s9210_s27, %s9206_s26  ;;  %p38_p1 = scmp.eq.s32.totalorder %s37_s1, 0 }
  0xb6   : > { %p48_p3 = scmp.eq.s32.totalorder %s9214_s28, 0  ;;  %p53_p13 = scmp.ne.s32.totalorder %s9206_s26, %s9202_s25 }
  0xb7   : > { %p329_p0 = scmp.eq.s32.totalorder %s9325_s14, 1  ;;  %p11464_p5 = scmp.eq.s32.totalorder %s9325_s14, 0 }
  0xb8   : > { %s9531_s8 = scalar_select %p38_p1, %s9210_s27, %s40_s20  }
  0xb9   : > { %p49_p2 = por %p48_p3, %p47_p8  ;;  %p9535_p7 = por %p11464_p5, %p53_p13 }
  0xba   : > { %p9539_p6 = por %p329_p0, %p47_p8  ;;  %p335_p9 = scmp.eq.s32.totalorder %s8250_s18, 1 }
  0xbb   : > { %p8785_p4 = scmp.lt.s32.totalorder %s9214_s28, 2  ;;  %s461_s29 = sand.u32 1, %s9210_s27  }
  0xbc   : > { %s11466_s12 = scalar_select %p9539_p6, 1, 0 }
  0xbd   : > { %p9545_p10 = por %p335_p9, %p53_p13  ;;  %s8260_s21 = sshll.u32 %s461_s29, 6 }
  0xbe   : > { %s8451_s17 = sshll.u32 %s9214_s28, 10  ;;  %s465_s23 = scalar_lea.vmem [#allocation2], %s8260_s21 }
  0xbf   : > { %s11467_s19 = scalar_select %p9545_p10, 1, 0 }
  0xc0   : > { %s9553_s2 = scalar_lea.hbm %s11431_s0, %s8451_s17  ;;  %s473_s20 = sshll.u32 %s465_s23, 4  ;;  %s9559_s20 = int_to_ptr.vmem [resolvable:$true] %s473_s20 }
  0xc1   : > { %p9555_p11 = pnand %p8785_p4, %p49_p2  ;;  %s9561_s1 = scalar_lea.sflag [#allocation3], %s461_s29 }
  0xc2   : > { %s9102_s22 = scalar_lea.hbm %s9553_s2, 1024  ;;  %s9107_s30 = scalar_lea.hbm %s11431_s0, 2048 }
  0xc3   : > { %p9103_p12 = scmp.ne.s32.totalorder %s9553_s2, %s9102_s22  ;;  %p9104_p8 = pneg %p9555_p11 }
  0xc4   : > { %p9108_p13 = scmp.lt.u32.totalorder %s9553_s2, %s11431_s0  ;;  %p9109_p0 = scmp.lt.u32.totalorder %s9107_s30, %s9102_s22 }
  0xc5   : > { %p9105_p1 = pnand %p9104_p8, %p9103_p12  ;;  %p9111_p5 = scmp.lt.u32.totalorder %s9102_s22, %s9553_s2 }
  0xc6   : > { %p9110_p2 = por %p9109_p0, %p9108_p13 }
  0xc7   : > { %p9106_p3 = pneg %p9105_p1 }
  0xc8   : > { %p9112_p9 = por %p9111_p5, %p9110_p2 }
  0xca   : > { %p9113_p4 = pnand %p9112_p9, %p9106_p3 }
  0xcc   : > { %9116 = shalt.err (!%p9113_p4)
}
  0xcd   : > { %s9117_s29 = scalar_lea.vmem %s9559_s20, 1024  ;;  %s9225_s21 = smov [#allocation2]  }
  0xce   : > { %p9118_p12 = scmp.ne.s32.totalorder %s9559_s20, %s9117_s29  ;;  %s9122_s17 = sshll.u32 %s9225_s21, 4  ;;  %s9123_s17 = int_to_ptr.vmem [resolvable:$false] %s9122_s17 }
  0xcf   : > { %s9124_s10 = scalar_lea.vmem %s9123_s17, 2048  ;;  %p9125_p6 = scmp.lt.s32.totalorder %s9559_s20, %s9123_s17 }
  0xd0   : > { %p9120_p1 = pnand %p9118_p12, %p9104_p8  ;;  %p9126_p13 = scmp.lt.s32.totalorder %s9124_s10, %s9117_s29 }
  0xd2   : > { %p9121_p10 = pneg %p9120_p1  ;;  %p9127_p0 = por %p9126_p13, %p9125_p6 }
  0xd4   : > { %p9128_p2 = pnand %p9127_p0, %p9121_p10 }
  0xd6   : > { %9131 = shalt.err (!%p9128_p2)
}
  0xd7   : > { %s11469_s22 = smov 64   ;;  %p11470_p8 = scmp.ne.s32.totalorder %s11460_s15, 0 }
  0xd8   : > { %8773 = dma.hbm_to_vmem [thread:$0]  (!%p9555_p11), %s9553_s2, 1024, %s9559_s20, %s9561_s1, %s11469_s22, %s11469_s22, %s9220_s13  }
  0xd9   : > { %485 = sbr.rel (%p11470_p8) target bundleno = 1403 (0x57b), region = 72 }
  0xe0   : > { %s9595_s30 = sand.u32 1, %s9206_s26  }
  0xe1   : > { %s8265_s23 = sshll.u32 %s9595_s30, 6  ;;  %s488_s29 = scalar_lea.sflag [#allocation3], %s9595_s30 }
  0xe2   : > { %s9599_s21 = scalar_lea.vmem [#allocation2], %s8265_s23 }
  0xe3   : > { %9177 = dma.done.wait (%p9535_p7), %s488_s29, 1024  }
  0xe4   : > { %9179 = vsyncadd (%p9535_p7), %s488_s29, 4294966272  ;;  %p11471_p6 = scmp.eq.s32.totalorder %s9325_s14, 0 }
  0xe6   : > { %9181 = dma.done.wait (%p11471_p6), [#allocation6], 1536   ;;  %p11472_p10 = pmov %p11471_p6 }
  0xe7   : > { %p11473_p11 = pmov %p11471_p6 }
  0xe8   : > { %9183 = vsyncadd (%p11472_p10), [#allocation6], 4294965760 }
  0xe9   : > { %9185 = dma.done.wait (%p11473_p11), [#allocation9], 1792   ;;  %p11474_p3 = pmov %p11471_p6 }
  0xeb   : > { %9187 = vsyncadd (%p11474_p3), [#allocation9], 4294965504  ;;  %p11475_p5 = pmov %p11474_p3 }
  0xec   : > { %p11476_p9 = pmov %p11474_p3 }
  0xed   : > { %9189 = dma.done.wait (%p11475_p5), [#allocation12], 2048  }
  0xee   : > { %9191 = vsyncadd (%p11476_p9), [#allocation12], 4294965248  ;;  %p11477_p7 = pmov %p11474_p3 }
  0xef   : > { %p11478_p4 = pmov %p11474_p3 }
  0xf0   : > { %9193 = dma.done.wait (%p11477_p7), [#allocation15], 1024  }
  0xf1   : > { %9195 = vsyncadd (%p11478_p4), [#allocation15], 4294966272  ;;  %v11451_v0 = vmov 0.0   ;;  %v9623_v1 = vld [vmem:[%s9599_s21 + $0x8] sm:$0xff]   ;;  %v9626_v2 = vld [vmem:[%s9599_s21] sm:$0xff]   ;;  %s9227_s15 = smov 32  }
  0xf2   : > { %8552 = vmatprep.subr.bf16.mxu1 %v11451_v0  ;;  %v628_v3 = vshrl.u32 %v9623_v1, 16  ;;  %v630_v4 = vshll.u32 %v9623_v1, 16  ;;  %v9631_v5 = vld [vmem:[%s9599_s21 + $0x10] sm:$0xff]   ;;  %v621_v6 = vshrl.u32 %v9626_v2, 16  ;;  %v623_v7 = vshll.u32 %v9626_v2, 16  ;;  %v9636_v9 = vld [vmem:[%s9599_s21 + $0x18] sm:$0xff]  }
  0xf3   : > { %v637_v11 = vshll.u32 %v9631_v5, 16  ;;  %v3464_v14 = vrot.slane %v9623_v1, 1  ;;  %v9641_v15 = vld [vmem:[%s9599_s21 + $0x20] sm:$0xff]   ;;  %v644_v16 = vshll.u32 %v9636_v9, 16  ;;  %v9646_v17 = vld [vmem:[%s9599_s21 + $0x28] sm:$0xff]   ;;  %v3463_v18 = vrot.slane %v9626_v2, 1 }
  0xf4   : > { %v632_v8 = vrot.slane %v630_v4, 1  ;;  %v625_v10 = vrot.slane %v623_v7, 1  ;;  %v635_v19 = vshrl.u32 %v9631_v5, 16  ;;  %v9652_v21 = vld [vmem:[%s9599_s21 + $0x30] sm:$0xff]   ;;  %v651_v22 = vshll.u32 %v9641_v15, 16  ;;  %v9656_v23 = vld [vmem:[%s9599_s21 + $0x38] sm:$0xff]  }
  0xf5   : > { %v639_v20 = vrot.slane %v637_v11, 1  ;;  %v9658_v24 = vrot.slane %v628_v3, 1  ;;  %v9660_v25 = vrot.slane %v621_v6, 1  ;;  %v3465_v26 = vrot.slane %v9631_v5, 1  ;;  %s9228_s13 = smov 64   ;;  %v8850_v36 = vld [vmem:[#allocation8] sm:$0xff]  }
  0xf6   : > { %v633_v12 = vor.u32 %v632_v8, %v628_v3  ;;  %v626_v13 = vor.u32 %v625_v10, %v621_v6  ;;  %v3466_v27 = vrot.slane %v9636_v9, 1  ;;  %v642_v28 = vshrl.u32 %v9636_v9, 16  ;;  %8553 = vmatpush3.bf16.msra.mxu1 %v8850_v36  ;;  %v8851_v42 = vld [vmem:[#allocation8 + $0x8] sm:$0xff]   ;;  %v8852_v47 = vld [vmem:[#allocation5] sm:$0xff]   ;;  %v8853_v57 = vld [vmem:[#allocation8 + $0x10] sm:$0xff]   ;;  %s9230_s24 = smov 96  }
  0xf7   : > { %v646_v29 = vrot.slane %v644_v16, 1  ;;  %v3467_v30 = vrot.slane %v9641_v15, 1  ;;  %v658_v31 = vshll.u32 %v9646_v17, 16  ;;  %v640_v32 = vor.u32 %v639_v20, %v635_v19  ;;  %8554 = vmatprep.subr.bf16.mxu1 %v11451_v0  ;;  %8528 = vmatprep.subr.bf16.mxu0 %v8852_v47  ;;  %v8854_v61 = vld [vmem:[#allocation5 + $0x8] sm:$0xff]   ;;  %v8855_v62 = vld [vmem:[#allocation8 + $0x18] sm:$0xff]   ;;  %v8856_v6 = vld [vmem:[#allocation5 + $0x10] sm:$0xff]  }
  0xf8   : > { %678 = vrot.lane.b32.xlu1 %v633_v12, %s9227_s15  ;;  %676 = vrot.lane.b32.xlu0 %v626_v13, %s9227_s15  ;;  %v649_v33 = vshrl.u32 %v9641_v15, 16  ;;  %v665_v34 = vshll.u32 %v9652_v21, 16  ;;  %v672_v35 = vshll.u32 %v9656_v23, 16  ;;  %v653_v37 = vrot.slane %v651_v22, 1  ;;  %v8858_v13 = vld [vmem:[#allocation5 + $0x18] sm:$0xff]   ;;  %s11490_s17 = sld [smem:[#allocation25_spill]] }
  0xf9   : > { %v3468_v38 = vrot.slane %v9646_v17, 1  ;;  %v656_v39 = vshrl.u32 %v9646_v17, 16  ;;  %v3469_v40 = vrot.slane %v9652_v21, 1  ;;  %v663_v41 = vshrl.u32 %v9652_v21, 16  ;;  %8529 = vmatpush3.bf16.msra.mxu0 %v8852_v47  ;;  %s11491_s21 = sld [smem:[#allocation26_spill]]  ;;  %s11492_s20 = sld [smem:[#allocation27_spill]] }
  0xfa   : > { %v647_v43 = vor.u32 %v646_v29, %v642_v28  ;;  %v660_v44 = vrot.slane %v658_v31, 1  ;;  %v3470_v45 = vrot.slane %v9656_v23, 1  ;;  %v670_v46 = vshrl.u32 %v9656_v23, 16  ;;  %8555 = vmatpush3.bf16.msra.mxu1 %v8851_v42  ;;  %8530 = vmatprep.subr.bf16.mxu0 %v8854_v61  ;;  %s11493_s10 = sld [smem:[#allocation28_spill]]  ;;  %s8273_s22 = sshll.u32 %s9595_s30, 3 }
  0xfb   : > { %v667_v48 = vrot.slane %v665_v34, 1  ;;  %v674_v49 = vrot.slane %v672_v35, 1  ;;  %v5292_v50 = vrot.slane %v630_v4, 2  ;;  %v5289_v51 = vrot.slane %v623_v7, 2  ;;  %8556 = vmatprep.subr.bf16.mxu1 %v11451_v0  ;;  %v8857_v7 = vld [vmem:[#allocation8 + $0x20] sm:$0xff]   ;;  %s8447_s23 = sshll.u32 %s9325_s14, 7 }
  0xfc   : > { %3473 = vrot.lane.b32.xlu1 %v3464_v14, %s9228_s13  ;;  %3471 = vrot.lane.b32.xlu0 %v3463_v18, %s9228_s13  ;;  %v5297_v52 = vrot.slane %v642_v28, 1  ;;  %v5298_v53 = vrot.slane %v644_v16, 2  ;;  %v5294_v54 = vrot.slane %v635_v19, 1  ;;  %v5295_v55 = vrot.slane %v637_v11, 2  ;;  %v8859_v14 = vld [vmem:[#allocation8 + $0x28] sm:$0xff]   ;;  %s561_s29 = scalar_lea.vmem [#allocation16], %s8273_s22 }
  0xfd   : > { %v5303_v56 = vrot.slane %v656_v39, 1  ;;  %v654_v58 = vor.u32 %v653_v37, %v649_v33  ;;  %v5304_v59 = vrot.slane %v658_v31, 2  ;;  %v5300_v60 = vrot.slane %v649_v33, 1  ;;  %8531 = vmatpush3.bf16.msra.mxu0 %v8854_v61  ;;  %p11495_p1 = scmp.ne.s32.totalorder %s11466_s12, 0  ;;  %s9233_s14 = smov [#allocation16]  }
  0xfe   : > { %8557 = vmatpush3.bf16.msra.mxu1 %v8853_v57  ;;  %v661_v63 = vor.u32 %v660_v44, %v656_v39  ;;  %v5301_v3 = vrot.slane %v651_v22, 2  ;;  %v5309_v4 = vrot.slane %v670_v46, 1  ;;  %v668_v8 = vor.u32 %v667_v48, %v663_v41  ;;  %8532 = vmatprep.subr.bf16.mxu0 %v8856_v6  ;;  %s9136_s1 = sshll.u32 %s9233_s14, 4  ;;  %s9137_s1 = int_to_ptr.vmem [resolvable:$false] %s9136_s1 }
  0xff   : > { %8558 = vmatprep.subr.bf16.mxu1 %v11451_v0  ;;  %v675_v10 = vor.u32 %v674_v49, %v670_v46  ;;  %v5310_v11 = vrot.slane %v672_v35, 2  ;;  %v5306_v12 = vrot.slane %v663_v41, 1  ;;  %v5293_v16 = vor.u32 %v5292_v50, %v9658_v24 }
 0x100   : > { %3475 = vrot.lane.b32.xlu1 %v3465_v26, %s9228_s13  ;;  %680 = vrot.lane.b32.xlu0 %v640_v32, %s9227_s15  ;;  %v5307_v18 = vrot.slane %v665_v34, 2  ;;  %v5290_v19 = vor.u32 %v5289_v51, %v9660_v25  ;;  %vm9229_vm0 = vmmov 0   ;;  %v5299_v20 = vor.u32 %v5298_v53, %v5297_v52 }
 0x101   : > { %8533 = vmatpush3.bf16.msra.mxu0 %v8856_v6  ;;  %8564 = vmatprep.mubr.msk.bf16.mxu1 %vm9229_vm0, %v11451_v0  ;;  %v5296_v22 = vor.u32 %v5295_v55, %v5294_v54  ;;  %v5305_v24 = vor.u32 %v5304_v59, %v5303_v56  ;;  %v5302_v26 = vor.u32 %v5301_v3, %v5300_v60  ;;  %v9231_v28 = vmov 1966171168  }
 0x102   : > { %8559 = vmatpush3.bf16.msra.mxu1 %v8855_v62  ;;  %8534 = vmatprep.subr.bf16.mxu0 %v8858_v13  ;;  %v5308_v25 = vor.u32 %v5307_v18, %v5306_v12  ;;  %v719_v29 = vunpack.c.l.s4 %v9231_v28  ;;  %vm692_vm1 = vcmask 261120   ;;  %vm1688_vm2 = vcmask 523264  }
 0x103   : > { %8560 = vmatprep.subr.bf16.mxu1 %v11451_v0  ;;  %vm4286_vm3 = vcmask 785408   ;;  %vm4929_vm4 = vcmask 1045504   ;;  %vm3351_vm5 = vcmask 1046528   ;;  %vm5058_vm6 = vcmask 1041409  }
 0x104   : > { %3477 = vrot.lane.b32.xlu1 %v3466_v27, %s9228_s13  ;;  %682 = vrot.lane.b32.xlu0 %v647_v43, %s9227_s15  ;;  %v5311_v27 = vor.u32 %v5310_v11, %v5309_v4  ;;  %v720_v31 = vunpack.c.0.s8 %v719_v29  ;;  %vm5061_vm7 = vcmask 1042434   ;;  %vm7739_vm8 = vcmask 1044480  }
 0x105   : > { %8535 = vmatpush3.bf16.msra.mxu0 %v8858_v13  ;;  %vm5064_vm9 = vcmask 1043459   ;;  %vm5067_vm10 = vcmask 1044484   ;;  %vm5070_vm11 = vcmask 1045509   ;;  %vm5073_vm12 = vcmask 1046534  }
 0x106   : > { %8561 = vmatpush3.bf16.msra.mxu1 %v8857_v7  ;;  %8592 = vmatprep.subr.bf16.mxu0 %v11451_v0  ;;  %vm5076_vm13 = vcmask 1047559  }
 0x107   : > { %8562 = vmatprep.subr.bf16.mxu1 %v11451_v0 }
 0x108   : > { %3479 = vrot.lane.b32.xlu1 %v3467_v30, %s9228_s13  ;;  %684 = vrot.lane.b32.xlu0 %v654_v58, %s9227_s15  ;;  %v721_v30 = vlaneseq }
 0x10a   : > { %8563 = vmatpush3.bf16.msra.mxu1 %v8859_v14  ;;  %v9705_v32 = vshrl.u32 %v721_v30, 7 }
 0x10b   : > { %8632 = vmatprep.subr.bf16.mxu1 %v11451_v0 }
 0x10c   : > { %3481 = vrot.lane.b32.xlu1 %v3468_v38, %s9228_s13  ;;  %686 = vrot.lane.b32.xlu0 %v661_v63, %s9227_s15  ;;  %11479 = vst [vmem:[#allocation23_spill] sm:$0xff] %v9705_v32  ;;  %v9710_v36 = vsub.s32 %v720_v31, %v9705_v32 }
 0x110   : > { %3483 = vrot.lane.b32.xlu1 %v3469_v40, %s9228_s13  ;;  %688 = vrot.lane.b32.xlu0 %v668_v8, %s9227_s15 }
 0x114   : > { %3485 = vrot.lane.b32.xlu1 %v3470_v45, %s9228_s13  ;;  %690 = vrot.lane.b32.xlu0 %v675_v10, %s9227_s15 }
 0x118   : > { %5314 = vrot.lane.b32.xlu1 %v5293_v16, %s9230_s24  ;;  %5312 = vrot.lane.b32.xlu0 %v5290_v19, %s9230_s24 }
 0x11c   : > { %5318 = vrot.lane.b32.xlu1 %v5299_v20, %s9230_s24  ;;  %5316 = vrot.lane.b32.xlu0 %v5296_v22, %s9230_s24 }
 0x120   : > { %5322 = vrot.lane.b32.xlu1 %v5305_v24, %s9230_s24  ;;  %5320 = vrot.lane.b32.xlu0 %v5302_v26, %s9230_s24 }
 0x124   : > { %5326 = vrot.lane.b32.xlu1 %v5311_v27, %s9230_s24  ;;  %5324 = vrot.lane.b32.xlu0 %v5308_v25, %s9230_s24  ;;  %s11494_s24 = sld [smem:[#allocation29_spill]] }
 0x12a   : > { %s11387_s2 = scalar_lea.hbm %s11494_s24, %s8447_s23 }
 0x16a   : > { %v677_v33 = vpop.permute.xlu0 %676  ;;  %v679_v34 = vpop.permute.xlu1 %678 }
 0x16b   : > { %v694_v35 = vsel %vm692_vm1, %v9626_v2, %v677_v33  ;;  %v696_v37 = vsel %vm692_vm1, %v9623_v1, %v679_v34 }
 0x16c   : > { %v717_v38 = vcombine.high %v694_v35, %v694_v35  ;;  %v766_v40 = vcombine.high %v696_v37, %v696_v37  ;;  %v773_v41 = vrot.slane %v696_v37, %v9710_v36  ;;  %v724_v1 = vrot.slane %v694_v35, %v9710_v36 }
 0x16e   : > { %v3472_v39 = vpop.permute.xlu0 %3471  ;;  %v731_v42 = vrot.slane %v717_v38, %v9710_v36  ;;  %v780_v44 = vrot.slane %v766_v40, %v9710_v36  ;;  %v781_v2 = vcombine.high %v773_v41, %v773_v41  ;;  %v789_v46 = vrot.slane %v773_v41, %v9710_v36  ;;  %v3474_v52 = vpop.permute.xlu1 %3473 }
 0x16f   : > { %v9717_v43 = vsel %vm1688_vm2, %v694_v35, %v3472_v39  ;;  %v732_v55 = vcombine.high %v724_v1, %v724_v1  ;;  %v740_v62 = vrot.slane %v724_v1, %v9710_v36  ;;  %v9735_v63 = vsel %vm1688_vm2, %v696_v37, %v3474_v52 }
 0x170   : > { %v3511_v45 = vcombine.high %v9717_v43, %v9717_v43  ;;  %v733_v47 = vcombine.high %v731_v42, %v731_v42  ;;  %v3518_v48 = vrot.slane %v9717_v43, %v9710_v36  ;;  %v782_v49 = vcombine.high %v780_v44, %v780_v44 }
 0x171   : > { %v803_v50 = vrot.slane %v781_v2, %v9710_v36  ;;  %v796_v51 = vrot.slane %v780_v44, %v9710_v36  ;;  %v811_v54 = vcombine.high %v789_v46, %v789_v46  ;;  %v1125_v58 = vunpack.i.h.s16 %v789_v46 }
 0x172   : > { %v3525_v53 = vrot.slane %v3511_v45, %v9710_v36  ;;  %v9730_v56 = vrot.slane %v733_v47, %v9710_v36  ;;  %v681_v57 = vpop.permute.xlu0 %680  ;;  %v3526_v59 = vcombine.high %v3518_v48, %v3518_v48  ;;  %v810_v60 = vrot.slane %v782_v49, %v9710_v36 }
 0x173   : > { %v813_v61 = vcombine.high %v803_v50, %v803_v50  ;;  %v812_v3 = vcombine.high %v796_v51, %v796_v51  ;;  %v747_v4 = vrot.slane %v731_v42, %v9710_v36  ;;  %v9740_v7 = vsel %vm692_vm1, %v9631_v5, %v681_v57 }
 0x174   : > { %v3527_v6 = vcombine.high %v3525_v53, %v3525_v53  ;;  %v1127_v8 = vunpack.i.h.s16 %v803_v50  ;;  %v1129_v10 = vunpack.i.h.s16 %v811_v54  ;;  %v754_v11 = vrot.slane %v732_v55, %v9710_v36 }
 0x175   : > { %v765_v12 = vcombine.high %v9730_v56, %v9730_v56  ;;  %v1133_v13 = vunpack.i.h.s16 %v796_v51  ;;  %v9745_v14 = vpack.i.b16 %v803_v50, %v1125_v58  ;;  %v3541_v16 = vrot.slane %v3525_v53, %v9710_v36 }
 0x176   : > { %v3548_v18 = vrot.slane %v3526_v59, %v9710_v36  ;;  %v1131_v19 = vunpack.i.h.s16 %v813_v61  ;;  %v1135_v20 = vunpack.i.h.s16 %v810_v60  ;;  %v9751_v5 = vrot.slane %v9735_v63, %v9710_v36  ;;  %v683_v38 = vpop.permute.xlu0 %682 }
 0x177   : > { %v815_v22 = vcombine.high %v9740_v7, %v9740_v7  ;;  %v3534_v24 = vrot.slane %v3518_v48, %v9710_v36  ;;  %v3555_v26 = vrot.slane %v3527_v6, %v9710_v36  ;;  %v814_v27 = vcombine.high %v810_v60, %v810_v60 }
 0x178   : > { %v1137_v25 = vunpack.i.h.s16 %v812_v3  ;;  %v8284_v28 = vpack.i.b16 %v811_v54, %v1127_v8  ;;  %v763_v29 = vcombine.high %v747_v4, %v747_v4  ;;  %v822_v30 = vrot.slane %v9740_v7, %v9710_v36 }
 0x179   : > { %v8282_v31 = vpack.i.b16 %v789_v46, %v765_v12  ;;  %v8285_v33 = vpack.i.b16 %v813_v61, %v1129_v10  ;;  %v3557_v34 = vcombine.high %v3541_v16, %v3541_v16  ;;  %v3907_v35 = vcombine.low %v3534_v24, %v3548_v18 }
 0x17a   : > { %v8343_v37 = vcombine.high %v3534_v24, %v3548_v18  ;;  %v8286_v39 = vpack.i.b16 %v796_v51, %v1131_v19  ;;  %v8287_v40 = vpack.i.b16 %v810_v60, %v1133_v13  ;;  %v1297_v41 = vcombine.low %v740_v62, %v754_v11 }
 0x17b   : > { %v829_v42 = vrot.slane %v815_v22, %v9710_v36  ;;  %v8314_v44 = vcombine.high %v740_v62, %v754_v11  ;;  %v9762_v2 = vrot.slane %v9751_v5, %v9710_v36  ;;  %v3909_v45 = vcombine.low %v3541_v16, %v3555_v26 }
 0x17c   : > { %v8289_v1 = vpack.i.b16 %v814_v27, %v1137_v25  ;;  %v9765_v47 = vrot.slane %v822_v30, %v9710_v36  ;;  %v9769_v46 = vsel %vm692_vm1, %v9636_v9, %v683_v38  ;;  %v1299_v48 = vcombine.low %v747_v4, %v9730_v56  ;;  %v3476_v56 = vpop.permute.xlu1 %3475 }
 0x17d   : > { %v1300_v49 = vcombine.low %v763_v29, %v8282_v31  ;;  %v8288_v50 = vpack.i.b16 %v812_v3, %v1135_v20  ;;  %v3910_v51 = vcombine.low %v3557_v34, %v9762_v2  ;;  %v3917_v52 = vrot.slane %v3907_v35, %v9710_v36 }
 0x17e   : > { %v3924_v53 = vrot.slane %v8343_v37, %v9710_v36  ;;  %v1346_v54 = vcombine.low %v9745_v14, %v8284_v28  ;;  %v3559_v55 = vcombine.high %v9735_v63, %v9735_v63  ;;  %v831_v57 = vcombine.high %v829_v42, %v829_v42  ;;  %v8860_v37 = vld [vmem:[#allocation11] sm:$0xff]  }
 0x17f   : > { %v1307_v58 = vrot.slane %v1297_v41, %v9710_v36  ;;  %v3931_v9 = vrot.slane %v3909_v45, %v9710_v36  ;;  %v830_v59 = vcombine.high %v822_v30, %v822_v30  ;;  %v871_v60 = vrot.slane %v9769_v46, %v9710_v36 }
 0x180   : > { %v1314_v61 = vrot.slane %v8314_v44, %v9710_v36  ;;  %v1347_v62 = vcombine.low %v8285_v33, %v8286_v39  ;;  %v1349_v3 = vcombine.low %v8289_v1, %v9765_v47  ;;  %v1321_v4 = vrot.slane %v1299_v48, %v9710_v36 }
 0x181   : > { %v1328_v6 = vrot.slane %v1300_v49, %v9710_v36  ;;  %v3574_v8 = vcombine.high %v9751_v5, %v9751_v5  ;;  %v3938_v11 = vrot.slane %v3910_v51, %v9710_v36  ;;  %v3939_v12 = vcombine.low %v3917_v52, %v3924_v53 }
 0x182   : > { %v1329_v10 = vcombine.low %v1307_v58, %v1314_v61  ;;  %v845_v13 = vrot.slane %v829_v42, %v9710_v36  ;;  %v859_v14 = vrot.slane %v831_v57, %v9710_v36  ;;  %v9793_v16 = vsel %vm1688_vm2, %v9740_v7, %v3476_v56 }
 0x183   : > { %v1330_v18 = vcombine.low %v1321_v4, %v1328_v6  ;;  %v852_v19 = vrot.slane %v830_v59, %v9710_v36  ;;  %v879_v20 = vcombine.high %v871_v60, %v871_v60  ;;  %v9797_v22 = vrot.slane %v871_v60, %v9710_v36 }
 0x184   : > { %v3940_v5 = vcombine.low %v3931_v9, %v3938_v11  ;;  %v1377_v24 = vrot.slane %v1349_v3, %v9710_v36  ;;  %v1337_v26 = vrot.slane %v1329_v10, %v9710_v36  ;;  %v1348_v25 = vcombine.low %v8287_v40, %v8288_v50  ;;  %v8862_v10 = vld [vmem:[#allocation11 + $0x10] sm:$0xff]  }
 0x185   : > { %v1344_v27 = vrot.slane %v1330_v18, %v9710_v36  ;;  %v3947_v28 = vrot.slane %v3939_v12, %v9710_v36  ;;  %v1356_v29 = vrot.slane %v1346_v54, %v9710_v36  ;;  %v1363_v30 = vrot.slane %v1347_v62, %v9710_v36 }
 0x186   : > { %v3954_v7 = vrot.slane %v3940_v5, %v9710_v36  ;;  %v863_v31 = vcombine.high %v859_v14, %v859_v14  ;;  %v3614_v33 = vrot.slane %v9793_v16, %v9710_v36  ;;  %v1370_v35 = vrot.slane %v1348_v25, %v9710_v36 }
 0x187   : > { %v1345_v34 = vcombine.low %v1337_v26, %v1344_v27  ;;  %v9810_v38 = vrot.slane %v879_v20, %v9710_v36  ;;  %v1155_v39 = vunpack.i.h.s16 %v9797_v22  ;;  %v1378_v41 = vcombine.low %v1356_v29, %v1363_v30  ;;  %v8863_v27 = vld [vmem:[#allocation11 + $0x18] sm:$0xff]  }
 0x188   : > { %v3955_v40 = vcombine.low %v3947_v28, %v3954_v7  ;;  %v3573_v42 = vrot.slane %v3559_v55, %v9710_v36  ;;  %v1379_v44 = vcombine.low %v1370_v35, %v1377_v24  ;;  %v3596_v45 = vrot.slane %v3574_v8, %v9710_v36  ;;  %v685_v24 = vpop.permute.xlu0 %684 }
 0x189   : > { %8536 = vmatprep.mubr.msk.bf16.mxu0 %vm1688_vm2, %v1345_v34  ;;  %v860_v1 = vcombine.high %v9765_v47, %v9765_v47  ;;  %v1386_v48 = vrot.slane %v1378_v41, %v9710_v36  ;;  %v862_v49 = vcombine.high %v852_v19, %v852_v19  ;;  %v3622_v50 = vcombine.high %v3614_v33, %v3614_v33  ;;  %v8861_v47 = vld [vmem:[#allocation11 + $0x8] sm:$0xff]   ;;  %v9863_v41 = vpop.permute.xlu1 %3477 }
 0x18a   : > { %8565 = vmatmul.mubr.msk.bf16.vlgmr.msra.gmra.mrb[0].mxu1 %vm4286_vm3, %v3955_v40  ;;  %v864_v51 = vcombine.high %v9769_v46, %v9769_v46  ;;  %v1393_v52 = vrot.slane %v1379_v44, %v9710_v36  ;;  %v861_v53 = vcombine.high %v845_v13, %v845_v13  ;;  %v8290_v54 = vpack.i.b16 %v9797_v22, %v863_v31  ;;  %v8864_v40 = vld [vmem:[#allocation11 + $0x20] sm:$0xff]  }
 0x18b   : > { %8633 = vmatpush3.bf16.msra.mxu1 %v8860_v37  ;;  %v8291_v55 = vpack.i.b16 %v9810_v38, %v1155_v39  ;;  %8568 = vmatprep.mubr.msk.bf16.mxu1 %vm9229_vm0, %v11451_v0  ;;  %v3575_v57 = vcombine.high %v3573_v42, %v3573_v42  ;;  %v3589_v58 = vrot.slane %v3573_v42, %v9710_v36 }
 0x18c   : > { %v1394_v9 = vcombine.low %v1386_v48, %v1393_v52  ;;  %8634 = vmatprep.subr.bf16.mxu1 %v11451_v0  ;;  %v3604_v56 = vcombine.high %v9762_v2, %v9762_v2  ;;  %v3606_v59 = vcombine.high %v3596_v45, %v3596_v45  ;;  %v1395_v60 = vcombine.low %v852_v19, %v860_v1  ;;  %v687_v52 = vpop.permute.xlu0 %686 }
 0x18d   : > { %v1396_v61 = vcombine.low %v862_v49, %v845_v13  ;;  %v9832_v62 = vrot.slane %v3614_v33, %v9710_v36  ;;  %v9835_v3 = vrot.slane %v3622_v50, %v9710_v36  ;;  %v878_v4 = vrot.slane %v864_v51, %v9710_v36 }
 0x18e   : > { %8537 = vmatmul.mubr.msk.bf16.vlgmr.msra.gmra.mrb[0].mxu0 %vm1688_vm2, %v1394_v9  ;;  %v1397_v6 = vcombine.low %v859_v14, %v861_v53  ;;  %v1398_v8 = vcombine.low %v8290_v54, %v8291_v55  ;;  %v3603_v11 = vrot.slane %v3575_v57, %v9710_v36  ;;  %v3605_v2 = vcombine.high %v3589_v58, %v3589_v58  ;;  %v8865_v9 = vld [vmem:[#allocation11 + $0x28] sm:$0xff]  }
 0x18f   : > { %8635 = vmatpush3.bf16.msra.mxu1 %v8861_v47  ;;  %v3956_v12 = vcombine.low %v3596_v45, %v3604_v56  ;;  %v3957_v13 = vcombine.low %v3606_v59, %v3589_v58  ;;  %v1405_v18 = vrot.slane %v1395_v60, %v9710_v36  ;;  %v1412_v19 = vrot.slane %v1396_v61, %v9710_v36 }
 0x190   : > { %8636 = vmatprep.subr.bf16.mxu1 %v11451_v0  ;;  %v3959_v20 = vcombine.low %v9832_v62, %v9835_v3  ;;  %v880_v5 = vcombine.high %v878_v4, %v878_v4  ;;  %v1419_v14 = vrot.slane %v1397_v6, %v9710_v36  ;;  %v1426_v26 = vrot.slane %v1398_v8, %v9710_v36 }
 0x191   : > { %v3958_v25 = vcombine.low %v3603_v11, %v3605_v2  ;;  %v894_v28 = vrot.slane %v878_v4, %v9710_v36  ;;  %v9850_v7 = vsel %vm692_vm1, %v9641_v15, %v685_v24  ;;  %v3966_v29 = vrot.slane %v3956_v12, %v9710_v36 }
 0x192   : > { %v3973_v30 = vrot.slane %v3957_v13, %v9710_v36  ;;  %v3987_v31 = vrot.slane %v3959_v20, %v9710_v36  ;;  %v908_v33 = vrot.slane %v880_v5, %v9710_v36  ;;  %v1427_v34 = vcombine.low %v1405_v18, %v1412_v19  ;;  %v8866_v19 = vld [vmem:[#allocation11 + $0x30] sm:$0xff]  }
 0x193   : > { %8637 = vmatpush3.bf16.msra.mxu1 %v8862_v10  ;;  %v909_v35 = vcombine.high %v9797_v22, %v9797_v22  ;;  %v911_v37 = vcombine.high %v9810_v38, %v9810_v38  ;;  %v920_v15 = vrot.slane %v9850_v7, %v9710_v36  ;;  %v1428_v39 = vcombine.low %v1419_v14, %v1426_v26  ;;  %v9883_v10 = vpop.permute.xlu1 %3479 }
 0x194   : > { %8638 = vmatprep.subr.bf16.mxu1 %v11451_v0  ;;  %v910_v42 = vcombine.high %v894_v28, %v894_v28  ;;  %v1435_v44 = vrot.slane %v1427_v34, %v9710_v36  ;;  %v3980_v45 = vrot.slane %v3958_v25, %v9710_v36  ;;  %v3607_v22 = vcombine.high %v9793_v16, %v9793_v16 }
 0x195   : > { %v1157_v1 = vunpack.i.h.s16 %v9810_v38  ;;  %v913_v48 = vcombine.high %v9850_v7, %v9850_v7  ;;  %v1442_v49 = vrot.slane %v1428_v39, %v9710_v36  ;;  %v912_v50 = vcombine.high %v908_v33, %v908_v33  ;;  %v689_v39 = vpop.permute.xlu0 %688 }
 0x196   : > { %v1163_v51 = vunpack.i.h.s16 %v894_v28  ;;  %v3988_v53 = vcombine.low %v3966_v29, %v3973_v30  ;;  %v3989_v54 = vcombine.low %v3980_v45, %v3987_v31  ;;  %v1159_v55 = vunpack.i.h.s16 %v909_v35  ;;  %v8867_v29 = vld [vmem:[#allocation11 + $0x38] sm:$0xff]  }
 0x197   : > { %8639 = vmatpush3.bf16.msra.mxu1 %v8863_v27  ;;  %v1161_v47 = vunpack.i.h.s16 %v911_v37  ;;  %v928_v57 = vcombine.high %v920_v15, %v920_v15  ;;  %v1443_v58 = vcombine.low %v1435_v44, %v1442_v49  ;;  %v1165_v56 = vunpack.i.h.s16 %v908_v33  ;;  %v9896_v31 = vpop.permute.xlu1 %3481 }
 0x198   : > { %8640 = vmatprep.subr.bf16.mxu1 %v11451_v0  ;;  %v1167_v59 = vunpack.i.h.s16 %v910_v42  ;;  %v3996_v38 = vrot.slane %v3988_v53, %v9710_v36  ;;  %v4003_v60 = vrot.slane %v3989_v54, %v9710_v36  ;;  %v9879_v61 = vsel %vm692_vm1, %v9646_v17, %v687_v52 }
 0x199   : > { %8540 = vmatprep.mubr.msk.bf16.mxu0 %vm1688_vm2, %v1443_v58  ;;  %v3621_v4 = vrot.slane %v3607_v22, %v9710_v36  ;;  %v8292_v6 = vpack.i.b16 %v909_v35, %v1157_v1  ;;  %v8295_v8 = vpack.i.b16 %v908_v33, %v1163_v51  ;;  %v8293_v2 = vpack.i.b16 %v911_v37, %v1159_v55 }
 0x19a   : > { %v4004_v11 = vcombine.low %v3996_v38, %v4003_v60  ;;  %v8294_v12 = vpack.i.b16 %v894_v28, %v1161_v47  ;;  %v936_v13 = vrot.slane %v920_v15, %v9710_v36  ;;  %v950_v18 = vrot.slane %v928_v57, %v9710_v36 }
 0x19b   : > { %8641 = vmatpush3.bf16.msra.mxu1 %v8864_v40  ;;  %v8296_v20 = vpack.i.b16 %v910_v42, %v1165_v56  ;;  %v8297_v17 = vpack.i.b16 %v912_v50, %v1167_v59  ;;  %v927_v5 = vrot.slane %v913_v48, %v9710_v36  ;;  %v962_v24 = vcombine.high %v9879_v61, %v9879_v61  ;;  %v9925_v54 = vpop.permute.xlu1 %3483  ;;  %v691_v59 = vpop.permute.xlu0 %690 }
 0x19c   : > { %8642 = vmatprep.subr.bf16.mxu1 %v11451_v0  ;;  %8569 = vmatmul.mubr.msk.bf16.gmra.mrb[4].mxu1 %vm4286_vm3, %v4004_v11  ;;  %v3623_v14 = vcombine.high %v3621_v4, %v3621_v4  ;;  %v969_v26 = vrot.slane %v9879_v61, %v9710_v36  ;;  %v1444_v27 = vcombine.low %v8292_v6, %v8293_v2 }
 0x19d   : > { %8572 = vmatprep.mubr.msk.bf16.mxu1 %vm9229_vm0, %v11451_v0  ;;  %v1445_v25 = vcombine.low %v8294_v12, %v8295_v8  ;;  %v1447_v28 = vcombine.low %v936_v13, %v950_v18  ;;  %v929_v30 = vcombine.high %v927_v5, %v927_v5  ;;  %v976_v33 = vrot.slane %v962_v24, %v9710_v36 }
 0x19e   : > { %v1446_v34 = vcombine.low %v8296_v20, %v8297_v17  ;;  %v9901_v35 = vrot.slane %v3621_v4, %v9710_v36  ;;  %v9904_v37 = vrot.slane %v3623_v14, %v9710_v36  ;;  %v977_v15 = vcombine.high %v969_v26, %v969_v26 }
 0x19f   : > { %8643 = vmatpush3.bf16.msra.mxu1 %v8865_v9  ;;  %v8344_v40 = vcombine.high %v9832_v62, %v9835_v3  ;;  %v1475_v42 = vrot.slane %v1447_v28, %v9710_v36  ;;  %v1454_v44 = vrot.slane %v1444_v27, %v9710_v36  ;;  %v1461_v45 = vrot.slane %v1445_v25, %v9710_v36  ;;  %v9957_v24 = vpop.permute.xlu1 %3485 }
 0x1a0   : > { %8644 = vmatprep.subr.bf16.mxu1 %v11451_v0  ;;  %v957_v22 = vrot.slane %v929_v30, %v9710_v36  ;;  %v978_v1 = vcombine.high %v976_v33, %v976_v33  ;;  %v9913_v48 = vrot.slane %v976_v33, %v9710_v36  ;;  %v1468_v49 = vrot.slane %v1446_v34, %v9710_v36 }
 0x1a1   : > { %v943_v50 = vrot.slane %v927_v5, %v9710_v36  ;;  %v985_v62 = vrot.slane %v969_v26, %v9710_v36  ;;  %v9922_v3 = vsel %vm1688_vm2, %v9769_v46, %v9863_v41  ;;  %v1476_v51 = vcombine.low %v1454_v44, %v1461_v45 }
 0x1a2   : > { %v8315_v52 = vcombine.high %v936_v13, %v950_v18  ;;  %v999_v53 = vrot.slane %v977_v15, %v9710_v36  ;;  %v9929_v55 = vsel %vm692_vm1, %v9652_v21, %v689_v39  ;;  %v4006_v47 = vcombine.low %v9901_v35, %v9904_v37 }
 0x1a3   : > { %8645 = vmatpush3.bf16.msra.mxu1 %v8866_v19  ;;  %v9934_v57 = vrot.slane %v8344_v40, %v9710_v36  ;;  %v1494_v58 = vcombine.low %v943_v50, %v957_v22  ;;  %v1477_v9 = vcombine.low %v1468_v49, %v1475_v42  ;;  %v961_v46 = vcombine.high %v957_v22, %v957_v22 }
 0x1a4   : > { %8646 = vmatprep.subr.bf16.mxu1 %v11451_v0  ;;  %v1006_v41 = vrot.slane %v978_v1, %v9710_v36  ;;  %v1008_v56 = vcombine.high %v9913_v48, %v9913_v48  ;;  %v3662_v38 = vrot.slane %v9922_v3, %v9710_v36  ;;  %v1007_v21 = vcombine.high %v985_v62, %v985_v62 }
 0x1a5   : > { %v1011_v60 = vcombine.high %v9929_v55, %v9929_v55  ;;  %v1484_v4 = vrot.slane %v1476_v51, %v9710_v36  ;;  %v1491_v6 = vrot.slane %v1477_v9, %v9710_v36  ;;  %v959_v8 = vcombine.high %v943_v50, %v943_v50  ;;  %v5315_v9 = vpop.permute.xlu1 %5314 }
 0x1a6   : > { %v9946_v11 = vrot.slane %v8315_v52, %v9710_v36  ;;  %v1009_v2 = vcombine.high %v999_v53, %v999_v53  ;;  %v1018_v12 = vrot.slane %v9929_v55, %v9710_v36  ;;  %v9951_v13 = vrot.slane %v1494_v58, %v9710_v36 }
 0x1a7   : > { %8647 = vmatpush3.bf16.msra.mxu1 %v8867_v29  ;;  %v1185_v18 = vunpack.i.h.s16 %v985_v62  ;;  %v9955_v19 = vsel %vm692_vm1, %v9656_v23, %v691_v59  ;;  %v1492_v20 = vcombine.low %v1484_v4, %v1491_v6  ;;  %v1010_v17 = vcombine.high %v1006_v41, %v1006_v41 }
 0x1a8   : > { %8696 = vmatprep.subr.bf16.mxu1 %v11451_v0  ;;  %v1197_v5 = vunpack.i.h.s16 %v1008_v56  ;;  %v3670_v14 = vcombine.high %v3662_v38, %v3662_v38  ;;  %v3678_v26 = vrot.slane %v3662_v38, %v9710_v36  ;;  %v1187_v27 = vunpack.i.h.s16 %v999_v53 }
 0x1a9   : > { %v1189_v25 = vunpack.i.h.s16 %v1007_v21  ;;  %v8298_v28 = vpack.i.b16 %v985_v62, %v961_v46  ;;  %v1025_v29 = vrot.slane %v1011_v60, %v9710_v36  ;;  %8541 = vmatmul.mubr.msk.bf16.gmra.mrb[4].mxu0 %vm1688_vm2, %v1492_v20  ;;  %v1191_v30 = vunpack.i.h.s16 %v1009_v2 }
 0x1aa   : > { %v1026_v33 = vcombine.high %v1018_v12, %v1018_v12  ;;  %v1067_v23 = vrot.slane %v9955_v19, %v9710_v36  ;;  %v3653_v34 = vcombine.high %v9901_v35, %v9901_v35  ;;  %v1193_v15 = vunpack.i.h.s16 %v9913_v48 }
 0x1ab   : > { %v9967_v39 = vpack.i.b16 %v999_v53, %v1185_v18  ;;  %v1034_v40 = vrot.slane %v1018_v12, %v9710_v36  ;;  %v1060_v42 = vcombine.high %v9955_v19, %v9955_v19  ;;  %v1195_v44 = vunpack.i.h.s16 %v1006_v41 }
 0x1ac   : > { %v8305_v45 = vpack.i.b16 %v1010_v17, %v1197_v5  ;;  %v9973_v22 = vrot.slane %v3670_v14, %v9710_v36  ;;  %v3700_v1 = vcombine.high %v3678_v26, %v3678_v26  ;;  %v9975_v49 = vpack.i.b16 %v1007_v21, %v1187_v27 }
 0x1ad   : > { %v9977_v50 = vpack.i.b16 %v1009_v2, %v1189_v25  ;;  %v1027_v62 = vcombine.high %v1025_v29, %v1025_v29  ;;  %v1041_v51 = vrot.slane %v1025_v29, %v9710_v36  ;;  %v9981_v52 = vpack.i.b16 %v9913_v48, %v1191_v30 }
 0x1ae   : > { %v1048_v53 = vrot.slane %v1026_v33, %v9710_v36  ;;  %v1075_v58 = vcombine.high %v1067_v23, %v1067_v23  ;;  %v4007_v46 = vcombine.low %v3653_v34, %v3678_v26  ;;  %v9984_v59 = vcombine.low %v959_v8, %v8298_v28 }
 0x1af   : > { %v1056_v38 = vcombine.high %v1034_v40, %v1034_v40  ;;  %v1074_v60 = vrot.slane %v1060_v42, %v9710_v36  ;;  %v1083_v21 = vrot.slane %v1067_v23, %v9710_v36  ;;  %v9988_v4 = vpack.i.b16 %v1006_v41, %v1193_v15 }
 0x1b0   : > { %v1058_v6 = vcombine.high %v1048_v53, %v1048_v53  ;;  %v1544_v2 = vcombine.low %v8305_v45, %v1034_v40  ;;  %v4008_v12 = vcombine.low %v9973_v22, %v3700_v1  ;;  %v9991_v48 = vpack.i.b16 %v1008_v56, %v1195_v44 }
 0x1b1   : > { %v1055_v18 = vrot.slane %v1027_v62, %v9710_v36  ;;  %v1057_v20 = vcombine.high %v1041_v51, %v1041_v51  ;;  %v5331_v8 = vsel %vm4286_vm3, %v9735_v63, %v5315_v9  ;;  %v1496_v17 = vcombine.low %v9967_v39, %v9975_v49 }
 0x1b2   : > { %v1542_v5 = vcombine.low %v9977_v50, %v9981_v52  ;;  %v1097_v41 = vrot.slane %v1075_v58, %v9710_v36  ;;  %v4029_v14 = vrot.slane %v4007_v46, %v9710_v36  ;;  %v10002_v26 = vcombine.low %v1048_v53, %v1056_v38 }
 0x1b3   : > { %v1076_v56 = vcombine.high %v1074_v60, %v1074_v60  ;;  %v1105_v27 = vcombine.high %v1083_v21, %v1083_v21  ;;  %v4022_v25 = vrot.slane %v4006_v47, %v9710_v36  ;;  %v10009_v63 = vrot.slane %v1544_v2, %v9710_v36 }
 0x1b4   : > { %v10011_v28 = vcombine.low %v1058_v6, %v1041_v51  ;;  %v5400_v29 = vcombine.high %v5331_v8, %v5331_v8  ;;  %v4036_v30 = vrot.slane %v4008_v12, %v9710_v36  ;;  %v1059_v33 = vcombine.high %v1055_v18, %v1055_v18 }
 0x1b5   : > { %v10014_v23 = vcombine.low %v1055_v18, %v1057_v20  ;;  %v1090_v34 = vrot.slane %v1074_v60, %v9710_v36  ;;  %v1215_v15 = vunpack.i.h.s16 %v1083_v21  ;;  %v1107_v39 = vcombine.high %v1097_v41, %v1097_v41  ;;  %v5313_v20 = vpop.permute.xlu0 %5312 }
 0x1b6   : > { %v5407_v40 = vrot.slane %v5331_v8, %v9710_v36  ;;  %v4037_v35 = vcombine.low %v9934_v57, %v4022_v25  ;;  %v4038_v37 = vcombine.low %v4029_v14, %v4036_v30  ;;  %v1573_v47 = vrot.slane %v10002_v26, %v9710_v36 }
 0x1b7   : > { %v10022_v42 = vrot.slane %v1076_v56, %v9710_v36  ;;  %v1217_v44 = vunpack.i.h.s16 %v1097_v41  ;;  %v1219_v45 = vunpack.i.h.s16 %v1105_v27  ;;  %v5414_v49 = vrot.slane %v5400_v29, %v9710_v36 }
 0x1b8   : > { %v4045_v62 = vrot.slane %v4037_v35, %v9710_v36  ;;  %v4052_v51 = vrot.slane %v4038_v37, %v9710_v36  ;;  %v10029_v53 = vcombine.high %v1090_v34, %v1090_v34  ;;  %v1223_v57 = vunpack.i.h.s16 %v1090_v34 }
 0x1b9   : > { %v10031_v58 = vpack.i.b16 %v1083_v21, %v1059_v33  ;;  %v10033_v9 = vpack.i.b16 %v1097_v41, %v1215_v15  ;;  %v1221_v46 = vunpack.i.h.s16 %v1107_v39  ;;  %v5415_v38 = vcombine.high %v5407_v40, %v5407_v40 }
 0x1ba   : > { %v4053_v60 = vcombine.low %v4045_v62, %v4052_v51  ;;  %v10038_v6 = vsel %vm1688_vm2, %v9850_v7, %v9883_v10  ;;  %v1225_v2 = vunpack.i.h.s16 %v10022_v42  ;;  %v10041_v12 = vpack.i.b16 %v1105_v27, %v1217_v44 }
 0x1bb   : > { %v10043_v18 = vpack.i.b16 %v1107_v39, %v1219_v45  ;;  %v3655_v21 = vcombine.high %v9922_v3, %v9922_v3  ;;  %v5416_v41 = vcombine.high %v5414_v49, %v5414_v49  ;;  %v1517_v7 = vrot.slane %v9984_v59, %v9710_v36 }
 0x1bc   : > { %8573 = vmatmul.mubr.msk.bf16.gmra.mrb[8].mxu1 %vm4286_vm3, %v4053_v60  ;;  %v1524_v10 = vrot.slane %v1496_v17, %v9710_v36  ;;  %v10055_v56 = vpack.i.b16 %v10022_v42, %v1223_v57  ;;  %v3710_v25 = vrot.slane %v10038_v6, %v9710_v36  ;;  %v10063_v29 = vpack.i.b16 %v1090_v34, %v1221_v46 }
 0x1bd   : > { %8576 = vmatprep.mubr.msk.bf16.mxu1 %vm9229_vm0, %v11451_v0  ;;  %v10066_v59 = vrot.slane %v5407_v40, %v9710_v36  ;;  %v5329_v17 = vsel %vm4286_vm3, %v9717_v43, %v5313_v20  ;;  %v1525_v30 = vcombine.low %v9946_v11, %v9951_v13  ;;  %v10073_v33 = vpack.i.b16 %v10029_v53, %v1225_v2 }
 0x1be   : > { %v10078_v39 = vrot.slane %v5414_v49, %v9710_v36  ;;  %v3669_v34 = vrot.slane %v3655_v21, %v9710_v36  ;;  %v10082_v40 = vrot.slane %v5415_v38, %v9710_v36  ;;  %v10085_v35 = vrot.slane %v5416_v41, %v9710_v36 }
 0x1bf   : > { %v1526_v43 = vcombine.low %v1517_v7, %v1524_v10  ;;  %v1533_v11 = vrot.slane %v1525_v30, %v9710_v36  ;;  %v5352_v13 = vcombine.high %v5329_v17, %v5329_v17  ;;  %v10091_v37 = vsel %vm1688_vm2, %v9879_v61, %v9896_v31 }
 0x1c0   : > { %v3718_v44 = vcombine.high %v3710_v25, %v3710_v25  ;;  %v1543_v45 = vcombine.low %v9988_v4, %v9991_v48  ;;  %v10097_v49 = vcombine.high %v10066_v59, %v10066_v59  ;;  %v5750_v62 = vunpack.i.h.s16 %v10066_v59  ;;  %v5319_v48 = vpop.permute.xlu1 %5318 }
 0x1c1   : > { %v5359_v51 = vrot.slane %v5329_v17, %v9710_v36  ;;  %v1540_v57 = vrot.slane %v1526_v43, %v9710_v36  ;;  %v3671_v46 = vcombine.high %v3669_v34, %v3669_v34  ;;  %v3685_v38 = vrot.slane %v3669_v34, %v9710_v36 }
 0x1c2   : > { %v1552_v61 = vrot.slane %v1542_v5, %v9710_v36  ;;  %v1559_v31 = vrot.slane %v1543_v45, %v9710_v36  ;;  %v3758_v60 = vrot.slane %v10091_v37, %v9710_v36  ;;  %v3703_v2 = vcombine.high %v10038_v6, %v10038_v6 }
 0x1c3   : > { %v1541_v20 = vcombine.low %v1533_v11, %v1540_v57  ;;  %v10115_v21 = vcombine.high %v10082_v40, %v10082_v40  ;;  %v10118_v41 = vrot.slane %v5352_v13, %v9710_v36  ;;  %v3726_v50 = vrot.slane %v3710_v25, %v9710_v36 }
 0x1c4   : > { %v3740_v52 = vrot.slane %v3718_v44, %v9710_v36  ;;  %v10123_v5 = vpack.i.b16 %v10082_v40, %v5750_v62  ;;  %v5367_v7 = vcombine.high %v5359_v51, %v5359_v51  ;;  %v3751_v10 = vcombine.high %v10091_v37, %v10091_v37 }
 0x1c5   : > { %8544 = vmatprep.mubr.msk.bf16.mxu0 %vm1688_vm2, %v1541_v20  ;;  %v1574_v17 = vcombine.low %v1552_v61, %v1559_v31  ;;  %v3699_v30 = vrot.slane %v3671_v46, %v9710_v36  ;;  %v3701_v34 = vcombine.high %v3685_v38, %v3685_v38  ;;  %v3702_v43 = vcombine.high %v9973_v22, %v9973_v22 }
 0x1c6   : > { %v10133_v25 = vsel %vm4286_vm3, %v9922_v3, %v5319_v48  ;;  %v3766_v11 = vcombine.high %v3758_v60, %v3758_v60  ;;  %v3717_v13 = vrot.slane %v3703_v2, %v9710_v36  ;;  %v10139_v44 = vsel %vm1688_vm2, %v9955_v19, %v9957_v24 }
 0x1c7   : > { %v1575_v45 = vcombine.low %v10009_v63, %v1573_v47  ;;  %v10148_v62 = vrot.slane %v5359_v51, %v9710_v36  ;;  %v10152_v3 = vrot.slane %v10118_v41, %v9710_v36  ;;  %v4056_v57 = vcombine.low %v3726_v50, %v3740_v52 }
 0x1c8   : > { %v10155_v46 = vrot.slane %v5367_v7, %v9710_v36  ;;  %v3765_v19 = vrot.slane %v3751_v10, %v9710_v36  ;;  %v8345_v24 = vcombine.high %v3726_v50, %v3740_v52  ;;  %v1582_v26 = vrot.slane %v1574_v17, %v9710_v36 }
 0x1c9   : > { %v4054_v63 = vcombine.low %v3702_v43, %v3685_v38  ;;  %v4055_v47 = vcombine.low %v3699_v30, %v3701_v34  ;;  %v3774_v61 = vrot.slane %v3758_v60, %v9710_v36  ;;  %v3847_v51 = vcombine.high %v10139_v44, %v10139_v44 }
 0x1ca   : > { %v3767_v31 = vcombine.high %v3765_v19, %v3765_v19  ;;  %v3788_v48 = vrot.slane %v3766_v11, %v9710_v36  ;;  %v3719_v2 = vcombine.high %v3717_v13, %v3717_v13  ;;  %v1589_v20 = vrot.slane %v1575_v45, %v9710_v36 }
 0x1cb   : > { %v3733_v7 = vrot.slane %v3717_v13, %v9710_v36  ;;  %v4078_v10 = vrot.slane %v4056_v57, %v9710_v36  ;;  %v3854_v50 = vrot.slane %v10139_v44, %v9710_v36  ;;  %v10171_v38 = vsel %vm1688_vm2, %v9929_v55, %v9925_v54 }
 0x1cc   : > { %v4085_v60 = vrot.slane %v8345_v24, %v9710_v36  ;;  %v1590_v52 = vcombine.low %v1582_v26, %v1589_v20  ;;  %v3799_v17 = vcombine.high %v10171_v38, %v10171_v38  ;;  %v3806_v30 = vrot.slane %v10171_v38, %v9710_v36 }
 0x1cd   : > { %v5398_v34 = vcombine.high %v10152_v3, %v10152_v3  ;;  %v3781_v11 = vrot.slane %v3765_v19, %v9710_v36  ;;  %v3861_v54 = vrot.slane %v3847_v51, %v9710_v36  ;;  %v3795_v55 = vrot.slane %v3767_v31, %v9710_v36 }
 0x1ce   : > { %v3796_v13 = vcombine.high %v3774_v61, %v3774_v61  ;;  %8545 = vmatmul.mubr.msk.bf16.gmra.mrb[8].mxu0 %vm1688_vm2, %v1590_v52  ;;  %v3813_v45 = vrot.slane %v3799_v17, %v9710_v36  ;;  %v4064_v57 = vrot.slane %v4054_v63, %v9710_v36  ;;  %v3862_v26 = vcombine.high %v3854_v50, %v3854_v50 }
 0x1cf   : > { %v3797_v24 = vcombine.high %v3781_v11, %v3781_v11  ;;  %v3814_v20 = vcombine.high %v3806_v30, %v3806_v30  ;;  %v4071_v4 = vrot.slane %v4055_v47, %v9710_v36  ;;  %v3798_v22 = vcombine.high %v3788_v48, %v3788_v48 }
 0x1d0   : > { %v3747_v43 = vrot.slane %v3719_v2, %v9710_v36  ;;  %v3749_v19 = vcombine.high %v3733_v7, %v3733_v7  ;;  %v4087_v0 = vcombine.low %v4078_v10, %v4085_v60  ;;  %v8405_v51 = vcombine.high %v10148_v62, %v10155_v46 }
 0x1d1   : > { %v3863_v31 = vcombine.high %v3861_v54, %v3861_v54  ;;  %v10193_v52 = vrot.slane %v3854_v50, %v9710_v36  ;;  %v3815_v17 = vcombine.high %v3813_v45, %v3813_v45  ;;  %v10196_v63 = vpack.i.b16 %v10066_v59, %v5398_v34 }
 0x1d2   : > { %v4105_v8 = vcombine.low %v3788_v48, %v3796_v13  ;;  %v3877_v14 = vrot.slane %v3861_v54, %v9710_v36  ;;  %v4086_v47 = vcombine.low %v4064_v57, %v4071_v4  ;;  %v10199_v1 = vcombine.low %v3795_v55, %v3797_v24 }
 0x1d3   : > { %v3884_v2 = vrot.slane %v3862_v26, %v9710_v36  ;;  %v3822_v10 = vrot.slane %v3806_v30, %v9710_v36  ;;  %v3836_v60 = vrot.slane %v3814_v20, %v9710_v36  ;;  %v4106_v15 = vcombine.low %v3798_v22, %v3781_v11 }
 0x1d4   : > { %v4103_v27 = vcombine.low %v3733_v7, %v3747_v43  ;;  %v4104_v50 = vcombine.low %v3749_v19, %v3774_v61  ;;  %v4101_v32 = vrot.slane %v4087_v0, %v9710_v36  ;;  %v3891_v59 = vrot.slane %v3863_v31, %v9710_v36 }
 0x1d5   : > { %v3892_v48 = vcombine.high %v10193_v52, %v10193_v52  ;;  %v3829_v4 = vrot.slane %v3813_v45, %v9710_v36  ;;  %v3843_v34 = vrot.slane %v3815_v17, %v9710_v36  ;;  %v3893_v54 = vcombine.high %v3877_v14, %v3877_v14 }
 0x1d6   : > { %v4094_v55 = vrot.slane %v4086_v47, %v9710_v36  ;;  %v1608_v30 = vrot.slane %v10014_v23, %v9710_v36  ;;  %v11480_v22 = vcombine.low %v10031_v58, %v10033_v9  ;;  %v3894_v61 = vcombine.high %v3884_v2, %v3884_v2 }
 0x1d7   : > { %v4153_v7 = vcombine.low %v3822_v10, %v3836_v60  ;;  %v8346_v43 = vcombine.high %v3822_v10, %v3836_v60  ;;  %v11481_v11 = vcombine.low %v10041_v12, %v10043_v18  ;;  %v11482_v57 = vrot.slane %v10011_v28, %v9710_v36 }
 0x1d8   : > { %v1615_v0 = vrot.slane %v11480_v22, %v9710_v36  ;;  %v4102_v45 = vcombine.low %v4094_v55, %v4101_v32  ;;  %v11483_v23 = vunpack.i.h.s16 %v10029_v53  ;;  %v11484_v26 = vcombine.high %v10022_v42, %v10022_v42 }
 0x1d9   : > { %v1622_v13 = vrot.slane %v11481_v11, %v9710_v36  ;;  %v1623_v24 = vcombine.low %v11482_v57, %v1608_v30  ;;  %v1640_v9 = vcombine.low %v10063_v29, %v10055_v56  ;;  %v4155_v20 = vcombine.low %v3829_v4, %v3843_v34 }
 0x1da   : > { %v8313_v58 = vpack.i.b16 %v11484_v26, %v11483_v23  ;;  %v4113_v31 = vrot.slane %v4103_v27, %v9710_v36  ;;  %v4120_v12 = vrot.slane %v4104_v50, %v9710_v36  ;;  %8577 = vmatmul.mubr.msk.bf16.gmra.mrb[12].mxu1 %vm4286_vm3, %v4102_v45  ;;  %v4127_v42 = vrot.slane %v4105_v8, %v9710_v36 }
 0x1db   : > { %v1624_v19 = vcombine.low %v1615_v0, %v1622_v13  ;;  %v1631_v32 = vrot.slane %v1623_v24, %v9710_v36  ;;  %v1648_v53 = vrot.slane %v1640_v9, %v9710_v36  ;;  %v3845_v18 = vcombine.high %v3829_v4, %v3829_v4  ;;  %v5317_v13 = vpop.permute.xlu0 %5316 }
 0x1dc   : > { %v1641_v28 = vcombine.low %v10073_v33, %v8313_v58  ;;  %v11485_v56 = vmov 0.0   ;;  %v4134_v27 = vrot.slane %v4106_v15, %v9710_v36  ;;  %v4135_v29 = vcombine.low %v4113_v31, %v4120_v12 }
 0x1dd   : > { %v1638_v17 = vrot.slane %v1624_v19, %v9710_v36  ;;  %8580 = vmatprep.mubr.msk.bf16.mxu1 %vm9229_vm0, %v11485_v56  ;;  %v4169_v47 = vrot.slane %v4153_v7, %v9710_v36  ;;  %v4176_v10 = vrot.slane %v8346_v43, %v9710_v36  ;;  %v4162_v33 = vrot.slane %v10199_v1, %v9710_v36 }
 0x1de   : > { %v1655_v60 = vrot.slane %v1641_v28, %v9710_v36  ;;  %v4136_v8 = vcombine.low %v4127_v42, %v4134_v27  ;;  %v4143_v4 = vrot.slane %v4135_v29, %v9710_v36  ;;  %v4183_v34 = vrot.slane %v4155_v20, %v9710_v36 }
 0x1df   : > { %v1639_v50 = vcombine.low %v1631_v32, %v1638_v17  ;;  %v11486_v15 = vcombine.high %v10118_v41, %v10118_v41  ;;  %v11487_v30 = vcombine.low %v10148_v62, %v10155_v46  ;;  %v5496_v0 = vcombine.high %v10133_v25, %v10133_v25 }
 0x1e0   : > { %v1656_v1 = vcombine.low %v1648_v53, %v1655_v60  ;;  %v5911_v7 = vcombine.low %v10196_v63, %v10123_v5  ;;  %v5925_v43 = vrot.slane %v8405_v51, %v9710_v36  ;;  %v5503_v11 = vrot.slane %v10133_v25, %v9710_v36 }
 0x1e1   : > { %v5396_v55 = vrot.slane %v11486_v15, %v9710_v36  ;;  %v5918_v22 = vrot.slane %v11487_v30, %v9710_v36  ;;  %8548 = vmatprep.mubr.msk.bf16.mxu0 %vm1688_vm2, %v1639_v50  ;;  %v4150_v41 = vrot.slane %v4136_v8, %v9710_v36  ;;  %v4202_v45 = vcombine.low %v3884_v2, %v3892_v48 }
 0x1e2   : > { %v4204_v62 = vcombine.low %v3891_v59, %v3893_v54  ;;  %v4201_v46 = vcombine.low %v3845_v18, %v10193_v52  ;;  %v1663_v57 = vrot.slane %v1656_v1, %v9710_v36  ;;  %v4203_v24 = vcombine.low %v3894_v61, %v3877_v14 }
 0x1e3   : > { %v4151_v23 = vcombine.low %v4143_v4, %v4150_v41  ;;  %v4184_v26 = vcombine.low %v4162_v33, %v4169_v47  ;;  %v4185_v5 = vcombine.low %v4176_v10, %v4183_v34  ;;  %v5752_v51 = vunpack.i.h.s16 %v10082_v40 }
 0x1e4   : > { %v5754_v63 = vunpack.i.h.s16 %v10097_v49  ;;  %v5910_v25 = vcombine.low %v10152_v3, %v5396_v55  ;;  %v5510_v58 = vrot.slane %v5496_v0, %v9710_v36  ;;  %8549 = vmatmul.mubr.msk.bf16.gmra.mrb[12].mxu0 %vm1688_vm2, %v1663_v57  ;;  %v5756_v2 = vunpack.i.h.s16 %v10115_v21  ;;  %v5321_v55 = vpop.permute.xlu0 %5320 }
 0x1e5   : > { %v11488_v52 = vunpack.i.h.s16 %v10078_v39  ;;  %v5940_v14 = vcombine.low %v5918_v22, %v5925_v43  ;;  %v5333_v48 = vsel %vm4286_vm3, %v9793_v16, %v5317_v13  ;;  %8581 = vmatmul.mubr.msk.bf16.gmra.mrb[16].mxu1 %vm4286_vm3, %v4151_v23  ;;  %v10283_v40 = vrot.slane %v5911_v7, %v9710_v36  ;;  %8608 = vmatprep.mubr.msk.bf16.mxu0 %vm9229_vm0, %v11485_v56 }
 0x1e6   : > { %v5511_v3 = vcombine.high %v5503_v11, %v5503_v11  ;;  %8584 = vmatprep.mubr.msk.bf16.mxu1 %vm9229_vm0, %v11485_v56  ;;  %v4211_v54 = vrot.slane %v4201_v46, %v9710_v36  ;;  %v4218_v61 = vrot.slane %v4202_v45, %v9710_v36  ;;  %v4192_v9 = vrot.slane %v4184_v26, %v9710_v36 }
 0x1e7   : > { %v10277_v59 = vpack.i.b16 %v10085_v35, %v11488_v52  ;;  %v4199_v20 = vrot.slane %v4185_v5, %v9710_v36  ;;  %v4225_v19 = vrot.slane %v4203_v24, %v9710_v36  ;;  %v4232_v16 = vrot.slane %v4204_v62, %v9710_v36 }
 0x1e8   : > { %v10296_v31 = vrot.slane %v5910_v25, %v9710_v36  ;;  %v5512_v12 = vcombine.high %v5510_v58, %v5510_v58  ;;  %v10299_v32 = vrot.slane %v5503_v11, %v9710_v36  ;;  %v5448_v28 = vcombine.high %v5333_v48, %v5333_v48 }
 0x1e9   : > { %v10302_v53 = vpack.i.b16 %v10097_v49, %v5752_v51  ;;  %v10305_v42 = vpack.i.b16 %v10115_v21, %v5754_v63  ;;  %v10308_v18 = vpack.i.b16 %v10078_v39, %v5756_v2  ;;  %v5455_v17 = vrot.slane %v5333_v48, %v9710_v36  ;;  %v5323_v49 = vpop.permute.xlu1 %5322 }
 0x1ea   : > { %v5941_v27 = vcombine.low %v10296_v31, %v10283_v40  ;;  %v10314_v29 = vrot.slane %v5940_v14, %v9710_v36  ;;  %v5526_v47 = vrot.slane %v5510_v58, %v9710_v36  ;;  %v5533_v10 = vrot.slane %v5511_v3, %v9710_v36 }
 0x1eb   : > { %v5760_v60 = vunpack.i.h.s16 %v10085_v35  ;;  %v4200_v21 = vcombine.low %v4192_v9, %v4199_v20  ;;  %v4233_v33 = vcombine.low %v4211_v54, %v4218_v61  ;;  %v4234_v50 = vcombine.low %v4225_v19, %v4232_v16 }
 0x1ec   : > { %v5540_v8 = vrot.slane %v5512_v12, %v9710_v36  ;;  %v5541_v4 = vcombine.high %v10299_v32, %v10299_v32  ;;  %v5776_v34 = vunpack.i.h.s16 %v10299_v32  ;;  %v5462_v15 = vrot.slane %v5448_v28, %v9710_v36 }
 0x1ed   : > { %v5446_v30 = vcombine.high %v10078_v39, %v10078_v39  ;;  %v5463_v22 = vcombine.high %v5455_v17, %v5455_v17  ;;  %v5471_v0 = vrot.slane %v5455_v17, %v9710_v36  ;;  %v5339_v35 = vsel %vm4286_vm3, %v10091_v37, %v5323_v49  ;;  %8585 = vmatmul.mubr.msk.bf16.gmra.mrb[20].mxu1 %vm4286_vm3, %v4200_v21  ;;  %v5327_v17 = vpop.permute.xlu1 %5326 }
 0x1ee   : > { %v5542_v1 = vcombine.high %v5526_v47, %v5526_v47  ;;  %v5543_v7 = vcombine.high %v5533_v10, %v5533_v10  ;;  %v5778_v43 = vunpack.i.h.s16 %v5533_v10  ;;  %v5784_v11 = vunpack.i.h.s16 %v5526_v47  ;;  %8588 = vmatprep.mubr.msk.bf16.mxu1 %vm9229_vm0, %v11485_v56 }
 0x1ef   : > { %v8383_v41 = vpack.i.b16 %v5446_v30, %v5760_v60  ;;  %v5337_v13 = vsel %vm4286_vm3, %v10038_v6, %v5321_v55  ;;  %v4241_v39 = vrot.slane %v4233_v33, %v9710_v36  ;;  %v4248_v45 = vrot.slane %v4234_v50, %v9710_v36 }
 0x1f0   : > { %v5780_v62 = vunpack.i.h.s16 %v5541_v4  ;;  %v5478_v37 = vrot.slane %v5462_v15, %v9710_v36  ;;  %v5592_v46 = vcombine.high %v5339_v35, %v5339_v35  ;;  %v5599_v57 = vrot.slane %v5339_v35, %v9710_v36 }
 0x1f1   : > { %v5786_v24 = vunpack.i.h.s16 %v5540_v8  ;;  %v10338_v23 = vpack.i.b16 %v5533_v10, %v5776_v34  ;;  %v5485_v26 = vrot.slane %v5463_v22, %v9710_v36  ;;  %v5493_v5 = vcombine.high %v5471_v0, %v5471_v0  ;;  %v5325_v10 = vpop.permute.xlu0 %5324 }
 0x1f2   : > { %v5782_v51 = vunpack.i.h.s16 %v5543_v7  ;;  %v10341_v63 = vpack.i.b16 %v5541_v4, %v5778_v43  ;;  %v10343_v6 = vpack.i.b16 %v5540_v8, %v5784_v11  ;;  %v5544_v25 = vcombine.high %v5337_v13, %v5337_v13 }
 0x1f3   : > { %v5464_v58 = vcombine.high %v5462_v15, %v5462_v15  ;;  %v5959_v2 = vcombine.low %v8383_v41, %v5471_v0  ;;  %v4249_v52 = vcombine.low %v4241_v39, %v4248_v45  ;;  %v5958_v14 = vcombine.low %v10308_v18, %v10277_v59 }
 0x1f4   : > { %v8387_v48 = vpack.i.b16 %v5543_v7, %v5780_v62  ;;  %v5494_v40 = vcombine.high %v5478_v37, %v5478_v37  ;;  %v5606_v3 = vrot.slane %v5592_v46, %v9710_v36  ;;  %v5607_v54 = vcombine.high %v5599_v57, %v5599_v57 }
 0x1f5   : > { %v5495_v61 = vcombine.high %v5485_v26, %v5485_v26  ;;  %v5960_v9 = vcombine.low %v5485_v26, %v5493_v5  ;;  %v5551_v20 = vrot.slane %v5337_v13, %v9710_v36  ;;  %8589 = vmatmul.mubr.msk.bf16.gmra.mrb[24].mxu1 %vm4286_vm3, %v4249_v52  ;;  %v5957_v19 = vcombine.low %v10302_v53, %v10305_v42 }
 0x1f6   : > { %v8388_v16 = vpack.i.b16 %v5526_v47, %v5782_v51  ;;  %v10352_v31 = vpack.i.b16 %v5542_v1, %v5786_v24  ;;  %v10355_v12 = vrot.slane %v5599_v57, %v9710_v36  ;;  %v5558_v59 = vrot.slane %v5544_v25, %v9710_v36  ;;  %8648 = vmatprep.mubr.msk.bf16.mxu1 %vm9229_vm0, %v11485_v56 }
 0x1f7   : > { %v5492_v28 = vrot.slane %v5464_v58, %v9710_v36  ;;  %v5981_v18 = vrot.slane %v5959_v2, %v9710_v36  ;;  %v5955_v49 = vrot.slane %v5941_v27, %v9710_v36  ;;  %v5974_v53 = vrot.slane %v5958_v14, %v9710_v36 }
 0x1f8   : > { %v8384_v42 = vpack.i.b16 %v10299_v32, %v5494_v40  ;;  %v5608_v47 = vcombine.high %v5606_v3, %v5606_v3  ;;  %v5622_v60 = vrot.slane %v5606_v3, %v9710_v36  ;;  %v5629_v21 = vrot.slane %v5607_v54, %v9710_v36 }
 0x1f9   : > { %v6006_v33 = vcombine.low %v5495_v61, %v5478_v37  ;;  %v5559_v50 = vcombine.high %v5551_v20, %v5551_v20  ;;  %v5967_v8 = vrot.slane %v5957_v19, %v9710_v36  ;;  %v5988_v4 = vrot.slane %v5960_v9, %v9710_v36 }
 0x1fa   : > { %v5637_v34 = vcombine.high %v10355_v12, %v10355_v12  ;;  %v5560_v15 = vcombine.high %v5558_v59, %v5558_v59  ;;  %v5343_v27 = vsel %vm4286_vm3, %v10139_v44, %v5327_v17  ;;  %v5341_v32 = vsel %vm4286_vm3, %v10171_v38, %v5325_v10 }
 0x1fb   : > { %v5956_v55 = vcombine.low %v10314_v29, %v5955_v49  ;;  %v5989_v30 = vcombine.low %v5967_v8, %v5974_v53  ;;  %v5990_v22 = vcombine.low %v5981_v18, %v5988_v4  ;;  %v6009_v0 = vcombine.low %v8387_v48, %v8388_v16 }
 0x1fc   : > { %v5636_v35 = vrot.slane %v5608_v47, %v9710_v36  ;;  %v5639_v1 = vcombine.high %v5629_v21, %v5629_v21  ;;  %v5802_v7 = vunpack.i.h.s16 %v10355_v12  ;;  %v5810_v43 = vunpack.i.h.s16 %v5622_v60 }
 0x1fd   : > { %v6007_v11 = vcombine.low %v5492_v28, %v8384_v42  ;;  %v5574_v41 = vrot.slane %v5558_v59, %v9710_v36  ;;  %v5581_v13 = vrot.slane %v5559_v50, %v9710_v36  ;;  %8649 = vmatmul.mubr.bf16.vlgmr.msra.gmra.mrb[28].mxu1 %v5956_v55  ;;  %v6008_v44 = vcombine.low %v10338_v23, %v10341_v63 }
 0x1fe   : > { %v5804_v38 = vunpack.i.h.s16 %v5629_v21  ;;  %v5588_v29 = vrot.slane %v5560_v15, %v9710_v36  ;;  %v5695_v39 = vrot.slane %v5343_v27, %v9710_v36  ;;  %v5640_v45 = vcombine.high %v5341_v32, %v5341_v32  ;;  %8652 = vmatprep.mubr.msk.bf16.mxu1 %vm9229_vm0, %v11485_v56 }
 0x1ff   : > { %v5567_v62 = vrot.slane %v5551_v20, %v9710_v36  ;;  %v5997_v37 = vrot.slane %v5989_v30, %v9710_v36  ;;  %v6004_v46 = vrot.slane %v5990_v22, %v9710_v36  ;;  %v6037_v57 = vrot.slane %v6009_v0, %v9710_v36 }
 0x200   : > { %v5806_v24 = vunpack.i.h.s16 %v5637_v34  ;;  %v5808_v26 = vunpack.i.h.s16 %v5639_v1  ;;  %v10390_v23 = vpack.i.b16 %v5629_v21, %v5802_v7  ;;  %v8396_v5 = vpack.i.b16 %v5636_v35, %v5810_v43 }
 0x201   : > { %v5590_v51 = vcombine.high %v5574_v41, %v5574_v41  ;;  %v6056_v63 = vcombine.low %v5567_v62, %v5581_v13  ;;  %v6023_v25 = vrot.slane %v6007_v11, %v9710_v36  ;;  %v6030_v58 = vrot.slane %v6008_v44, %v9710_v36 }
 0x202   : > { %v6058_v2 = vcombine.low %v5574_v41, %v5588_v29  ;;  %v5703_v52 = vcombine.high %v5695_v39, %v5695_v39  ;;  %v5812_v14 = vunpack.i.h.s16 %v5636_v35  ;;  %v5654_v48 = vrot.slane %v5640_v45, %v9710_v36 }
 0x203   : > { %v6005_v40 = vcombine.low %v5997_v37, %v6004_v46  ;;  %v6016_v3 = vrot.slane %v6006_v33, %v9710_v36  ;;  %v6039_v54 = vcombine.low %v6030_v58, %v6037_v57  ;;  %v6055_v61 = vcombine.low %v10343_v6, %v10352_v31 }
 0x204   : > { %v8406_v9 = vcombine.high %v5567_v62, %v5581_v13  ;;  %v5688_v20 = vcombine.high %v5343_v27, %v5343_v27  ;;  %v5638_v19 = vcombine.high %v5622_v60, %v5622_v60  ;;  %v5647_v16 = vrot.slane %v5341_v32, %v9710_v36 }
 0x205   : > { %v8393_v59 = vpack.i.b16 %v5637_v34, %v5804_v38  ;;  %v8394_v28 = vpack.i.b16 %v5639_v1, %v5806_v24  ;;  %v5711_v18 = vrot.slane %v5695_v39, %v9710_v36  ;;  %8653 = vmatmul.mubr.bf16.gmra.mrb[32].mxu1 %v6005_v40  ;;  %v6038_v17 = vcombine.low %v6016_v3, %v6023_v25 }
 0x206   : > { %v8395_v10 = vpack.i.b16 %v5622_v60, %v5808_v26  ;;  %v5725_v49 = vrot.slane %v5703_v52, %v9710_v36  ;;  %v8397_v53 = vpack.i.b16 %v5638_v19, %v5812_v14  ;;  %v5670_v42 = vrot.slane %v5654_v48, %v9710_v36  ;;  %8656 = vmatprep.mubr.msk.bf16.mxu1 %vm9229_vm0, %v11485_v56 }
 0x207   : > { %v8391_v6 = vpack.i.b16 %v10355_v12, %v5590_v51  ;;  %v6053_v31 = vrot.slane %v6039_v54, %v9710_v36  ;;  %v6065_v47 = vrot.slane %v6055_v61, %v9710_v36  ;;  %v6086_v21 = vrot.slane %v6058_v2, %v9710_v36 }
 0x208   : > { %v6072_v33 = vrot.slane %v6056_v63, %v9710_v36  ;;  %v6079_v60 = vrot.slane %v8406_v9, %v9710_v36  ;;  %v5702_v50 = vrot.slane %v5688_v20, %v9710_v36  ;;  %v5663_v8 = vrot.slane %v5647_v16, %v9710_v36 }
 0x209   : > { %v5733_v4 = vcombine.high %v5711_v18, %v5711_v18  ;;  %v5828_v34 = vunpack.i.h.s16 %v5711_v18  ;;  %v5655_v15 = vcombine.high %v5647_v16, %v5647_v16  ;;  %v6046_v27 = vrot.slane %v6038_v17, %v9710_v36 }
 0x20a   : > { %v5830_v12 = vunpack.i.h.s16 %v5725_v49  ;;  %v5656_v32 = vcombine.high %v5654_v48, %v5654_v48  ;;  %v5686_v55 = vcombine.high %v5670_v42, %v5670_v42  ;;  %v6107_v30 = vcombine.low %v8397_v53, %v5663_v8 }
 0x20b   : > { %v6054_v22 = vcombine.low %v6046_v27, %v6053_v31  ;;  %v6087_v0 = vcombine.low %v6065_v47, %v6072_v33  ;;  %v6088_v35 = vcombine.low %v6079_v60, %v6086_v21  ;;  %v6106_v1 = vcombine.low %v8395_v10, %v8396_v5 }
 0x20c   : > { %v5704_v7 = vcombine.high %v5702_v50, %v5702_v50  ;;  %v5677_v43 = vrot.slane %v5655_v15, %v9710_v36  ;;  %v6104_v11 = vcombine.low %v8391_v6, %v10390_v23  ;;  %v6105_v41 = vcombine.low %v8393_v59, %v8394_v28 }
 0x20d   : > { %8657 = vmatmul.mubr.bf16.gmra.mrb[36].mxu1 %v6054_v22  ;;  %v8399_v13 = vpack.i.b16 %v5725_v49, %v5828_v34  ;;  %v8400_v44 = vpack.i.b16 %v5733_v4, %v5830_v12  ;;  %v5684_v38 = vrot.slane %v5656_v32, %v9710_v36  ;;  %v8398_v29 = vpack.i.b16 %v5711_v18, %v5686_v55  ;;  %v11489_v55 = vld [vmem:[#allocation23_spill] sm:$0xff] }
 0x20e   : > { %8660 = vmatprep.mubr.msk.bf16.mxu1 %vm9229_vm0, %v11485_v56  ;;  %v6135_v39 = vrot.slane %v6107_v30, %v9710_v36  ;;  %v6095_v45 = vrot.slane %v6087_v0, %v9710_v36  ;;  %v6102_v62 = vrot.slane %v6088_v35, %v9710_v36  ;;  %v6128_v37 = vrot.slane %v6106_v1, %v9710_v36 }
 0x20f   : > { %v5685_v46 = vcombine.high %v5663_v8, %v5663_v8  ;;  %v5687_v57 = vcombine.high %v5677_v43, %v5677_v43  ;;  %v6114_v24 = vrot.slane %v6104_v11, %v9710_v36  ;;  %v6121_v26 = vrot.slane %v6105_v41, %v9710_v36 }
 0x210   : > { %v5718_v23 = vrot.slane %v5702_v50, %v9710_v36  ;;  %v5732_v5 = vrot.slane %v5704_v7, %v9710_v36  ;;  %v5735_v51 = vcombine.high %v5725_v49, %v5725_v49  ;;  %v6155_v63 = vcombine.low %v5684_v38, %v8398_v29 }
 0x211   : > { %v6103_v25 = vcombine.low %v6095_v45, %v6102_v62  ;;  %v6137_v58 = vcombine.low %v6128_v37, %v6135_v39  ;;  %v6156_v2 = vcombine.low %v8399_v13, %v8400_v44  ;;  %v6153_v52 = vcombine.low %v5677_v43, %v5685_v46 }
 0x212   : > { %v6154_v14 = vcombine.low %v5687_v57, %v5670_v42  ;;  %v6136_v48 = vcombine.low %v6114_v24, %v6121_v26  ;;  %v5734_v40 = vcombine.high %v5718_v23, %v5718_v23  ;;  %v5832_v3 = vunpack.i.h.s16 %v5733_v4 }
 0x213   : > { %v5834_v54 = vunpack.i.h.s16 %v5735_v51  ;;  %v5836_v61 = vunpack.i.h.s16 %v5718_v23  ;;  %v5838_v9 = vunpack.i.h.s16 %v5732_v5  ;;  %v6151_v20 = vrot.slane %v6137_v58, %v9710_v36 }
 0x214   : > { %v6177_v19 = vrot.slane %v6155_v63, %v9710_v36  ;;  %v6184_v16 = vrot.slane %v6156_v2, %v9710_v36  ;;  %v6144_v59 = vrot.slane %v6136_v48, %v9710_v36  ;;  %v6163_v28 = vrot.slane %v6153_v52, %v9710_v36 }
 0x215   : > { %8661 = vmatmul.mubr.bf16.gmra.mrb[40].mxu1 %v6103_v25  ;;  %v6170_v18 = vrot.slane %v6154_v14, %v9710_v36  ;;  %v8402_v17 = vpack.i.b16 %v5718_v23, %v5834_v54  ;;  %v8403_v10 = vpack.i.b16 %v5732_v5, %v5836_v61  ;;  %v8401_v42 = vpack.i.b16 %v5735_v51, %v5832_v3 }
 0x216   : > { %8664 = vmatprep.mubr.msk.bf16.mxu1 %vm9229_vm0, %v11485_v56  ;;  %v6152_v49 = vcombine.low %v6144_v59, %v6151_v20  ;;  %v6186_v53 = vcombine.low %v6177_v19, %v6184_v16  ;;  %v8404_v6 = vpack.i.b16 %v5734_v40, %v5838_v9  ;;  %v9232_v27 = vmov 1983009808  }
 0x217   : > { %v6185_v31 = vcombine.low %v6163_v28, %v6170_v18  ;;  %v6202_v21 = vcombine.low %v8401_v42, %v8402_v17  ;;  %v4413_v12 = vunpack.c.l.s4 %v9232_v27 }
 0x218   : > { %v6200_v47 = vrot.slane %v6186_v53, %v9710_v36  ;;  %v6203_v33 = vcombine.low %v8403_v10, %v8404_v6 }
 0x219   : > { %v6193_v60 = vrot.slane %v6185_v31, %v9710_v36  ;;  %v6210_v8 = vrot.slane %v6202_v21, %v9710_v36  ;;  %v4414_v32 = vunpack.c.0.s8 %v4413_v12 }
 0x21a   : > { %v6217_v4 = vrot.slane %v6203_v33, %v9710_v36 }
 0x21b   : > { %v6201_v50 = vcombine.low %v6193_v60, %v6200_v47  ;;  %v10446_v30 = vsub.s32 %v4414_v32, %v11489_v55 }
 0x21c   : > { %v6218_v34 = vcombine.low %v6210_v8, %v6217_v4 }
 0x21d   : > { %8665 = vmatmul.mubr.bf16.gmra.mrb[44].mxu1 %v6152_v49 }
 0x21e   : > { %8668 = vmatprep.mubr.msk.bf16.mxu1 %vm9229_vm0, %v11485_v56  ;;  %v6225_v15 = vrot.slane %v6218_v34, %v9710_v36 }
 0x225   : > { %8669 = vmatmul.mubr.bf16.gmra.mrb[48].mxu1 %v6201_v50 }
 0x226   : > { %8672 = vmatprep.mubr.msk.bf16.mxu1 %vm9229_vm0, %v11485_v56 }
 0x22d   : > { %8673 = vmatmul.mubr.bf16.gmra.mrb[52].mxu1 %v6225_v15 }
 0x22e   : > { %8712 = vmatprep.mubr.msk.bf16.mxu1 %vm9229_vm0, %v11485_v56 }
 0x25d   : > { %v4342_v22 = vpop.f32.mrb[0].mxu1 }
 0x25e   : > { %v4411_v0 = vcombine.high %v4342_v22, %v4342_v22  ;;  %v4418_v35 = vrot.slane %v4342_v22, %v10446_v30  ;;  %v8566_v1 = vpop.f32.mrb[1].mxu1 }
 0x25f   : > { %v4345_v7 = vpop.f32.mrb[2].mxu1 }
 0x260   : > { %v4425_v43 = vrot.slane %v4411_v0, %v10446_v30  ;;  %v4426_v11 = vcombine.high %v4418_v35, %v4418_v35  ;;  %v4435_v41 = vrot.slane %v4345_v7, %v10446_v30  ;;  %v8567_v13 = vpop.f32.mrb[3].mxu1  ;;  %v4428_v44 = vcombine.high %v4345_v7, %v4345_v7 }
 0x261   : > { %v8538_v29 = vpop.f32.mrb[0].mxu0 }
 0x262   : > { %v4427_v38 = vcombine.high %v4425_v43, %v4425_v43  ;;  %v4443_v39 = vcombine.high %v4435_v41, %v4435_v41  ;;  %v1922_v45 = vcombine.high %v8538_v29, %v8538_v29  ;;  %v1929_v62 = vrot.slane %v8538_v29, %v9710_v36  ;;  %v1747_v37 = vpop.f32.mrb[1].mxu0 }
 0x263   : > { %v4649_v46 = vcombine.low %v4418_v35, %v4426_v11  ;;  %v1824_v24 = vcombine.high %v1747_v37, %v1747_v37  ;;  %v1831_v26 = vrot.slane %v1747_v37, %v9710_v36  ;;  %v8539_v23 = vpop.f32.mrb[2].mxu0  ;;  %v10458_v25 = vrot.slane %v4428_v44, %v10446_v30 }
 0x264   : > { %v4650_v57 = vcombine.low %v4425_v43, %v4427_v38  ;;  %v1936_v5 = vrot.slane %v1922_v45, %v9710_v36  ;;  %v1937_v51 = vcombine.high %v1929_v62, %v1929_v62  ;;  %v10455_v63 = vrot.slane %v1929_v62, %v9710_v36  ;;  %v1750_v58 = vpop.f32.mrb[3].mxu0 }
 0x265   : > { %v1838_v52 = vrot.slane %v1824_v24, %v9710_v36  ;;  %v1839_v14 = vcombine.high %v1831_v26, %v1831_v26  ;;  %v4666_v48 = vcombine.low %v4435_v41, %v4443_v39  ;;  %v4657_v9 = vrot.slane %v4649_v46, %v10446_v30 }
 0x266   : > { %v4664_v2 = vrot.slane %v4650_v57, %v10446_v30  ;;  %v1938_v40 = vcombine.high %v1936_v5, %v1936_v5  ;;  %v1952_v3 = vrot.slane %v1936_v5, %v9710_v36  ;;  %v1959_v54 = vrot.slane %v1937_v51, %v9710_v36 }
 0x267   : > { %v1967_v61 = vcombine.high %v10455_v63, %v10455_v63  ;;  %v1840_v20 = vcombine.high %v1838_v52, %v1838_v52  ;;  %v1861_v19 = vrot.slane %v1839_v14, %v9710_v36  ;;  %v1847_v18 = vrot.slane %v1831_v26, %v9710_v36 }
 0x268   : > { %v1966_v16 = vrot.slane %v1938_v40, %v9710_v36  ;;  %v1968_v59 = vcombine.high %v1952_v3, %v1952_v3  ;;  %v1969_v28 = vcombine.high %v1959_v54, %v1959_v54  ;;  %v1854_v10 = vrot.slane %v1838_v52, %v9710_v36 }
 0x269   : > { %v10470_v17 = vcombine.low %v1959_v54, %v1967_v61  ;;  %v1868_v49 = vrot.slane %v1840_v20, %v9710_v36  ;;  %v4673_v53 = vrot.slane %v4666_v48, %v10446_v30  ;;  %v4665_v42 = vcombine.low %v4657_v9, %v4664_v2 }
 0x26a   : > { %v4680_v6 = vrot.slane %v10458_v25, %v10446_v30  ;;  %v2559_v31 = vcombine.low %v1847_v18, %v1861_v19  ;;  %v8328_v47 = vcombine.high %v1847_v18, %v1861_v19  ;;  %v2658_v60 = vcombine.low %v1969_v28, %v1952_v3 }
 0x26b   : > { %v2561_v21 = vcombine.low %v1854_v10, %v1868_v49  ;;  %v8329_v33 = vcombine.high %v1854_v10, %v1868_v49  ;;  %v2659_v50 = vcombine.low %v1966_v16, %v1968_v59  ;;  %v2673_v4 = vrot.slane %v10470_v17, %v9710_v36 }
 0x26c   : > { %v4681_v8 = vcombine.low %v4673_v53, %v4680_v6  ;;  %v1971_v27 = vcombine.high %v8539_v23, %v8539_v23  ;;  %v1970_v32 = vcombine.high %v1966_v16, %v1966_v16  ;;  %v1978_v55 = vrot.slane %v8539_v23, %v9710_v36 }
 0x26d   : > { %v2583_v34 = vrot.slane %v2561_v21, %v9710_v36  ;;  %v2590_v15 = vrot.slane %v8329_v33, %v9710_v36  ;;  %v1873_v22 = vcombine.high %v1750_v58, %v1750_v58  ;;  %v10484_v0 = vrot.slane %v2559_v31, %v9710_v36 }
 0x26e   : > { %v4930_v12 = vsel %vm4929_vm4, %v4681_v8, -inf  ;;  %v10487_v35 = vrot.slane %v8328_v47, %v9710_v36  ;;  %v1985_v7 = vrot.slane %v1971_v27, %v9710_v36  ;;  %v2680_v43 = vrot.slane %v2658_v60, %v9710_v36 }
 0x26f   : > { %v4931_v1 = vmax.f32 %v4665_v42, %v4930_v12  ;;  %v1986_v11 = vcombine.high %v1978_v55, %v1978_v55  ;;  %v1994_v41 = vrot.slane %v1978_v55, %v9710_v36  ;;  %v1880_v13 = vrot.slane %v1750_v58, %v9710_v36  ;;  %v4350_v5 = vpop.f32.mrb[4].mxu1 }
 0x270   : > { %v2687_v44 = vrot.slane %v2659_v50, %v9710_v36  ;;  %v2592_v38 = vcombine.low %v2583_v34, %v2590_v15  ;;  %v1987_v39 = vcombine.high %v1985_v7, %v1985_v7  ;;  %v1887_v46 = vrot.slane %v1873_v22, %v9710_v36  ;;  %v8570_v14 = vpop.f32.mrb[5].mxu1  ;;  %v10522_v50 = vld [vmem:[%s11436_s5] ss:$0 sm:$0xff] }
 0x271   : > { %v4932_v29 = vrot.slane %v4931_v1, 4  ;;  %v2008_v45 = vrot.slane %v1986_v11, %v9710_v36  ;;  %v2016_v62 = vcombine.high %v1994_v41, %v1994_v41  ;;  %v2705_v37 = vcombine.low %v1970_v32, %v1994_v41  ;;  %v10508_v61 = vpop.f32.mrb[6].mxu1 }
 0x272   : > { %v10497_v24 = vrot.slane %v1985_v7, %v9710_v36  ;;  %v10500_v26 = vrot.slane %v1987_v39, %v9710_v36  ;;  %v1888_v23 = vcombine.high %v1880_v13, %v1880_v13  ;;  %v1889_v52 = vcombine.high %v1887_v46, %v1887_v46  ;;  %v8571_v59 = vpop.f32.mrb[7].mxu1 }
 0x273   : > { %v4933_v57 = vmax.f32 %v4931_v1, %v4932_v29  ;;  %v2018_v51 = vcombine.high %v2008_v45, %v2008_v45  ;;  %v2706_v58 = vcombine.low %v2008_v45, %v2016_v62  ;;  %v2714_v2 = vrot.slane %v2705_v37, %v9710_v36 }
 0x274   : > { %v10503_v48 = vcombine.low %v2680_v43, %v2687_v44  ;;  %v2591_v40 = vcombine.low %v10484_v0, %v10487_v35  ;;  %v1896_v54 = vrot.slane %v1880_v13, %v9710_v36  ;;  %v1903_v19 = vrot.slane %v1887_v46, %v9710_v36 }
 0x275   : > { %v4934_v3 = vrot.slane %v4933_v57, 2  ;;  %v2707_v9 = vcombine.low %v2018_v51, %v10497_v24  ;;  %v2721_v20 = vrot.slane %v2706_v58, %v9710_v36  ;;  %v1910_v16 = vrot.slane %v1888_v23, %v9710_v36 }
 0x276   : > { %v2606_v28 = vrot.slane %v2592_v38, %v9710_v36  ;;  %v2735_v10 = vrot.slane %v10500_v26, %v9710_v36  ;;  %v1917_v49 = vrot.slane %v1889_v52, %v9710_v36  ;;  %v1919_v6 = vcombine.high %v1903_v19, %v1903_v19 }
 0x277   : > { %v4935_v18 = vmax.f32 %v4933_v57, %v4934_v3  ;;  %v2728_v53 = vrot.slane %v2707_v9, %v9710_v36  ;;  %v2736_v42 = vcombine.low %v2714_v2, %v2721_v20  ;;  %v2608_v31 = vcombine.low %v1896_v54, %v1910_v16 }
 0x278   : > { %v1921_v21 = vcombine.high %v1917_v49, %v1917_v49  ;;  %v8330_v33 = vcombine.high %v1896_v54, %v1910_v16  ;;  %v2610_v60 = vcombine.low %v1903_v19, %v1917_v49  ;;  %v2638_v27 = vrot.slane %v1919_v6, %v9710_v36 }
 0x279   : > { %v4936_v47 = vrot.slane %v4935_v18, 1  ;;  %v2737_v8 = vcombine.low %v2728_v53, %v2735_v10  ;;  %v2744_v34 = vrot.slane %v2736_v42, %v9710_v36  ;;  %v2617_v15 = vrot.slane %v2608_v31, %v9710_v36 }
 0x27a   : > { %v2624_v32 = vrot.slane %v8330_v33, %v9710_v36  ;;  %v2631_v55 = vrot.slane %v2610_v60, %v9710_v36  ;;  %v2656_v22 = vcombine.low %v1921_v21, %v10455_v63  ;;  %v4444_v35 = vcombine.high %v10458_v25, %v10458_v25 }
 0x27b   : > { %v4937_v12 = vmax.f32 %v4935_v18, %v4936_v47  ;;  %v2751_v0 = vrot.slane %v2737_v8, %v9710_v36  ;;  %v4445_v1 = vcombine.high %v4350_v5, %v4350_v5  ;;  %v4452_v7 = vrot.slane %v4350_v5, %v10446_v30  ;;  %v8868_v5 = vld [vmem:[#allocation10] sm:$0xff]  }
 0x27c   : > { %v2639_v11 = vcombine.low %v2617_v15, %v2624_v32  ;;  %v2640_v41 = vcombine.low %v2631_v55, %v2638_v27  ;;  %v2666_v13 = vrot.slane %v2656_v22, %v9710_v36  ;;  %v2599_v63 = vrot.slane %v2591_v40, %v9710_v36  ;;  %8593 = vmatpush3.bf16.msra.mxu0 %v8868_v5  ;;  %v8542_v59 = vpop.f32.mrb[4].mxu0 }
 0x27d   : > { %v5001_v43 = vadd.f32 %v10522_v50, %v4937_v12  ;;  %v2752_v44 = vcombine.low %v2744_v34, %v2751_v0  ;;  %v4459_v38 = vrot.slane %v4445_v1, %v10446_v30  ;;  %v4460_v29 = vcombine.high %v4452_v7, %v4452_v7  ;;  %8594 = vmatprep.subr.bf16.mxu0 %v11485_v56  ;;  %v1763_v10 = vpop.f32.mrb[5].mxu0 }
 0x27e   : > { %v4682_v39 = vcombine.low %v4444_v35, %v4452_v7  ;;  %v2647_v45 = vrot.slane %v2639_v11, %v9710_v36  ;;  %v2654_v25 = vrot.slane %v2640_v41, %v9710_v36  ;;  %v2688_v62 = vcombine.low %v2666_v13, %v2673_v4  ;;  %v10563_v31 = vpop.f32.mrb[6].mxu0  ;;  %v8869_v35 = vld [vmem:[#allocation10 + $0x8] sm:$0xff]  }
 0x27f   : > { %v2703_v37 = vrot.slane %v10503_v48, %v9710_v36  ;;  %v5009_v46 = vmax.f32 %v5001_v43, 0.0  ;;  %v4683_v57 = vcombine.low %v4460_v29, %v4459_v38  ;;  %v4461_v23 = vcombine.high %v4459_v38, %v4459_v38  ;;  %v10569_v8 = vpop.f32.mrb[7].mxu0 }
 0x280   : > { %v2655_v51 = vcombine.low %v2647_v45, %v2654_v25  ;;  %v2696_v58 = vrot.slane %v2688_v62, %v9710_v36  ;;  %v4462_v2 = vcombine.high %v10508_v61, %v10508_v61  ;;  %v4469_v52 = vrot.slane %v10508_v61, %v10446_v30  ;;  %8595 = vmatpush3.bf16.msra.mxu0 %v8869_v35 }
 0x281   : > { %v2607_v14 = vcombine.low %v2599_v63, %v2606_v28  ;;  %v8331_v17 = vcombine.high %v10497_v24, %v10500_v26  ;;  %v4690_v4 = vrot.slane %v4682_v39, %v10446_v30  ;;  %v4697_v48 = vrot.slane %v4683_v57, %v10446_v30  ;;  %8596 = vmatprep.subr.bf16.mxu0 %v11485_v56 }
 0x282   : > { %v3360_v40 = vsel %vm3351_vm5, %v2752_v44, -inf  ;;  %v2704_v3 = vcombine.low %v2696_v58, %v2703_v37  ;;  %v3352_v54 = vsel %vm3351_vm5, %v2655_v51, -inf  ;;  %v4477_v9 = vcombine.high %v4469_v52, %v4469_v52  ;;  %v10591_v58 = vld [vmem:[%s11490_s17] ss:$0 sm:$0xff] }
 0x283   : > { %v10557_v20 = vpack.c.bf16 %v5009_v46, %v5009_v46  ;;  %v3353_v61 = vmax.f32 %v2607_v14, %v3352_v54  ;;  %v4698_v19 = vcombine.low %v4690_v4, %v4697_v48  ;;  %v4699_v16 = vcombine.low %v4461_v23, %v4469_v52  ;;  %v8870_v54 = vld [vmem:[#allocation10 + $0x10] sm:$0xff]  }
 0x284   : > { %v3361_v24 = vmax.f32 %v2704_v3, %v3360_v40  ;;  %v4476_v26 = vrot.slane %v4462_v2, %v10446_v30  ;;  %v2118_v28 = vcombine.high %v8542_v59, %v8542_v59  ;;  %v2125_v18 = vrot.slane %v8542_v59, %v9710_v36  ;;  %8597 = vmatpush3.bf16.msra.mxu0 %v8870_v54 }
 0x285   : > { %v3354_v49 = vrot.slane %v3353_v61, 4  ;;  %v4706_v53 = vrot.slane %v4699_v16, %v10446_v30  ;;  %v4713_v42 = vrot.slane %v4477_v9, %v10446_v30  ;;  %v2020_v6 = vcombine.high %v1763_v10, %v1763_v10  ;;  %8598 = vmatprep.subr.bf16.mxu0 %v11485_v56 }
 0x286   : > { %v3362_v47 = vrot.slane %v3361_v24, 4  ;;  %v2132_v21 = vrot.slane %v2118_v28, %v9710_v36  ;;  %v2133_v33 = vcombine.high %v2125_v18, %v2125_v18  ;;  %v10567_v60 = vrot.slane %v2125_v18, %v9710_v36 }
 0x287   : > { %v10572_v34 = vrot.slane %v8331_v17, %v9710_v36  ;;  %v3355_v15 = vmax.f32 %v3353_v61, %v3354_v49  ;;  %v4714_v27 = vcombine.low %v4706_v53, %v4713_v42  ;;  %v2027_v12 = vrot.slane %v1763_v10, %v9710_v36 }
 0x288   : > { %v3363_v32 = vmax.f32 %v3361_v24, %v3362_v47  ;;  %v4478_v55 = vcombine.high %v4476_v26, %v4476_v26  ;;  %v2148_v22 = vrot.slane %v2132_v21, %v9710_v36  ;;  %v2155_v0 = vrot.slane %v2133_v33, %v9710_v36 }
 0x289   : > { %v3356_v1 = vrot.slane %v3355_v15, 2  ;;  %v4938_v7 = vsel %vm4929_vm4, %v4714_v27, -inf  ;;  %v2163_v43 = vcombine.high %v10567_v60, %v10567_v60  ;;  %v2034_v11 = vrot.slane %v2020_v6, %v9710_v36 }
 0x28a   : > { %v5049_v41 = vunpack.c.l.b16 %v10557_v20  ;;  %v3364_v13 = vrot.slane %v3363_v32, 2  ;;  %v4939_v44 = vmax.f32 %v4698_v19, %v4938_v7  ;;  %v2134_v38 = vcombine.high %v2132_v21, %v2132_v21 }
 0x28b   : > { %v3357_v29 = vmax.f32 %v3355_v15, %v3356_v1  ;;  %v2165_v39 = vcombine.high %v2155_v0, %v2155_v0  ;;  %v2852_v63 = vcombine.low %v2155_v0, %v2163_v43  ;;  %v2035_v45 = vcombine.high %v2027_v12, %v2027_v12 }
 0x28c   : > { %v10583_v25 = vcombine.low %v4476_v26, %v4478_v55  ;;  %v4940_v62 = vrot.slane %v4939_v44, 4  ;;  %v2164_v37 = vcombine.high %v2148_v22, %v2148_v22  ;;  %v2036_v46 = vcombine.high %v2034_v11, %v2034_v11 }
 0x28d   : > { %v3358_v57 = vrot.slane %v3357_v29, 1  ;;  %v10585_v23 = vmax.f32 %v3363_v32, %v3364_v13  ;;  %v2853_v5 = vcombine.low %v2165_v39, %v2148_v22  ;;  %v2043_v51 = vrot.slane %v2027_v12, %v9710_v36 }
 0x28e   : > { %v4941_v2 = vmax.f32 %v4939_v44, %v4940_v62  ;;  %v2162_v52 = vrot.slane %v2134_v38, %v9710_v36  ;;  %v10595_v14 = vrot.slane %v2034_v11, %v9710_v36  ;;  %v2057_v17 = vrot.slane %v2035_v45, %v9710_v36  ;;  %v8871_v11 = vld [vmem:[#allocation10 + $0x18] sm:$0xff]  }
 0x28f   : > { %v3359_v4 = vmax.f32 %v3357_v29, %v3358_v57  ;;  %v2874_v48 = vrot.slane %v2852_v63, %v9710_v36  ;;  %v2881_v40 = vrot.slane %v2853_v5, %v9710_v36  ;;  %v10601_v3 = vrot.slane %v2036_v46, %v9710_v36  ;;  %8599 = vmatpush3.bf16.msra.mxu0 %v8871_v11 }
 0x290   : > { %v4723_v9 = vrot.slane %v10583_v25, %v10446_v30  ;;  %v4942_v61 = vrot.slane %v4941_v2, 2  ;;  %v2754_v19 = vcombine.low %v2043_v51, %v2057_v17  ;;  %v8332_v16 = vcombine.high %v2043_v51, %v2057_v17  ;;  %8600 = vmatprep.subr.bf16.mxu0 %v11485_v56 }
 0x291   : > { %v3366_v59 = vrot.slane %v10585_v23, 1  ;;  %v10607_v24 = vadd.f32 %v10591_v58, %v3359_v4  ;;  %v2899_v26 = vcombine.low %v2162_v52, %v2164_v37  ;;  %v2756_v28 = vcombine.low %v10595_v14, %v10601_v3 }
 0x292   : > { %v4943_v18 = vmax.f32 %v4941_v2, %v4942_v61  ;;  %v2770_v10 = vrot.slane %v2754_v19, %v9710_v36  ;;  %v2777_v49 = vrot.slane %v8332_v16, %v9710_v36  ;;  %v2167_v53 = vcombine.high %v10563_v31, %v10563_v31 }
 0x293   : > { %v10616_v42 = vcombine.low %v2874_v48, %v2881_v40  ;;  %v2784_v6 = vrot.slane %v2756_v28, %v9710_v36  ;;  %v8333_v47 = vcombine.high %v10595_v14, %v10601_v3  ;;  %v2166_v21 = vcombine.high %v2162_v52, %v2162_v52 }
 0x294   : > { %v4944_v33 = vrot.slane %v4943_v18, 1  ;;  %v2785_v15 = vcombine.low %v10572_v34, %v2770_v10  ;;  %v2174_v27 = vrot.slane %v10563_v31, %v9710_v36  ;;  %v2181_v12 = vrot.slane %v2167_v53, %v9710_v36  ;;  %v10632_v34 = vpop.f32.mrb[8].mxu1 }
 0x295   : > { %v3431_v32 = vmax.f32 %v10607_v24, 0.0  ;;  %v2786_v55 = vcombine.low %v2777_v49, %v2784_v6  ;;  %v2908_v22 = vrot.slane %v2899_v26, %v9710_v36  ;;  %v2069_v0 = vcombine.high %v10569_v8, %v10569_v8  ;;  %v8574_v29 = vpop.f32.mrb[9].mxu1  ;;  %v8872_v26 = vld [vmem:[#allocation10 + $0x20] sm:$0xff]  }
 0x296   : > { %v4945_v35 = vmax.f32 %v4943_v18, %v4944_v33  ;;  %v10630_v1 = vrot.slane %v2785_v15, %v9710_v36  ;;  %v2182_v7 = vcombine.high %v2174_v27, %v2174_v27  ;;  %v2183_v43 = vcombine.high %v2181_v12, %v2181_v12  ;;  %v10645_v37 = vpop.f32.mrb[10].mxu1  ;;  %8601 = vmatpush3.bf16.msra.mxu0 %v8872_v26 }
 0x297   : > { %v10635_v31 = vrot.slane %v2786_v55, %v9710_v36  ;;  %v2190_v13 = vrot.slane %v2174_v27, %v9710_v36  ;;  %v2197_v44 = vrot.slane %v2181_v12, %v9710_v36  ;;  %v2076_v38 = vrot.slane %v10569_v8, %v9710_v36  ;;  %v8575_v2 = vpop.f32.mrb[11].mxu1  ;;  %8602 = vmatprep.subr.bf16.mxu0 %v11485_v56 }
 0x298   : > { %v5002_v39 = vadd.f32 %v10522_v50, %v4945_v35  ;;  %v2204_v63 = vrot.slane %v2182_v7, %v9710_v36  ;;  %v2211_v45 = vrot.slane %v2183_v43, %v9710_v36  ;;  %v2083_v62 = vrot.slane %v2069_v0, %v9710_v36 }
 0x299   : > { %v2801_v46 = vcombine.low %v10630_v1, %v10635_v31  ;;  %v2212_v57 = vcombine.high %v2190_v13, %v2190_v13  ;;  %v2900_v5 = vcombine.low %v2166_v21, %v2190_v13  ;;  %v2084_v51 = vcombine.high %v2076_v38, %v2076_v38 }
 0x29a   : > { %v5010_v8 = vmax.f32 %v5002_v39, 0.0  ;;  %v2214_v52 = vcombine.high %v2204_v63, %v2204_v63  ;;  %v2947_v14 = vcombine.low %v2197_v44, %v2211_v45  ;;  %v8335_v17 = vcombine.high %v2197_v44, %v2211_v45 }
 0x29b   : > { %v2901_v4 = vcombine.low %v2204_v63, %v2212_v57  ;;  %v2915_v48 = vrot.slane %v2900_v5, %v9710_v36  ;;  %v2085_v40 = vcombine.high %v2083_v62, %v2083_v62  ;;  %v2092_v3 = vrot.slane %v2076_v38, %v9710_v36 }
 0x29c   : > { %v5018_v54 = vpack.c.bf16 %v5010_v8, %v5010_v8  ;;  %v2929_v61 = vrot.slane %v2214_v52, %v9710_v36  ;;  %v2957_v19 = vrot.slane %v2947_v14, %v9710_v36  ;;  %v2964_v16 = vrot.slane %v8335_v17, %v9710_v36 }
 0x29d   : > { %v2922_v28 = vrot.slane %v2901_v4, %v9710_v36  ;;  %v2930_v18 = vcombine.low %v2908_v22, %v2915_v48  ;;  %v2099_v10 = vrot.slane %v2083_v62, %v9710_v36  ;;  %v2106_v49 = vrot.slane %v2084_v51, %v9710_v36  ;;  %v8873_v48 = vld [vmem:[#allocation10 + $0x28] sm:$0xff]  }
 0x29e   : > { %v5050_v53 = vunpack.c.l.b16 %v5018_v54  ;;  %v2811_v6 = vrot.slane %v8333_v47, %v9710_v36  ;;  %v2113_v21 = vrot.slane %v2085_v40, %v9710_v36  ;;  %v4479_v33 = vcombine.high %v10632_v34, %v10632_v34  ;;  %8603 = vmatpush3.bf16.msra.mxu0 %v8873_v48 }
 0x29f   : > { %v2931_v15 = vcombine.low %v2922_v28, %v2929_v61  ;;  %v2938_v27 = vrot.slane %v2930_v18, %v9710_v36  ;;  %v2115_v12 = vcombine.high %v2099_v10, %v2099_v10  ;;  %v2803_v55 = vcombine.low %v2092_v3, %v2106_v49  ;;  %8604 = vmatprep.subr.bf16.mxu0 %v11485_v56 }
 0x2a0   : > { %v5057_v22 = vrot.slane %v5050_v53, 7  ;;  %v2979_v0 = vcombine.low %v2957_v19, %v2964_v16  ;;  %v2117_v35 = vcombine.high %v2113_v21, %v2113_v21  ;;  %v8334_v7 = vcombine.high %v2092_v3, %v2106_v49 }
 0x2a1   : > { %v2945_v43 = vrot.slane %v2931_v15, %v9710_v36  ;;  %v2818_v47 = vrot.slane %v2803_v55, %v9710_v36  ;;  %v2832_v11 = vrot.slane %v2099_v10, %v9710_v36  ;;  %v2850_v13 = vcombine.low %v2113_v21, %v2115_v12  ;;  %v8546_v10 = vpop.f32.mrb[8].mxu0 }
 0x2a2   : > { %v10670_v44 = vsel %vm5058_vm6, %v5057_v22, %v5049_v41  ;;  %v2825_v38 = vrot.slane %v8334_v7, %v9710_v36  ;;  %v2851_v29 = vcombine.low %v2117_v35, %v10567_v60  ;;  %v4486_v39 = vrot.slane %v10632_v34, %v10446_v30  ;;  %v1779_v15 = vpop.f32.mrb[9].mxu0 }
 0x2a3   : > { %v2946_v63 = vcombine.low %v2938_v27, %v2945_v43  ;;  %v2833_v45 = vcombine.low %v2811_v6, %v2818_v47  ;;  %v2860_v62 = vrot.slane %v2850_v13, %v9710_v36  ;;  %v4493_v57 = vrot.slane %v4479_v33, %v10446_v30 }
 0x2a4   : > { %v2834_v5 = vcombine.low %v2825_v38, %v2832_v11  ;;  %v2867_v51 = vrot.slane %v2851_v29, %v9710_v36  ;;  %v4494_v20 = vcombine.high %v4486_v39, %v4486_v39  ;;  %v4496_v41 = vcombine.high %v10645_v37, %v10645_v37  ;;  %v8874_v11 = vld [vmem:[#allocation10 + $0x30] sm:$0xff]  }
 0x2a5   : > { %v10684_v60 = vmax.f32 %v10585_v23, %v3366_v59  ;;  %v2841_v34 = vrot.slane %v2833_v45, %v9710_v36  ;;  %v4495_v2 = vcombine.high %v4493_v57, %v4493_v57  ;;  %v4503_v8 = vrot.slane %v10645_v37, %v10446_v30  ;;  %8605 = vmatpush3.bf16.msra.mxu0 %v8874_v11 }
 0x2a6   : > { %v2848_v52 = vrot.slane %v2834_v5, %v9710_v36  ;;  %v2882_v14 = vcombine.low %v2860_v62, %v2867_v51  ;;  %v4716_v17 = vcombine.low %v4486_v39, %v4494_v20  ;;  %v10691_v4 = vrot.slane %v4496_v41, %v10446_v30  ;;  %8606 = vmatprep.subr.bf16.mxu0 %v11485_v56 }
 0x2a7   : > { %v10696_v40 = vpack.c.bf16 %v3431_v32, %v3431_v32  ;;  %v2897_v23 = vrot.slane %v10616_v42, %v9710_v36  ;;  %v4732_v59 = vcombine.low %v4493_v57, %v4495_v2  ;;  %v4511_v3 = vcombine.high %v4503_v8, %v4503_v8 }
 0x2a8   : > { %v10701_v37 = vrot.slane %v2979_v0, %v9710_v36  ;;  %v2849_v54 = vcombine.low %v2841_v34, %v2848_v52  ;;  %v2890_v61 = vrot.slane %v2882_v14, %v9710_v36  ;;  %v4730_v19 = vrot.slane %v4716_v17, %v10446_v30 }
 0x2a9   : > { %v3376_v16 = vsel %vm3351_vm5, %v2946_v63, -inf  ;;  %v4739_v24 = vrot.slane %v4732_v59, %v10446_v30  ;;  %v4746_v32 = vrot.slane %v4503_v8, %v10446_v30  ;;  %v10709_v26 = vcombine.low %v4511_v3, %v10691_v4 }
 0x2aa   : > { %v2898_v42 = vcombine.low %v2890_v61, %v2897_v23  ;;  %v3368_v28 = vsel %vm3351_vm5, %v2849_v54, -inf  ;;  %v4731_v18 = vcombine.low %v4723_v9, %v4730_v19  ;;  %v4512_v49 = vcombine.high %v10691_v4, %v10691_v4  ;;  %v10725_v9 = vpop.f32.mrb[10].mxu0 }
 0x2ab   : > { %v3369_v53 = vmax.f32 %v2801_v46, %v3368_v28  ;;  %v4747_v6 = vcombine.low %v4739_v24, %v4746_v32  ;;  %v4756_v21 = vrot.slane %v10709_v26, %v10446_v30  ;;  %v2314_v33 = vcombine.high %v8546_v10, %v8546_v10  ;;  %v10731_v46 = vpop.f32.mrb[11].mxu0 }
 0x2ac   : > { %v3377_v27 = vmax.f32 %v2898_v42, %v3376_v16  ;;  %v2321_v12 = vrot.slane %v8546_v10, %v9710_v36  ;;  %v2216_v55 = vcombine.high %v1779_v15, %v1779_v15  ;;  %v2223_v25 = vrot.slane %v1779_v15, %v9710_v36 }
 0x2ad   : > { %v3370_v22 = vrot.slane %v3369_v53, 4  ;;  %v4946_v0 = vsel %vm4929_vm4, %v4747_v6, -inf  ;;  %v2328_v1 = vrot.slane %v2314_v33, %v9710_v36  ;;  %v2363_v31 = vcombine.high %v10725_v9, %v10725_v9 }
 0x2ae   : > { %v3378_v35 = vrot.slane %v3377_v27, 4  ;;  %v4947_v7 = vmax.f32 %v4731_v18, %v4946_v0  ;;  %v2329_v43 = vcombine.high %v2321_v12, %v2321_v12  ;;  %v10734_v47 = vrot.slane %v2321_v12, %v9710_v36 }
 0x2af   : > { %v3371_v13 = vmax.f32 %v3369_v53, %v3370_v22  ;;  %v2330_v38 = vcombine.high %v2328_v1, %v2328_v1  ;;  %v2344_v29 = vrot.slane %v2328_v1, %v9710_v36  ;;  %v2230_v39 = vrot.slane %v2216_v55, %v9710_v36  ;;  %v10759_v53 = vpop.f32.mrb[12].mxu1  ;;  %v8875_v55 = vld [vmem:[#allocation10 + $0x38] sm:$0xff]  }
 0x2b0   : > { %v3379_v63 = vmax.f32 %v3377_v27, %v3378_v35  ;;  %v4948_v45 = vrot.slane %v4947_v7, 4  ;;  %v2351_v62 = vrot.slane %v2329_v43, %v9710_v36  ;;  %v2359_v57 = vcombine.high %v10734_v47, %v10734_v47  ;;  %v8578_v12 = vpop.f32.mrb[13].mxu1  ;;  %8607 = vmatpush3.bf16.msra.mxu0 %v8875_v55 }
 0x2b1   : > { %v3372_v5 = vrot.slane %v3371_v13, 2  ;;  %v10742_v51 = vrot.slane %v2330_v38, %v9710_v36  ;;  %v2360_v20 = vcombine.high %v2344_v29, %v2344_v29  ;;  %v2231_v41 = vcombine.high %v2223_v25, %v2223_v25  ;;  %v10765_v35 = vpop.f32.mrb[14].mxu1  ;;  %8612 = vmatprep.subr.bf16.mxu0 %v11485_v56 }
 0x2b2   : > { %v3380_v34 = vrot.slane %v3379_v63, 2  ;;  %v4949_v2 = vmax.f32 %v4947_v7, %v4948_v45  ;;  %v2361_v8 = vcombine.high %v2351_v62, %v2351_v62  ;;  %v10745_v52 = vcombine.low %v2351_v62, %v2359_v57  ;;  %v8579_v38 = vpop.f32.mrb[15].mxu1 }
 0x2b3   : > { %v3373_v14 = vmax.f32 %v3371_v13, %v3372_v5  ;;  %v3094_v17 = vcombine.low %v10742_v51, %v2360_v20  ;;  %v2232_v48 = vcombine.high %v2230_v39, %v2230_v39  ;;  %v2239_v23 = vrot.slane %v2223_v25, %v9710_v36 }
 0x2b4   : > { %v10749_v59 = vmax.f32 %v3379_v63, %v3380_v34  ;;  %v4950_v3 = vrot.slane %v4949_v2, 2  ;;  %v3075_v54 = vrot.slane %v10745_v52, %v9710_v36  ;;  %v3093_v61 = vcombine.low %v2361_v8, %v2344_v29 }
 0x2b5   : > { %v3374_v19 = vrot.slane %v3373_v14, 1  ;;  %v3109_v16 = vrot.slane %v3094_v17, %v9710_v36  ;;  %v2246_v24 = vrot.slane %v2230_v39, %v9710_v36  ;;  %v2253_v32 = vrot.slane %v2231_v41, %v9710_v36 }
 0x2b6   : > { %v3382_v42 = vrot.slane %v10749_v59, 1  ;;  %v4951_v28 = vmax.f32 %v4949_v2, %v4950_v3  ;;  %v3102_v18 = vrot.slane %v3093_v61, %v9710_v36  ;;  %v2260_v10 = vrot.slane %v2232_v48, %v9710_v36 }
 0x2b7   : > { %v3375_v6 = vmax.f32 %v3373_v14, %v3374_v19  ;;  %v2949_v33 = vcombine.low %v2239_v23, %v2253_v32  ;;  %v8336_v15 = vcombine.high %v2239_v23, %v2253_v32  ;;  %v2362_v27 = vcombine.high %v10742_v51, %v10742_v51  ;;  %v10798_v3 = vpop.f32.mrb[12].mxu0 }
 0x2b8   : > { %v4952_v25 = vrot.slane %v4951_v28, 1  ;;  %v10763_v22 = vcombine.low %v3102_v18, %v3109_v16  ;;  %v2996_v0 = vcombine.low %v2246_v24, %v2260_v10  ;;  %v8337_v1 = vcombine.high %v2246_v24, %v2260_v10  ;;  %v10804_v24 = vpop.f32.mrb[13].mxu0  ;;  %v10806_v32 = vpop.f32.mrb[16].mxu1 }
 0x2b9   : > { %v10768_v7 = vadd.f32 %v10591_v58, %v3375_v6  ;;  %v2971_v43 = vrot.slane %v2949_v33, %v9710_v36  ;;  %v2978_v11 = vrot.slane %v8336_v15, %v9710_v36  ;;  %v2370_v13 = vrot.slane %v10725_v9, %v9710_v36  ;;  %v8551_v33 = vpop.f32.mrb[14].mxu0  ;;  %v8582_v15 = vpop.f32.mrb[17].mxu1 }
 0x2ba   : > { %v4953_v29 = vmax.f32 %v4951_v28, %v4952_v25  ;;  %v3132_v39 = vrot.slane %v10763_v22, %v9710_v36  ;;  %v3005_v63 = vrot.slane %v2996_v0, %v9710_v36  ;;  %v3012_v45 = vrot.slane %v8337_v1, %v9710_v36  ;;  %v10811_v22 = vpop.f32.mrb[15].mxu0  ;;  %v10813_v0 = vpop.f32.mrb[18].mxu1 }
 0x2bb   : > { %v2980_v58 = vcombine.low %v2971_v43, %v2978_v11  ;;  %v2377_v62 = vrot.slane %v2363_v31, %v9710_v36  ;;  %v2378_v57 = vcombine.high %v2370_v13, %v2370_v13  ;;  %v2386_v5 = vrot.slane %v2370_v13, %v9710_v36  ;;  %v8583_v38 = vpop.f32.mrb[19].mxu1 }
 0x2bc   : > { %v5003_v51 = vadd.f32 %v10522_v50, %v4953_v29  ;;  %v3027_v20 = vcombine.low %v3005_v63, %v3012_v45  ;;  %v2265_v41 = vcombine.high %v10731_v46, %v10731_v46  ;;  %v2272_v34 = vrot.slane %v10731_v46, %v9710_v36 }
 0x2bd   : > { %v10790_v2 = vrot.slane %v2980_v58, %v9710_v36  ;;  %v2379_v8 = vcombine.high %v2377_v62, %v2377_v62  ;;  %v2393_v14 = vrot.slane %v2377_v62, %v9710_v36  ;;  %v2400_v9 = vrot.slane %v2378_v57, %v9710_v36 }
 0x2be   : > { %v5011_v31 = vmax.f32 %v5003_v51, 0.0  ;;  %v10795_v17 = vrot.slane %v3027_v20, %v9710_v36  ;;  %v3095_v48 = vcombine.low %v2362_v27, %v2386_v5  ;;  %v2279_v23 = vrot.slane %v2265_v41, %v9710_v36 }
 0x2bf   : > { %v2995_v46 = vcombine.low %v10701_v37, %v10790_v2  ;;  %v2407_v61 = vrot.slane %v2379_v8, %v9710_v36  ;;  %v3123_v19 = vrot.slane %v2400_v9, %v9710_v36  ;;  %v8338_v16 = vcombine.high %v2386_v5, %v2400_v9 }
 0x2c0   : > { %v5019_v28 = vpack.c.bf16 %v5011_v31, %v5011_v31  ;;  %v3116_v18 = vrot.slane %v3095_v48, %v9710_v36  ;;  %v2280_v10 = vcombine.high %v2272_v34, %v2272_v34  ;;  %v2281_v6 = vcombine.high %v2279_v23, %v2279_v23 }
 0x2c1   : > { %v3142_v27 = vcombine.low %v2393_v14, %v2407_v61  ;;  %v8339_v12 = vcombine.high %v2393_v14, %v2407_v61  ;;  %v3151_v55 = vrot.slane %v8338_v16, %v9710_v36  ;;  %v2288_v25 = vrot.slane %v2272_v34, %v9710_v36 }
 0x2c2   : > { %v5051_v1 = vunpack.c.l.b16 %v5019_v28  ;;  %v3125_v43 = vcombine.low %v3116_v18, %v3123_v19  ;;  %v2295_v11 = vrot.slane %v2279_v23, %v9710_v36  ;;  %v2302_v13 = vrot.slane %v2280_v10, %v9710_v36  ;;  %v10835_v28 = vpop.f32.mrb[20].mxu1 }
 0x2c3   : > { %v3158_v29 = vrot.slane %v3142_v27, %v9710_v36  ;;  %v10819_v63 = vrot.slane %v8339_v12, %v9710_v36  ;;  %v2309_v45 = vrot.slane %v2281_v6, %v9710_v36  ;;  %v2310_v58 = vcombine.high %v2288_v25, %v2288_v25  ;;  %v8586_v6 = vpop.f32.mrb[21].mxu1 }
 0x2c4   : > { %v5060_v62 = vrot.slane %v5051_v1, 6  ;;  %v3139_v57 = vrot.slane %v3125_v43, %v9710_v36  ;;  %v2311_v5 = vcombine.high %v2295_v11, %v2295_v11  ;;  %v2312_v51 = vcombine.high %v2302_v13, %v2302_v13  ;;  %v10846_v12 = vpop.f32.mrb[22].mxu1 }
 0x2c5   : > { %v3173_v20 = vcombine.low %v3151_v55, %v3158_v29  ;;  %v2313_v41 = vcombine.high %v2309_v45, %v2309_v45  ;;  %v2998_v34 = vcombine.low %v2288_v25, %v2302_v13  ;;  %v3026_v8 = vrot.slane %v2310_v58, %v9710_v36  ;;  %v8587_v43 = vpop.f32.mrb[23].mxu1 }
 0x2c6   : > { %v10826_v14 = vsel %vm5061_vm7, %v5060_v62, %v10670_v44  ;;  %v3140_v9 = vcombine.low %v3132_v39, %v3139_v57  ;;  %v3044_v31 = vcombine.low %v2312_v51, %v2295_v11  ;;  %v3045_v48 = vcombine.low %v2309_v45, %v2311_v5 }
 0x2c7   : > { %v10829_v23 = vrot.slane %v3173_v20, %v9710_v36  ;;  %v3019_v61 = vrot.slane %v2998_v34, %v9710_v36  ;;  %v3046_v19 = vcombine.low %v2313_v41, %v10734_v47  ;;  %v4513_v16 = vcombine.high %v10759_v53, %v10759_v53 }
 0x2c8   : > { %v3392_v18 = vsel %vm3351_vm5, %v3140_v9, -inf  ;;  %v3054_v44 = vrot.slane %v3044_v31, %v9710_v36  ;;  %v3061_v39 = vrot.slane %v3045_v48, %v9710_v36  ;;  %v4520_v10 = vrot.slane %v10759_v53, %v10446_v30  ;;  %v10872_v9 = vpop.f32.mrb[24].mxu1 }
 0x2c9   : > { %v3028_v33 = vcombine.low %v3019_v61, %v3026_v8  ;;  %v3068_v15 = vrot.slane %v3046_v19, %v9710_v36  ;;  %v4527_v47 = vrot.slane %v4513_v16, %v10446_v30  ;;  %v4530_v27 = vcombine.high %v10765_v35, %v10765_v35  ;;  %v8590_v61 = vpop.f32.mrb[25].mxu1 }
 0x2ca   : > { %v3076_v55 = vcombine.low %v3054_v44, %v3061_v39  ;;  %v4528_v25 = vcombine.high %v4520_v10, %v4520_v10  ;;  %v4749_v1 = vcombine.low %v4512_v49, %v4520_v10  ;;  %v4537_v53 = vrot.slane %v10765_v35, %v10446_v30 }
 0x2cb   : > { %v3042_v11 = vrot.slane %v3028_v33, %v9710_v36  ;;  %v3077_v13 = vcombine.low %v3068_v15, %v3075_v54  ;;  %v4529_v38 = vcombine.high %v4527_v47, %v4527_v47  ;;  %v4544_v29 = vrot.slane %v4530_v27, %v10446_v30 }
 0x2cc   : > { %v3084_v45 = vrot.slane %v3076_v55, %v9710_v36  ;;  %v4763_v58 = vrot.slane %v4749_v1, %v10446_v30  ;;  %v4765_v62 = vcombine.low %v4528_v25, %v4527_v47  ;;  %v4545_v4 = vcombine.high %v4537_v53, %v4537_v53 }
 0x2cd   : > { %v3043_v49 = vcombine.low %v10795_v17, %v3042_v11  ;;  %v3091_v35 = vrot.slane %v3077_v13, %v9710_v36  ;;  %v4779_v57 = vrot.slane %v4529_v38, %v10446_v30  ;;  %v4546_v5 = vcombine.high %v4544_v29, %v4544_v29 }
 0x2ce   : > { %v4764_v52 = vcombine.low %v4756_v21, %v4763_v58  ;;  %v4772_v54 = vrot.slane %v4765_v62, %v10446_v30  ;;  %v4781_v51 = vcombine.low %v4537_v53, %v4545_v4  ;;  %v2510_v20 = vcombine.high %v10798_v3, %v10798_v3 }
 0x2cf   : > { %v3092_v41 = vcombine.low %v3084_v45, %v3091_v35  ;;  %v3384_v34 = vsel %vm3351_vm5, %v3043_v49, -inf  ;;  %v4782_v8 = vcombine.low %v4544_v29, %v4546_v5  ;;  %v2517_v17 = vrot.slane %v10798_v3, %v9710_v36  ;;  %v10883_v3 = vpop.f32.mrb[26].mxu1 }
 0x2d0   : > { %v3385_v26 = vmax.f32 %v2995_v46, %v3384_v34  ;;  %v4780_v21 = vcombine.low %v4772_v54, %v4779_v57  ;;  %v4789_v31 = vrot.slane %v4781_v51, %v10446_v30  ;;  %v2524_v48 = vrot.slane %v2510_v20, %v9710_v36  ;;  %v8591_v46 = vpop.f32.mrb[27].mxu1 }
 0x2d1   : > { %v3393_v19 = vmax.f32 %v3092_v41, %v3392_v18  ;;  %v4796_v16 = vrot.slane %v4782_v8, %v10446_v30  ;;  %v2525_v44 = vcombine.high %v2517_v17, %v2517_v17  ;;  %v10881_v39 = vrot.slane %v2517_v17, %v9710_v36  ;;  %v10897_v57 = vpop.f32.mrb[28].mxu1 }
 0x2d2   : > { %v3386_v10 = vrot.slane %v3385_v26, 4  ;;  %v4954_v6 = vsel %vm4929_vm4, %v4780_v21, -inf  ;;  %v2526_v37 = vcombine.high %v2524_v48, %v2524_v48  ;;  %v2540_v2 = vrot.slane %v2524_v48, %v9710_v36  ;;  %v8650_v20 = vpop.f32.mrb[29].mxu1 }
 0x2d3   : > { %v3394_v33 = vrot.slane %v3393_v19, 4  ;;  %v4955_v15 = vmax.f32 %v4764_v52, %v4954_v6  ;;  %v10887_v47 = vcombine.low %v4789_v31, %v4796_v16  ;;  %v2547_v18 = vrot.slane %v2525_v44, %v9710_v36 }
 0x2d4   : > { %v3387_v27 = vmax.f32 %v3385_v26, %v3386_v10  ;;  %v2554_v55 = vrot.slane %v2526_v37, %v9710_v36  ;;  %v2555_v25 = vcombine.high %v10881_v39, %v10881_v39  ;;  %v2556_v1 = vcombine.high %v2540_v2, %v2540_v2  ;;  %v10906_v26 = vpop.f32.mrb[30].mxu1 }
 0x2d5   : > { %v3395_v53 = vmax.f32 %v3393_v19, %v3394_v33  ;;  %v4956_v43 = vrot.slane %v4955_v15, 4  ;;  %v2557_v11 = vcombine.high %v2547_v18, %v2547_v18  ;;  %v2412_v13 = vcombine.high %v10804_v24, %v10804_v24  ;;  %v8651_v61 = vpop.f32.mrb[31].mxu1 }
 0x2d6   : > { %v3388_v38 = vrot.slane %v3387_v27, 2  ;;  %v2558_v29 = vcombine.high %v2554_v55, %v2554_v55  ;;  %v3287_v45 = vcombine.low %v2547_v18, %v2555_v25  ;;  %v3289_v58 = vcombine.low %v2554_v55, %v2556_v1 }
 0x2d7   : > { %v3396_v62 = vrot.slane %v3395_v53, 2  ;;  %v4957_v4 = vmax.f32 %v4955_v15, %v4956_v43  ;;  %v3288_v49 = vcombine.low %v2557_v11, %v2540_v2  ;;  %v2419_v35 = vrot.slane %v10804_v24, %v9710_v36 }
 0x2d8   : > { %v3389_v5 = vmax.f32 %v3387_v27, %v3388_v38  ;;  %v3296_v52 = vrot.slane %v3287_v45, %v9710_v36  ;;  %v3310_v54 = vrot.slane %v3289_v58, %v9710_v36  ;;  %v3317_v51 = vrot.slane %v2558_v29, %v9710_v36  ;;  %v10923_v29 = vpop.f32.mrb[32].mxu1 }
 0x2d9   : > { %v10902_v41 = vmax.f32 %v3395_v53, %v3396_v62  ;;  %v4958_v34 = vrot.slane %v4957_v4, 2  ;;  %v3303_v8 = vrot.slane %v3288_v49, %v9710_v36  ;;  %v2426_v17 = vrot.slane %v2412_v13, %v9710_v36 }
 0x2da   : > { %v3390_v24 = vrot.slane %v3389_v5, 1  ;;  %v3319_v21 = vcombine.low %v3310_v54, %v3317_v51  ;;  %v2427_v31 = vcombine.high %v2419_v35, %v2419_v35  ;;  %v2435_v48 = vrot.slane %v2419_v35, %v9710_v36 }
 0x2db   : > { %v4959_v19 = vmax.f32 %v4957_v4, %v4958_v34  ;;  %v3318_v16 = vcombine.low %v3296_v52, %v3303_v8  ;;  %v2428_v44 = vcombine.high %v2426_v17, %v2426_v17  ;;  %v2442_v10 = vrot.slane %v2426_v17, %v9710_v36 }
 0x2dc   : > { %v10910_v6 = vmax.f32 %v3389_v5, %v3390_v24  ;;  %v3333_v37 = vrot.slane %v3319_v21, %v9710_v36  ;;  %v2449_v2 = vrot.slane %v2427_v31, %v9710_v36  ;;  %v2461_v46 = vcombine.high %v10811_v22, %v10811_v22 }
 0x2dd   : > { %v4960_v33 = vrot.slane %v4959_v19, 1  ;;  %v3326_v15 = vrot.slane %v3318_v16, %v9710_v36  ;;  %v2456_v18 = vrot.slane %v2428_v44, %v9710_v36  ;;  %v2468_v27 = vrot.slane %v10811_v22, %v9710_v36  ;;  %v8654_v22 = vpop.f32.mrb[33].mxu1 }
 0x2de   : > { %v3144_v55 = vcombine.low %v2435_v48, %v2449_v2  ;;  %v8340_v25 = vcombine.high %v2435_v48, %v2449_v2  ;;  %v2475_v1 = vrot.slane %v2461_v46, %v9710_v36  ;;  %v4547_v53 = vcombine.high %v10806_v32, %v10806_v32  ;;  %v10933_v54 = vpop.f32.mrb[34].mxu1 }
 0x2df   : > { %v4961_v43 = vmax.f32 %v4959_v19, %v4960_v33  ;;  %v3334_v11 = vcombine.low %v3326_v15, %v3333_v37  ;;  %v3191_v13 = vcombine.low %v2442_v10, %v2456_v18  ;;  %v8341_v38 = vcombine.high %v2442_v10, %v2456_v18  ;;  %v8655_v17 = vpop.f32.mrb[35].mxu1 }
 0x2e0   : > { %v3172_v45 = vrot.slane %v3144_v55, %v9710_v36  ;;  %v3199_v58 = vrot.slane %v8340_v25, %v9710_v36  ;;  %v2476_v62 = vcombine.high %v2468_v27, %v2468_v27  ;;  %v2477_v4 = vcombine.high %v2475_v1, %v2475_v1 }
 0x2e1   : > { %v5004_v49 = vadd.f32 %v10522_v50, %v4961_v43  ;;  %v10929_v35 = vsel %vm3351_vm5, %v3334_v11, -inf  ;;  %v3206_v5 = vrot.slane %v3191_v13, %v9710_v36  ;;  %v2484_v52 = vrot.slane %v2468_v27, %v9710_v36 }
 0x2e2   : > { %v3174_v51 = vcombine.low %v10819_v63, %v3172_v45  ;;  %v2491_v20 = vrot.slane %v2475_v1, %v9710_v36  ;;  %v2498_v34 = vrot.slane %v2476_v62, %v9710_v36  ;;  %v2505_v8 = vrot.slane %v2477_v4, %v9710_v36  ;;  %v10948_v1 = vpop.f32.mrb[36].mxu1 }
 0x2e3   : > { %v5012_v24 = vmax.f32 %v5004_v49, 0.0  ;;  %v3221_v50 = vcombine.low %v3199_v58, %v3206_v5  ;;  %v2506_v21 = vcombine.high %v2484_v52, %v2484_v52  ;;  %v3213_v31 = vrot.slane %v8341_v38, %v9710_v36  ;;  %v8658_v38 = vpop.f32.mrb[37].mxu1 }
 0x2e4   : > { %v3188_v48 = vrot.slane %v3174_v51, %v9710_v36  ;;  %v2507_v61 = vcombine.high %v2491_v20, %v2491_v20  ;;  %v2508_v19 = vcombine.high %v2498_v34, %v2498_v34  ;;  %v2509_v16 = vcombine.high %v2505_v8, %v2505_v8 }
 0x2e5   : > { %v5020_v44 = vpack.c.bf16 %v5012_v24, %v5012_v24  ;;  %v3229_v63 = vrot.slane %v3221_v50, %v9710_v36  ;;  %v3220_v10 = vrot.slane %v2484_v52, %v9710_v36  ;;  %v3238_v37 = vcombine.low %v2498_v34, %v2506_v21 }
 0x2e6   : > { %v3189_v2 = vcombine.low %v10829_v23, %v3188_v48  ;;  %v3239_v46 = vcombine.low %v2508_v19, %v2491_v20  ;;  %v3240_v33 = vcombine.low %v2505_v8, %v2507_v61  ;;  %v3241_v15 = vcombine.low %v2509_v16, %v10881_v39 }
 0x2e7   : > { %v5052_v18 = vunpack.c.l.b16 %v5020_v44  ;;  %v3222_v27 = vcombine.low %v3213_v31, %v3220_v10  ;;  %v3248_v55 = vrot.slane %v3238_v37, %v9710_v36  ;;  %v4554_v25 = vrot.slane %v10806_v32, %v10446_v30  ;;  %v10959_v32 = vpop.f32.mrb[38].mxu1 }
 0x2e8   : > { %v3255_v43 = vrot.slane %v3239_v46, %v9710_v36  ;;  %v3262_v11 = vrot.slane %v3240_v33, %v9710_v36  ;;  %v3269_v13 = vrot.slane %v3241_v15, %v9710_v36  ;;  %v4561_v23 = vrot.slane %v4547_v53, %v10446_v30  ;;  %v8659_v52 = vpop.f32.mrb[39].mxu1 }
 0x2e9   : > { %v10954_v45 = vrot.slane %v5052_v18, 5  ;;  %v3236_v39 = vrot.slane %v3222_v27, %v9710_v36  ;;  %v4562_v58 = vcombine.high %v4554_v25, %v4554_v25  ;;  %v4564_v62 = vcombine.high %v10813_v0, %v10813_v0  ;;  %v10975_v33 = vpop.f32.mrb[40].mxu1 }
 0x2ea   : > { %v3270_v4 = vcombine.low %v3248_v55, %v3255_v43  ;;  %v3271_v22 = vcombine.low %v3262_v11, %v3269_v13  ;;  %v4812_v49 = vrot.slane %v4561_v23, %v10446_v30  ;;  %v4563_v5 = vcombine.high %v4561_v23, %v4561_v23  ;;  %v8662_v55 = vpop.f32.mrb[41].mxu1 }
 0x2eb   : > { %v3237_v51 = vcombine.low %v3229_v63, %v3236_v39  ;;  %v4798_v20 = vcombine.low %v4554_v25, %v4562_v58  ;;  %v4571_v53 = vrot.slane %v10813_v0, %v10446_v30  ;;  %v4578_v34 = vrot.slane %v4564_v62, %v10446_v30  ;;  %v10983_v13 = vpop.f32.mrb[42].mxu1 }
 0x2ec   : > { %v3278_v8 = vrot.slane %v3270_v4, %v9710_v36  ;;  %v3285_v17 = vrot.slane %v3271_v22, %v9710_v36  ;;  %v4581_v24 = vcombine.high %v10835_v28, %v10835_v28  ;;  %v4588_v50 = vrot.slane %v10835_v28, %v10446_v30  ;;  %v8663_v58 = vpop.f32.mrb[43].mxu1 }
 0x2ed   : > { %v3400_v21 = vsel %vm3351_vm5, %v3237_v51, -inf  ;;  %v4805_v31 = vrot.slane %v4798_v20, %v10446_v30  ;;  %v4579_v48 = vcombine.high %v4571_v53, %v4571_v53  ;;  %v4814_v61 = vcombine.low %v4563_v5, %v4571_v53 }
 0x2ee   : > { %v3286_v19 = vcombine.low %v3278_v8, %v3285_v17  ;;  %v3401_v0 = vmax.f32 %v3189_v2, %v3400_v21  ;;  %v4580_v16 = vcombine.high %v4578_v34, %v4578_v34  ;;  %v4595_v44 = vrot.slane %v4581_v24, %v10446_v30 }
 0x2ef   : > { %v4813_v63 = vcombine.low %v4805_v31, %v4812_v49  ;;  %v4815_v10 = vcombine.low %v4579_v48, %v4578_v34  ;;  %v4822_v37 = vrot.slane %v4814_v61, %v10446_v30  ;;  %v4596_v46 = vcombine.high %v4588_v50, %v4588_v50 }
 0x2f0   : > { %v3402_v15 = vrot.slane %v3401_v0, 4  ;;  %v3409_v28 = vmax.f32 %v3286_v19, %v10929_v35  ;;  %v4597_v18 = vcombine.high %v4595_v44, %v4595_v44  ;;  %v4831_v27 = vcombine.low %v4580_v16, %v4588_v50  ;;  %v11001_v19 = vpop.f32.mrb[44].mxu1 }
 0x2f1   : > { %v4962_v25 = vsel %vm4929_vm4, %v4813_v63, -inf  ;;  %v4829_v2 = vrot.slane %v4815_v10, %v10446_v30  ;;  %v4845_v43 = vrot.slane %v4596_v46, %v10446_v30  ;;  %v4598_v11 = vcombine.high %v10846_v12, %v10846_v12  ;;  %v8666_v10 = vpop.f32.mrb[45].mxu1 }
 0x2f2   : > { %v3403_v23 = vmax.f32 %v3401_v0, %v3402_v15  ;;  %v3410_v38 = vrot.slane %v3409_v28, 4  ;;  %v4963_v39 = vmax.f32 %v10887_v47, %v4962_v25  ;;  %v4838_v35 = vrot.slane %v4831_v27, %v10446_v30 }
 0x2f3   : > { %v4830_v62 = vcombine.low %v4822_v37, %v4829_v2  ;;  %v4847_v4 = vcombine.low %v4595_v44, %v4597_v18  ;;  %v4605_v22 = vrot.slane %v10846_v12, %v10446_v30  ;;  %v4612_v49 = vrot.slane %v4598_v11, %v10446_v30 }
 0x2f4   : > { %v3404_v5 = vrot.slane %v3403_v23, 2  ;;  %v10990_v52 = vmax.f32 %v3409_v28, %v3410_v38  ;;  %v4964_v51 = vrot.slane %v4963_v39, 4  ;;  %v4846_v20 = vcombine.low %v4838_v35, %v4845_v43  ;;  %v11008_v28 = vpop.f32.mrb[46].mxu1 }
 0x2f5   : > { %v4855_v53 = vrot.slane %v4847_v4, %v10446_v30  ;;  %v4613_v34 = vcombine.high %v4605_v22, %v4605_v22  ;;  %v4614_v8 = vcombine.high %v4612_v49, %v4612_v49  ;;  %v4615_v47 = vcombine.high %v10872_v9, %v10872_v9  ;;  %v8667_v2 = vpop.f32.mrb[47].mxu1 }
 0x2f6   : > { %v10995_v17 = vmax.f32 %v3403_v23, %v3404_v5  ;;  %v4965_v24 = vmax.f32 %v4963_v39, %v4964_v51  ;;  %v4970_v50 = vsel %vm4929_vm4, %v4846_v20, -inf  ;;  %v4622_v12 = vrot.slane %v10872_v9, %v10446_v30 }
 0x2f7   : > { %v4971_v21 = vmax.f32 %v4830_v62, %v4970_v50  ;;  %v4848_v31 = vcombine.low %v4605_v22, %v4613_v34  ;;  %v4864_v48 = vcombine.low %v4612_v49, %v4614_v8  ;;  %v4629_v61 = vrot.slane %v4615_v47, %v10446_v30 }
 0x2f8   : > { %v4966_v0 = vrot.slane %v4965_v24, 2  ;;  %v4630_v16 = vcombine.high %v4622_v12, %v4622_v12  ;;  %v4878_v44 = vrot.slane %v4622_v12, %v10446_v30  ;;  %v4632_v63 = vcombine.high %v10883_v3, %v10883_v3  ;;  %v11022_v50 = vpop.f32.mrb[48].mxu1  ;;  %v11027_v12 = vld [vmem:[%s11436_s5] ss:$0 sm:$0xff] }
 0x2f9   : > { %v4972_v37 = vrot.slane %v4971_v21, 4  ;;  %v4862_v46 = vrot.slane %v4848_v31, %v10446_v30  ;;  %v4871_v9 = vrot.slane %v4864_v48, %v10446_v30  ;;  %v4631_v15 = vcombine.high %v4629_v61, %v4629_v61 }
 0x2fa   : > { %v4967_v18 = vmax.f32 %v4965_v24, %v4966_v0  ;;  %v4880_v27 = vcombine.low %v4630_v16, %v4629_v61  ;;  %v4639_v55 = vrot.slane %v10883_v3, %v10446_v30  ;;  %v4646_v25 = vrot.slane %v4632_v63, %v10446_v30  ;;  %v8670_v61 = vpop.f32.mrb[49].mxu1 }
 0x2fb   : > { %v4973_v43 = vmax.f32 %v4971_v21, %v4972_v37  ;;  %v4863_v11 = vcombine.low %v4855_v53, %v4862_v46  ;;  %v4879_v23 = vcombine.low %v4871_v9, %v4878_v44  ;;  %v6382_v38 = vcombine.high %v10897_v57, %v10897_v57  ;;  %v11033_v10 = vpop.f32.mrb[50].mxu1 }
 0x2fc   : > { %v4968_v39 = vrot.slane %v4967_v18, 1  ;;  %v4888_v35 = vrot.slane %v4880_v27, %v10446_v30  ;;  %v4647_v58 = vcombine.high %v4639_v55, %v4639_v55  ;;  %v4648_v62 = vcombine.high %v4646_v25, %v4646_v25 }
 0x2fd   : > { %v4974_v4 = vrot.slane %v4973_v43, 2  ;;  %v4978_v22 = vsel %vm4929_vm4, %v4879_v23, -inf  ;;  %v4881_v49 = vcombine.low %v4631_v15, %v4639_v55  ;;  %v6389_v3 = vrot.slane %v10897_v57, %v9710_v36 }
 0x2fe   : > { %v4969_v5 = vmax.f32 %v4967_v18, %v4968_v39  ;;  %v4979_v51 = vmax.f32 %v4863_v11, %v4978_v22  ;;  %v4897_v20 = vcombine.low %v4647_v58, %v4646_v25  ;;  %v4911_v53 = vrot.slane %v4648_v62, %v10446_v30  ;;  %v8671_v18 = vpop.f32.mrb[51].mxu1 }
 0x2ff   : > { %v4975_v34 = vmax.f32 %v4973_v43, %v4974_v4  ;;  %v4895_v8 = vrot.slane %v4881_v49, %v10446_v30  ;;  %v6396_v47 = vrot.slane %v6382_v38, %v9710_v36  ;;  %v6397_v24 = vcombine.high %v6389_v3, %v6389_v3 }
 0x300   : > { %v5005_v57 = vadd.f32 %v11027_v12, %v4969_v5  ;;  %v4980_v21 = vrot.slane %v4979_v51, 4  ;;  %v4904_v31 = vrot.slane %v4897_v20, %v10446_v30  ;;  %v6405_v48 = vrot.slane %v6389_v3, %v9710_v36  ;;  %v11046_v20 = vpop.f32.mrb[52].mxu1 }
 0x301   : > { %v4976_v0 = vrot.slane %v4975_v34, 1  ;;  %v4896_v16 = vcombine.low %v4888_v35, %v4895_v8  ;;  %v6398_v44 = vcombine.high %v6396_v47, %v6396_v47  ;;  %v6412_v63 = vrot.slane %v6396_v47, %v9710_v36 }
 0x302   : > { %v5013_v37 = vmax.f32 %v5005_v57, 0.0  ;;  %v4981_v46 = vmax.f32 %v4979_v51, %v4980_v21  ;;  %v4912_v9 = vcombine.low %v4904_v31, %v4911_v53  ;;  %v6419_v15 = vrot.slane %v6397_v24, %v9710_v36  ;;  %v8674_v24 = vpop.f32.mrb[53].mxu1 }
 0x303   : > { %v4977_v27 = vmax.f32 %v4975_v34, %v4976_v0  ;;  %v6426_v55 = vrot.slane %v6398_v44, %v9710_v36  ;;  %v6431_v30 = vcombine.high %v10906_v26, %v10906_v26  ;;  %v6438_v25 = vrot.slane %v10906_v26, %v9710_v36  ;;  %v6366_v61 = vpop.f32.mrb[54].mxu1 }
 0x304   : > { %v5021_v2 = vpack.c.bf16 %v5013_v37, %v5013_v37  ;;  %v4982_v43 = vrot.slane %v4981_v46, 2  ;;  %v4986_v11 = vsel %vm4929_vm4, %v4912_v9, -inf  ;;  %v7019_v23 = vcombine.low %v6405_v48, %v6419_v15  ;;  %v8675_v37 = vpop.f32.mrb[55].mxu1 }
 0x305   : > { %v5006_v38 = vadd.f32 %v11027_v12, %v4977_v27  ;;  %v4987_v39 = vmax.f32 %v4896_v16, %v4986_v11  ;;  %v8415_v35 = vcombine.high %v6405_v48, %v6419_v15  ;;  %v7021_v58 = vcombine.low %v6412_v63, %v6426_v55 }
 0x306   : > { %v5053_v62 = vunpack.c.l.b16 %v5021_v2  ;;  %v4983_v4 = vmax.f32 %v4981_v46, %v4982_v43  ;;  %v8416_v22 = vcombine.high %v6412_v63, %v6426_v55  ;;  %v7029_v49 = vrot.slane %v7019_v23, %v9710_v36 }
 0x307   : > { %v5014_v3 = vmax.f32 %v5006_v38, 0.0  ;;  %v4988_v5 = vrot.slane %v4987_v39, 4  ;;  %v7036_v51 = vrot.slane %v8415_v35, %v9710_v36  ;;  %v7043_v26 = vrot.slane %v7021_v58, %v9710_v36 }
 0x308   : > { %v11048_v53 = vrot.slane %v5053_v62, 4  ;;  %v4984_v34 = vrot.slane %v4983_v4, 1  ;;  %v7050_v8 = vrot.slane %v8416_v22, %v9710_v36  ;;  %v6445_v47 = vrot.slane %v6431_v30, %v9710_v36 }
 0x309   : > { %v5022_v57 = vpack.c.bf16 %v5014_v3, %v5014_v3  ;;  %v4989_v21 = vmax.f32 %v4987_v39, %v4988_v5  ;;  %v7051_v31 = vcombine.low %v7029_v49, %v7036_v51  ;;  %v6446_v48 = vcombine.high %v6438_v25, %v6438_v25 }
 0x30a   : > { %v4985_v0 = vmax.f32 %v4983_v4, %v4984_v34  ;;  %v7052_v16 = vcombine.low %v7043_v26, %v7050_v8  ;;  %v6447_v44 = vcombine.high %v6445_v47, %v6445_v47  ;;  %v6454_v63 = vrot.slane %v6438_v25, %v9710_v36 }
 0x30b   : > { %v5054_v46 = vunpack.c.l.b16 %v5022_v57  ;;  %v4990_v9 = vrot.slane %v4989_v21, 2  ;;  %v7059_v15 = vrot.slane %v7051_v31, %v9710_v36  ;;  %v6461_v18 = vrot.slane %v6445_v47, %v9710_v36 }
 0x30c   : > { %v5007_v27 = vadd.f32 %v11027_v12, %v4985_v0  ;;  %v7066_v55 = vrot.slane %v7052_v16, %v9710_v36  ;;  %v6468_v30 = vrot.slane %v6446_v48, %v9710_v36  ;;  %v6475_v2 = vrot.slane %v6447_v44, %v9710_v36 }
 0x30d   : > { %v11059_v43 = vrot.slane %v5054_v46, 3  ;;  %v4991_v11 = vmax.f32 %v4989_v21, %v4990_v9  ;;  %v6477_v23 = vcombine.high %v6461_v18, %v6461_v18  ;;  %v7090_v25 = vrot.slane %v6461_v18, %v9710_v36 }
 0x30e   : > { %v5015_v38 = vmax.f32 %v5007_v27, 0.0  ;;  %v7067_v39 = vcombine.low %v7059_v15, %v7066_v55  ;;  %v7068_v35 = vcombine.low %v6454_v63, %v6468_v30  ;;  %v8417_v58 = vcombine.high %v6454_v63, %v6468_v30 }
 0x30f   : > { %v4992_v62 = vrot.slane %v4991_v11, 1  ;;  %v7105_v4 = vrot.slane %v7090_v25, %v9710_v36  ;;  %v7107_v22 = vcombine.low %v6475_v2, %v6477_v23  ;;  %v6479_v49 = vcombine.high %v6475_v2, %v6475_v2 }
 0x310   : > { %v5023_v3 = vpack.c.bf16 %v5015_v38, %v5015_v38  ;;  %v7076_v5 = vrot.slane %v7068_v35, %v9710_v36  ;;  %v7083_v51 = vrot.slane %v8417_v58, %v9710_v36  ;;  %v6480_v26 = vcombine.high %v10923_v29, %v10923_v29 }
 0x311   : > { %v4993_v34 = vmax.f32 %v4991_v11, %v4992_v62  ;;  %v6487_v8 = vrot.slane %v10923_v29, %v9710_v36  ;;  %v7117_v47 = vrot.slane %v7107_v22, %v9710_v36  ;;  %v6529_v24 = vcombine.high %v10933_v54, %v10933_v54 }
 0x312   : > { %v5055_v57 = vunpack.c.l.b16 %v5023_v3  ;;  %v7091_v21 = vcombine.low %v7076_v5, %v7083_v51  ;;  %v6494_v31 = vrot.slane %v6480_v26, %v9710_v36  ;;  %v6536_v48 = vrot.slane %v10933_v54, %v9710_v36 }
 0x313   : > { %v11076_v61 = vadd.f32 %v11027_v12, %v4993_v34  ;;  %v6495_v0 = vcombine.high %v6487_v8, %v6487_v8  ;;  %v6503_v16 = vrot.slane %v6487_v8, %v9710_v36  ;;  %v6543_v29 = vrot.slane %v6529_v24, %v9710_v36 }
 0x314   : > { %v11080_v44 = vrot.slane %v5055_v57, 2  ;;  %v7098_v63 = vrot.slane %v7091_v21, %v9710_v36  ;;  %v6496_v37 = vcombine.high %v6494_v31, %v6494_v31  ;;  %v6510_v46 = vrot.slane %v6494_v31, %v9710_v36 }
 0x315   : > { %v6517_v9 = vrot.slane %v6495_v0, %v9710_v36  ;;  %v6525_v15 = vcombine.high %v6503_v16, %v6503_v16  ;;  %v7108_v18 = vcombine.low %v6479_v49, %v6503_v16  ;;  %v6544_v54 = vcombine.high %v6536_v48, %v6536_v48 }
 0x316   : > { %v7106_v27 = vcombine.low %v7098_v63, %v7105_v4  ;;  %v6524_v12 = vrot.slane %v6496_v37, %v9710_v36  ;;  %v6526_v55 = vcombine.high %v6510_v46, %v6510_v46  ;;  %v6545_v30 = vcombine.high %v6543_v29, %v6543_v29 }
 0x317   : > { %v6527_v2 = vcombine.high %v6517_v9, %v6517_v9  ;;  %v7109_v11 = vcombine.low %v6517_v9, %v6525_v15  ;;  %v7124_v23 = vrot.slane %v7108_v18, %v9710_v36  ;;  %v6552_v25 = vrot.slane %v6536_v48, %v9710_v36 }
 0x318   : > { %v7740_v38 = vsel %vm7739_vm8, %v7106_v27, -inf  ;;  %v7156_v35 = vcombine.low %v6524_v12, %v6526_v55  ;;  %v6528_v58 = vcombine.high %v6524_v12, %v6524_v12  ;;  %v6559_v62 = vrot.slane %v6543_v29, %v9710_v36 }
 0x319   : > { %v7741_v22 = vmax.f32 %v7067_v39, %v7740_v38  ;;  %v7110_v49 = vcombine.low %v6527_v2, %v6510_v46  ;;  %v7131_v4 = vrot.slane %v7109_v11, %v9710_v36  ;;  %v7139_v3 = vcombine.low %v7117_v47, %v7124_v23 }
 0x31a   : > { %v6566_v5 = vrot.slane %v6544_v54, %v9710_v36  ;;  %v6573_v51 = vrot.slane %v6545_v30, %v9710_v36  ;;  %v7157_v26 = vcombine.low %v6528_v58, %v6552_v25  ;;  %v7164_v34 = vrot.slane %v7156_v35, %v9710_v36 }
 0x31b   : > { %v7742_v8 = vrot.slane %v7741_v22, 4  ;;  %v7138_v24 = vrot.slane %v7110_v49, %v9710_v36  ;;  %v7147_v57 = vrot.slane %v7139_v3, %v9710_v36  ;;  %v6578_v21 = vcombine.high %v10948_v1, %v10948_v1 }
 0x31c   : > { %v7171_v39 = vrot.slane %v7157_v26, %v9710_v36  ;;  %v7178_v31 = vrot.slane %v6566_v5, %v9710_v36  ;;  %v8418_v47 = vcombine.high %v6552_v25, %v6566_v5  ;;  %v7196_v48 = vcombine.low %v6559_v62, %v6573_v51 }
 0x31d   : > { %v7743_v0 = vmax.f32 %v7741_v22, %v7742_v8  ;;  %v7140_v16 = vcombine.low %v7131_v4, %v7138_v24  ;;  %v8419_v29 = vcombine.high %v6559_v62, %v6573_v51  ;;  %v6585_v63 = vrot.slane %v10948_v1, %v9710_v36  ;;  %v11121_v51 = vld [vmem:[%s11491_s21] ss:$0 sm:$0xff]  ;;  %s8113_s21 = sshll.u32 %s561_s29, 4  ;;  %s11389_s21 = int_to_ptr.vmem [resolvable:$true] %s8113_s21 }
 0x31e   : > { %v7179_v37 = vcombine.low %v7164_v34, %v7171_v39  ;;  %v7193_v46 = vrot.slane %v7178_v31, %v9710_v36  ;;  %v7205_v9 = vrot.slane %v8418_v47, %v9710_v36  ;;  %v7212_v15 = vrot.slane %v7196_v48, %v9710_v36  ;;  %s9132_s18 = scalar_lea.vmem %s11389_s21, 128  ;;  %p9139_p2 = scmp.lt.s32.totalorder %s11389_s21, %s9137_s1 }
 0x31f   : > { %v7744_v18 = vrot.slane %v7743_v0, 2  ;;  %v7154_v54 = vrot.slane %v7140_v16, %v9710_v36  ;;  %v7219_v27 = vrot.slane %v8419_v29, %v9710_v36  ;;  %v6592_v12 = vrot.slane %v6578_v21, %v9710_v36  ;;  %p9133_p12 = scmp.ne.s32.totalorder %s11389_s21, %s9132_s18 }
 0x320   : > { %v7186_v55 = vrot.slane %v7179_v37, %v9710_v36  ;;  %v7227_v30 = vcombine.low %v7205_v9, %v7212_v15  ;;  %v6593_v2 = vcombine.high %v6585_v63, %v6585_v63  ;;  %v6601_v1 = vrot.slane %v6585_v63, %v9710_v36 }
 0x321   : > { %v7745_v11 = vmax.f32 %v7743_v0, %v7744_v18  ;;  %v7155_v23 = vcombine.low %v7147_v57, %v7154_v54  ;;  %v6594_v25 = vcombine.high %v6592_v12, %v6592_v12  ;;  %v6608_v38 = vrot.slane %v6592_v12, %v9710_v36  ;;  %p9134_p13 = pnand %p9133_p12, %p11495_p1 }
 0x322   : > { %v7194_v35 = vcombine.low %v7186_v55, %v7193_v46  ;;  %v7235_v58 = vrot.slane %v7227_v30, %v9710_v36  ;;  %v6615_v62 = vrot.slane %v6593_v2, %v9710_v36  ;;  %v6627_v22 = vcombine.high %v10959_v32, %v10959_v32 }
 0x323   : > { %v7746_v49 = vrot.slane %v7745_v11, 1  ;;  %v6622_v4 = vrot.slane %v6594_v25, %v9710_v36  ;;  %v6624_v3 = vcombine.high %v6608_v38, %v6608_v38  ;;  %v6634_v5 = vrot.slane %v10959_v32, %v9710_v36  ;;  %p9135_p0 = pneg %p9134_p13 }
 0x324   : > { %v7748_v26 = vsel %vm7739_vm8, %v7194_v35, -inf  ;;  %v7198_v34 = vcombine.low %v6601_v1, %v6615_v62  ;;  %v8420_v8 = vcombine.high %v6601_v1, %v6615_v62  ;;  %v6641_v24 = vrot.slane %v6627_v22, %v9710_v36 }
 0x325   : > { %v7747_v57 = vmax.f32 %v7745_v11, %v7746_v49  ;;  %v7749_v21 = vmax.f32 %v7155_v23, %v7748_v26  ;;  %v7245_v39 = vcombine.low %v6608_v38, %v6622_v4  ;;  %v7266_v31 = vrot.slane %v6624_v3, %v9710_v36 }
 0x326   : > { %v7226_v47 = vrot.slane %v7198_v34, %v9710_v36  ;;  %v7252_v32 = vrot.slane %v8420_v8, %v9710_v36  ;;  %v6626_v48 = vcombine.high %v6622_v4, %v6622_v4  ;;  %v6642_v0 = vcombine.high %v6634_v5, %v6634_v5 }
 0x327   : > { %v7811_v16 = vadd.f32 %v11121_v51, %v7747_v57  ;;  %v7750_v29 = vrot.slane %v7749_v21, 4  ;;  %v7259_v63 = vrot.slane %v7245_v39, %v9710_v36  ;;  %v7281_v37 = vrot.slane %v7266_v31, %v9710_v36 }
 0x328   : > { %v7228_v46 = vcombine.low %v7219_v27, %v7226_v47  ;;  %v6643_v9 = vcombine.high %v6641_v24, %v6641_v24  ;;  %v6650_v15 = vrot.slane %v6634_v5, %v9710_v36  ;;  %v6657_v18 = vrot.slane %v6641_v24, %v9710_v36 }
 0x329   : > { %v7819_v54 = vmax.f32 %v7811_v16, 0.0  ;;  %v7751_v12 = vmax.f32 %v7749_v21, %v7750_v29  ;;  %v7267_v55 = vcombine.low %v7252_v32, %v7259_v63  ;;  %v6664_v30 = vrot.slane %v6642_v0, %v9710_v36 }
 0x32a   : > { %v7242_v2 = vrot.slane %v7228_v46, %v9710_v36  ;;  %v6671_v1 = vrot.slane %v6643_v9, %v9710_v36  ;;  %v6672_v11 = vcombine.high %v6650_v15, %v6650_v15  ;;  %v6673_v23 = vcombine.high %v6657_v18, %v6657_v18 }
 0x32b   : > { %v11136_v25 = vpack.c.bf16 %v7819_v54, %v7819_v54  ;;  %v7752_v38 = vrot.slane %v7751_v12, 2  ;;  %v7274_v27 = vrot.slane %v7267_v55, %v9710_v36  ;;  %v6674_v35 = vcombine.high %v6664_v30, %v6664_v30 }
 0x32c   : > { %v7243_v62 = vcombine.low %v7235_v58, %v7242_v2  ;;  %v7283_v22 = vcombine.low %v6626_v48, %v6650_v15  ;;  %v7284_v49 = vcombine.low %v6664_v30, %v6672_v11  ;;  %v7286_v4 = vcombine.low %v6671_v1, %v6673_v23 }
 0x32d   : > { %v7859_v3 = vunpack.c.l.b16 %v11136_v25  ;;  %v7753_v5 = vmax.f32 %v7751_v12, %v7752_v38  ;;  %v7282_v26 = vcombine.low %v7274_v27, %v7281_v37  ;;  %v7285_v34 = vcombine.low %v6674_v35, %v6657_v18 }
 0x32e   : > { %v7293_v8 = vrot.slane %v7283_v22, %v9710_v36  ;;  %v7300_v24 = vrot.slane %v7284_v49, %v9710_v36  ;;  %v7314_v57 = vrot.slane %v7286_v4, %v9710_v36  ;;  %v6675_v21 = vcombine.high %v6671_v1, %v6671_v1 }
 0x32f   : > { %v7754_v39 = vrot.slane %v7753_v5, 1  ;;  %v7756_v31 = vsel %vm7739_vm8, %v7282_v26, -inf  ;;  %v7307_v58 = vrot.slane %v7285_v34, %v9710_v36  ;;  %v6676_v47 = vcombine.high %v10975_v33, %v10975_v33 }
 0x330   : > { %v7757_v32 = vmax.f32 %v7243_v62, %v7756_v31  ;;  %v7315_v48 = vcombine.low %v7293_v8, %v7300_v24  ;;  %v6683_v0 = vrot.slane %v10975_v33, %v9710_v36  ;;  %v6725_v16 = vcombine.high %v10983_v13, %v10983_v13 }
 0x331   : > { %v7755_v29 = vmax.f32 %v7753_v5, %v7754_v39  ;;  %v7316_v63 = vcombine.low %v7307_v58, %v7314_v57  ;;  %v6690_v37 = vrot.slane %v6676_v47, %v9710_v36  ;;  %v6732_v46 = vrot.slane %v10983_v13, %v9710_v36 }
 0x332   : > { %v7758_v9 = vrot.slane %v7757_v32, 4  ;;  %v7323_v15 = vrot.slane %v7315_v48, %v9710_v36  ;;  %v6691_v18 = vcombine.high %v6683_v0, %v6683_v0  ;;  %v6699_v54 = vrot.slane %v6683_v0, %v9710_v36 }
 0x333   : > { %v7812_v12 = vadd.f32 %v11121_v51, %v7755_v29  ;;  %v7330_v33 = vrot.slane %v7316_v63, %v9710_v36  ;;  %v6692_v55 = vcombine.high %v6690_v37, %v6690_v37  ;;  %v6706_v30 = vrot.slane %v6690_v37, %v9710_v36 }
 0x334   : > { %v7759_v2 = vmax.f32 %v7757_v32, %v7758_v9  ;;  %v6713_v1 = vrot.slane %v6691_v18, %v9710_v36  ;;  %v6721_v11 = vcombine.high %v6699_v54, %v6699_v54  ;;  %v7332_v23 = vcombine.low %v6675_v21, %v6699_v54 }
 0x335   : > { %v7820_v38 = vmax.f32 %v7812_v12, 0.0  ;;  %v7331_v13 = vcombine.low %v7323_v15, %v7330_v33  ;;  %v6720_v27 = vrot.slane %v6692_v55, %v9710_v36  ;;  %v6739_v35 = vrot.slane %v6725_v16, %v9710_v36 }
 0x336   : > { %v7760_v62 = vrot.slane %v7759_v2, 2  ;;  %v6723_v22 = vcombine.high %v6713_v1, %v6713_v1  ;;  %v7333_v49 = vcombine.low %v6713_v1, %v6721_v11  ;;  %v7340_v4 = vrot.slane %v7332_v23, %v9710_v36 }
 0x337   : > { %v7828_v5 = vpack.c.bf16 %v7820_v38, %v7820_v38  ;;  %v7371_v26 = vcombine.low %v6706_v30, %v6720_v27  ;;  %v8421_v34 = vcombine.high %v6706_v30, %v6720_v27  ;;  %v6740_v8 = vcombine.high %v6732_v46, %v6732_v46 }
 0x338   : > { %v7761_v24 = vmax.f32 %v7759_v2, %v7760_v62  ;;  %v7347_v57 = vrot.slane %v7333_v49, %v9710_v36  ;;  %v7354_v21 = vrot.slane %v6723_v22, %v9710_v36  ;;  %v6741_v39 = vcombine.high %v6739_v35, %v6739_v35 }
 0x339   : > { %v7860_v31 = vunpack.c.l.b16 %v7828_v5  ;;  %v7381_v58 = vrot.slane %v7371_v26, %v9710_v36  ;;  %v7388_v47 = vrot.slane %v8421_v34, %v9710_v36  ;;  %v6748_v32 = vrot.slane %v6732_v46, %v9710_v36 }
 0x33a   : > { %v7762_v48 = vrot.slane %v7761_v24, 1  ;;  %v7355_v0 = vcombine.low %v7340_v4, %v7347_v57  ;;  %v7369_v16 = vrot.slane %v7354_v21, %v9710_v36  ;;  %v6755_v29 = vrot.slane %v6739_v35, %v9710_v36 }
 0x33b   : > { %v11170_v63 = vrot.slane %v7860_v31, 7  ;;  %v7403_v37 = vcombine.low %v7381_v58, %v7388_v47  ;;  %v6762_v9 = vrot.slane %v6740_v8, %v9710_v36  ;;  %v6769_v15 = vrot.slane %v6741_v39, %v9710_v36 }
 0x33c   : > { %v7763_v18 = vmax.f32 %v7761_v24, %v7762_v48  ;;  %v7362_v54 = vrot.slane %v7355_v0, %v9710_v36  ;;  %v6774_v12 = vcombine.high %v11001_v19, %v11001_v19  ;;  %v6781_v46 = vrot.slane %v11001_v19, %v9710_v36 }
 0x33d   : > { %v7411_v33 = vrot.slane %v7403_v37, %v9710_v36  ;;  %v7373_v55 = vcombine.low %v6748_v32, %v6762_v9  ;;  %v8422_v30 = vcombine.high %v6748_v32, %v6762_v9  ;;  %v7420_v2 = vcombine.low %v6755_v29, %v6769_v15 }
 0x33e   : > { %v11181_v1 = vadd.f32 %v11121_v51, %v7763_v18  ;;  %v7370_v11 = vcombine.low %v7362_v54, %v7369_v16  ;;  %v8423_v23 = vcombine.high %v6755_v29, %v6769_v15  ;;  %v6788_v38 = vrot.slane %v6774_v12, %v9710_v36 }
 0x33f   : > { %v7395_v27 = vrot.slane %v7373_v55, %v9710_v36  ;;  %v7402_v35 = vrot.slane %v8422_v30, %v9710_v36  ;;  %v7428_v62 = vrot.slane %v7420_v2, %v9710_v36  ;;  %v6789_v22 = vcombine.high %v6781_v46, %v6781_v46 }
 0x340   : > { %v7821_v19 = vmax.f32 %v11181_v1, 0.0  ;;  %v7764_v49 = vsel %vm7739_vm8, %v7370_v11, -inf  ;;  %v7435_v4 = vrot.slane %v8423_v23, %v9710_v36  ;;  %v6790_v5 = vcombine.high %v6788_v38, %v6788_v38 }
 0x341   : > { %v7765_v26 = vmax.f32 %v7331_v13, %v7764_v49  ;;  %v7404_v34 = vcombine.low %v7395_v27, %v7402_v35  ;;  %v6797_v8 = vrot.slane %v6781_v46, %v9710_v36  ;;  %v6804_v24 = vrot.slane %v6788_v38, %v9710_v36 }
 0x342   : > { %v7443_v57 = vcombine.low %v7428_v62, %v7435_v4  ;;  %v6811_v21 = vrot.slane %v6789_v22, %v9710_v36  ;;  %v11194_v39 = vrot.slane %v6790_v5, %v9710_v36  ;;  %v5016_v31 = vmax.f32 %v11076_v61, 0.0 }
 0x343   : > { %v7766_v58 = vrot.slane %v7765_v26, 4  ;;  %v7418_v47 = vrot.slane %v7404_v34, %v9710_v36  ;;  %v6819_v32 = vcombine.high %v6797_v8, %v6797_v8  ;;  %v6820_v48 = vcombine.high %v6804_v24, %v6804_v24 }
 0x344   : > { %v6821_v0 = vcombine.high %v6811_v21, %v6811_v21  ;;  %v7442_v13 = vrot.slane %v6797_v8, %v9710_v36  ;;  %v7450_v16 = vrot.slane %v7443_v57, %v9710_v36  ;;  %v5024_v29 = vpack.c.bf16 %v5016_v31, %v5016_v31 }
 0x345   : > { %v7767_v37 = vmax.f32 %v7765_v26, %v7766_v58  ;;  %v7419_v9 = vcombine.low %v7411_v33, %v7418_v47  ;;  %v7459_v15 = vcombine.low %v6811_v21, %v6819_v32  ;;  %v11201_v18 = vcombine.low %v11194_v39, %v6820_v48 }
 0x346   : > { %v7457_v54 = vrot.slane %v7442_v13, %v9710_v36  ;;  %v7460_v61 = vcombine.low %v6821_v0, %v6804_v24  ;;  %v5056_v12 = vunpack.c.l.b16 %v5024_v29  ;;  %v5065_v30 = vsel %vm5064_vm9, %v10954_v45, %v10826_v14 }
 0x347   : > { %v7768_v46 = vrot.slane %v7767_v37, 2  ;;  %v7469_v55 = vrot.slane %v7459_v15, %v9710_v36  ;;  %v5068_v11 = vsel %vm5067_vm10, %v11048_v53, %v5065_v30  ;;  %v8876_v53 = vld [vmem:[#allocation7] sm:$0xff]   ;;  %v6822_v4 = vcombine.high %v11194_v39, %v11194_v39 }
 0x348   : > { %v7458_v2 = vcombine.low %v7450_v16, %v7457_v54  ;;  %v7476_v33 = vrot.slane %v7460_v61, %v9710_v36  ;;  %v5071_v38 = vsel %vm5070_vm11, %v11059_v43, %v5068_v11  ;;  %v5075_v27 = vrot.slane %v5056_v12, 1 }
 0x349   : > { %v7769_v23 = vmax.f32 %v7767_v37, %v7768_v46  ;;  %v5074_v14 = vsel %vm5073_vm12, %v11080_v44, %v5071_v38  ;;  %v6823_v26 = vcombine.high %v11008_v28, %v11008_v28  ;;  %v6830_v34 = vrot.slane %v11008_v28, %v9710_v36  ;;  %v8877_v28 = vld [vmem:[#allocation7 + $0x8] sm:$0xff]  }
 0x34a   : > { %v11213_v35 = vcombine.low %v7469_v55, %v7476_v33  ;;  %v7772_v62 = vsel %vm7739_vm8, %v7458_v2, -inf  ;;  %v5077_v49 = vsel %vm5076_vm13, %v5075_v27, %v5074_v14  ;;  %v7483_v24 = vrot.slane %v11201_v18, %v9710_v36  ;;  %v8878_v33 = vld [vmem:[#allocation7 + $0x10] sm:$0xff]  }
 0x34b   : > { %v7770_v45 = vrot.slane %v7769_v23, 1  ;;  %v7773_v22 = vmax.f32 %v7419_v9, %v7772_v62  ;;  %v5078_v5 = vpack.c.b16 %v5077_v49, %v5077_v49  ;;  %v6872_v57 = vcombine.high %v11022_v50, %v11022_v50 }
 0x34c   : > { %v7499_v43 = vrot.slane %v11213_v35, %v9710_v36  ;;  %v6837_v21 = vrot.slane %v6823_v26, %v9710_v36  ;;  %v6838_v39 = vcombine.high %v6830_v34, %v6830_v34  ;;  %v6846_v31 = vrot.slane %v6830_v34, %v9710_v36  ;;  %v8880_v35 = vld [vmem:[#allocation7 + $0x20] sm:$0xff]  }
 0x34d   : > { %v11227_v44 = vmax.f32 %v7769_v23, %v7770_v45  ;;  %v7774_v8 = vrot.slane %v7773_v22, 4  ;;  %8609 = vmatmul.mubr.bf16.vlgmr.msra.gmra.mrb[16].mxu0 %v5078_v5  ;;  %v6879_v58 = vrot.slane %v11022_v50, %v9710_v36  ;;  %v6886_v32 = vrot.slane %v6872_v57, %v9710_v36 }
 0x34e   : > { %8613 = vmatpush3.bf16.msra.mxu0 %v8876_v53  ;;  %v6921_v48 = vcombine.high %v11033_v10, %v11033_v10  ;;  %v6928_v0 = vrot.slane %v11033_v10, %v9710_v36  ;;  %v6839_v13 = vcombine.high %v6837_v21, %v6837_v21  ;;  %v6853_v16 = vrot.slane %v6837_v21, %v9710_v36  ;;  %v8879_v21 = vld [vmem:[#allocation7 + $0x18] sm:$0xff]  }
 0x34f   : > { %v7775_v47 = vmax.f32 %v7773_v22, %v7774_v8  ;;  %v6860_v29 = vrot.slane %v6838_v39, %v9710_v36  ;;  %v6868_v37 = vcombine.high %v6846_v31, %v6846_v31  ;;  %8614 = vmatprep.subr.bf16.mxu0 %v11485_v56  ;;  %v7462_v9 = vcombine.low %v6822_v4, %v6846_v31 }
 0x350   : > { %v6887_v15 = vcombine.high %v6879_v58, %v6879_v58  ;;  %v6888_v18 = vcombine.high %v6886_v32, %v6886_v32  ;;  %8628 = vmatprep.mubr.msk.bf16.mxu0 %vm9229_vm0, %v11485_v56  ;;  %v6867_v54 = vrot.slane %v6839_v13, %v9710_v36  ;;  %v6895_v10 = vrot.slane %v6879_v58, %v9710_v36 }
 0x351   : > { %v7776_v50 = vrot.slane %v7775_v47, 2  ;;  %v6870_v61 = vcombine.high %v6860_v29, %v6860_v29  ;;  %v7508_v12 = vcombine.low %v6860_v29, %v6868_v37  ;;  %v7490_v55 = vrot.slane %v7462_v9, %v9710_v36 }
 0x352   : > { %8615 = vmatpush3.bf16.msra.mxu0 %v8877_v28  ;;  %v6902_v30 = vrot.slane %v6886_v32, %v9710_v36  ;;  %v6909_v2 = vrot.slane %v6887_v15, %v9710_v36  ;;  %v7530_v38 = vrot.slane %v6867_v54, %v9710_v36  ;;  %v8424_v27 = vcombine.high %v6853_v16, %v6867_v54 }
 0x353   : > { %v7777_v46 = vmax.f32 %v7775_v47, %v7776_v50  ;;  %v7509_v11 = vcombine.low %v6870_v61, %v6853_v16  ;;  %v7516_v23 = vrot.slane %v7508_v12, %v9710_v36  ;;  %8616 = vmatprep.subr.bf16.mxu0 %v11485_v56  ;;  %v7492_v14 = vcombine.low %v7483_v24, %v7490_v55 }
 0x354   : > { %v6916_v45 = vrot.slane %v6888_v18, %v9710_v36  ;;  %v7548_v22 = vcombine.low %v6895_v10, %v6909_v2  ;;  %v7545_v53 = vrot.slane %v7530_v38, %v9710_v36  ;;  %v7557_v4 = vrot.slane %v8424_v27, %v9710_v36 }
 0x355   : > { %v7778_v62 = vrot.slane %v7777_v46, 1  ;;  %v7523_v49 = vrot.slane %v7509_v11, %v9710_v36  ;;  %v8425_v5 = vcombine.high %v6895_v10, %v6909_v2  ;;  %v7506_v34 = vrot.slane %v7492_v14, %v9710_v36  ;;  %v8881_v14 = vld [vmem:[#allocation7 + $0x28] sm:$0xff]  }
 0x356   : > { %v7550_v8 = vcombine.low %v6902_v30, %v6916_v45  ;;  %v7564_v57 = vrot.slane %v7548_v22, %v9710_v36  ;;  %8617 = vmatpush3.bf16.msra.mxu0 %v8878_v33  ;;  %v8426_v31 = vcombine.high %v6902_v30, %v6916_v45  ;;  %v6935_v58 = vrot.slane %v6921_v48, %v9710_v36 }
 0x357   : > { %v7779_v26 = vmax.f32 %v7777_v46, %v7778_v62  ;;  %v7531_v39 = vcombine.low %v7516_v23, %v7523_v49  ;;  %v7571_v24 = vrot.slane %v8425_v5, %v9710_v36  ;;  %8618 = vmatprep.subr.bf16.mxu0 %v11485_v56  ;;  %v7507_v28 = vcombine.low %v7499_v43, %v7506_v34 }
 0x358   : > { %v7578_v32 = vrot.slane %v7550_v8, %v9710_v36  ;;  %v7579_v13 = vcombine.low %v7557_v4, %v7564_v57  ;;  %v7604_v29 = vrot.slane %v8426_v31, %v9710_v36  ;;  %v6936_v37 = vcombine.high %v6928_v0, %v6928_v0 }
 0x359   : > { %v11265_v47 = vadd.f32 %v11121_v51, %v7779_v26  ;;  %v7538_v16 = vrot.slane %v7531_v39, %v9710_v36  ;;  %v6937_v50 = vcombine.high %v6935_v58, %v6935_v58  ;;  %v6944_v15 = vrot.slane %v6928_v0, %v9710_v36 }
 0x35a   : > { %v7580_v9 = vcombine.low %v7571_v24, %v7578_v32  ;;  %v11274_v48 = vrot.slane %v7579_v13, %v9710_v36  ;;  %v6951_v18 = vrot.slane %v6935_v58, %v9710_v36  ;;  %8619 = vmatpush3.bf16.msra.mxu0 %v8879_v21  ;;  %v6958_v54 = vrot.slane %v6936_v37, %v9710_v36 }
 0x35b   : > { %v7546_v43 = vcombine.low %v7538_v16, %v7545_v53  ;;  %v6965_v61 = vrot.slane %v6937_v50, %v9710_v36  ;;  %8620 = vmatprep.subr.bf16.mxu0 %v11485_v56  ;;  %v6970_v12 = vcombine.high %v11046_v20, %v11046_v20  ;;  %v6966_v46 = vcombine.high %v6944_v15, %v6944_v15 }
 0x35c   : > { %v7594_v10 = vrot.slane %v7580_v9, %v9710_v36  ;;  %v6967_v55 = vcombine.high %v6951_v18, %v6951_v18  ;;  %v6977_v0 = vrot.slane %v11046_v20, %v9710_v36  ;;  %v6968_v2 = vcombine.high %v6958_v54, %v6958_v54 }
 0x35d   : > { %v7780_v30 = vsel %vm7739_vm8, %v7546_v43, -inf  ;;  %v7597_v33 = vcombine.low %v6944_v15, %v6958_v54  ;;  %v6969_v11 = vcombine.high %v6965_v61, %v6965_v61  ;;  %v7618_v27 = vrot.slane %v6966_v46, %v9710_v36 }
 0x35e   : > { %v7781_v23 = vmax.f32 %v7507_v28, %v7780_v30  ;;  %v7595_v38 = vcombine.low %v11274_v48, %v7594_v10  ;;  %v7636_v62 = vcombine.low %v6965_v61, %v6967_v55  ;;  %8621 = vmatpush3.bf16.msra.mxu0 %v8880_v35  ;;  %v7635_v22 = vcombine.low %v6968_v2, %v6951_v18  ;;  %v8882_v28 = vld [vmem:[#allocation7 + $0x30] sm:$0xff]   ;;  %v8883_v10 = vld [vmem:[#allocation7 + $0x38] sm:$0xff]  }
 0x35f   : > { %v7611_v45 = vrot.slane %v7597_v33, %v9710_v36  ;;  %v6984_v49 = vrot.slane %v6970_v12, %v9710_v36  ;;  %v6985_v53 = vcombine.high %v6977_v0, %v6977_v0  ;;  %8622 = vmatprep.subr.bf16.mxu0 %v11485_v56  ;;  %v7633_v4 = vrot.slane %v7618_v27, %v9710_v36 }
 0x360   : > { %v7782_v20 = vrot.slane %v7781_v23, 4  ;;  %v7652_v5 = vrot.slane %v7636_v62, %v9710_v36  ;;  %v6993_v26 = vrot.slane %v6977_v0, %v9710_v36  ;;  %v7645_v8 = vrot.slane %v7635_v22, %v9710_v36 }
 0x361   : > { %v7619_v34 = vcombine.low %v7604_v29, %v7611_v45  ;;  %v6986_v57 = vcombine.high %v6984_v49, %v6984_v49  ;;  %v7000_v21 = vrot.slane %v6984_v49, %v9710_v36  ;;  %v7007_v24 = vrot.slane %v6985_v53, %v9710_v36 }
 0x362   : > { %v7783_v39 = vmax.f32 %v7781_v23, %v7782_v20  ;;  %v7015_v31 = vcombine.high %v6993_v26, %v6993_v26  ;;  %v7637_v58 = vcombine.low %v6969_v11, %v6993_v26  ;;  %8623 = vmatpush3.bf16.msra.mxu0 %v8881_v14  ;;  %v7667_v13 = vcombine.low %v7645_v8, %v7652_v5 }
 0x363   : > { %v7626_v32 = vrot.slane %v7619_v34, %v9710_v36  ;;  %v7014_v16 = vrot.slane %v6986_v57, %v9710_v36  ;;  %v7016_v37 = vcombine.high %v7000_v21, %v7000_v21  ;;  %8624 = vmatprep.subr.bf16.mxu0 %v11485_v56  ;;  %v7017_v50 = vcombine.high %v7007_v24, %v7007_v24 }
 0x364   : > { %v7784_v29 = vrot.slane %v7783_v39, 2  ;;  %v7638_v9 = vcombine.low %v7007_v24, %v7015_v31  ;;  %v7659_v48 = vrot.slane %v7637_v58, %v9710_v36  ;;  %v7675_v18 = vrot.slane %v7667_v13, %v9710_v36 }
 0x365   : > { %v7634_v15 = vcombine.low %v7626_v32, %v7633_v4  ;;  %v7018_v35 = vcombine.high %v7014_v16, %v7014_v16  ;;  %v7685_v43 = vcombine.low %v7014_v16, %v7016_v37  ;;  %v7684_v12 = vcombine.low %v7017_v50, %v7000_v21 }
 0x366   : > { %v11303_v54 = vmax.f32 %v7783_v39, %v7784_v29  ;;  %v7666_v61 = vrot.slane %v7638_v9, %v9710_v36  ;;  %8625 = vmatpush3.bf16.msra.mxu0 %v8882_v28  ;;  %v3383_v46 = vmax.f32 %v10749_v59, %v3382_v42  ;;  %v3398_v2 = vrot.slane %v10902_v41, 1 }
 0x367   : > { %v7788_v55 = vsel %vm7739_vm8, %v7634_v15, -inf  ;;  %v7699_v0 = vrot.slane %v7685_v43, %v9710_v36  ;;  %v7706_v30 = vrot.slane %v7018_v35, %v9710_v36  ;;  %8626 = vmatprep.subr.bf16.mxu0 %v11485_v56  ;;  %v7692_v27 = vrot.slane %v7684_v12, %v9710_v36 }
 0x368   : > { %v7786_v33 = vrot.slane %v11303_v54, 1  ;;  %v7789_v11 = vmax.f32 %v7595_v38, %v7788_v55  ;;  %v7668_v23 = vcombine.low %v7659_v48, %v7666_v61  ;;  %v3399_v59 = vmax.f32 %v10902_v41, %v3398_v2  ;;  %v8905_v38 = vld [vmem:[%s11490_s17] ss:$0 sm:$0xff] }
 0x369   : > { %v7721_v62 = vrot.slane %v7706_v30, %v9710_v36  ;;  %v3406_v42 = vrot.slane %v10995_v17, 1  ;;  %v3412_v14 = vrot.slane %v10990_v52, 2  ;;  %v7707_v49 = vcombine.low %v7692_v27, %v7699_v0 }
 0x36a   : > { %v7790_v45 = vrot.slane %v7789_v11, 4  ;;  %v7682_v22 = vrot.slane %v7668_v23, %v9710_v36  ;;  %8627 = vmatpush3.bf16.msra.mxu0 %v8883_v10  ;;  %v3424_v53 = vadd.f32 %v8905_v38, %v10684_v60  ;;  %v3426_v41 = vadd.f32 %v8905_v38, %v3383_v46 }
 0x36b   : > { %v3407_v20 = vmax.f32 %v10995_v17, %v3406_v42  ;;  %v3413_v4 = vmax.f32 %v10990_v52, %v3412_v14  ;;  %v3427_v5 = vadd.f32 %v8905_v38, %v10910_v6  ;;  %8676 = vmatprep.subr.bf16.mxu0 %v11485_v56  ;;  %v7714_v8 = vrot.slane %v7707_v49, %v9710_v36 }
 0x36c   : > { %v7791_v26 = vmax.f32 %v7789_v11, %v7790_v45  ;;  %v7683_v34 = vcombine.low %v7675_v18, %v7682_v22  ;;  %v3428_v57 = vadd.f32 %v8905_v38, %v3399_v59  ;;  %v3432_v24 = vmax.f32 %v3424_v53, 0.0 }
 0x36d   : > { %v3414_v21 = vrot.slane %v3413_v4, 1  ;;  %v3429_v39 = vadd.f32 %v8905_v38, %v3407_v20  ;;  %v3433_v31 = vmax.f32 %v10768_v7, 0.0  ;;  %v7722_v58 = vcombine.low %v7714_v8, %v7721_v62 }
 0x36e   : > { %v7792_v60 = vrot.slane %v7791_v26, 2  ;;  %v3434_v17 = vmax.f32 %v3426_v41, 0.0  ;;  %v3435_v28 = vmax.f32 %v3427_v5, 0.0  ;;  %v3436_v32 = vmax.f32 %v3428_v57, 0.0 }
 0x36f   : > { %v3415_v52 = vmax.f32 %v3413_v4, %v3414_v21  ;;  %v3437_v13 = vmax.f32 %v3429_v39, 0.0  ;;  %v3440_v6 = vpack.c.bf16 %v3432_v24, %v3432_v24  ;;  %v7796_v37 = vsel %vm7739_vm8, %v7722_v58, -inf }
 0x370   : > { %v7793_v16 = vmax.f32 %v7791_v26, %v7792_v60  ;;  %v3441_v29 = vpack.c.bf16 %v3433_v31, %v3433_v31  ;;  %v3442_v50 = vpack.c.bf16 %v3434_v17, %v3434_v17  ;;  %v7797_v36 = vmax.f32 %v7683_v34, %v7796_v37  ;;  %v8884_v60 = vld [vmem:[#allocation13] sm:$0xff]  }
 0x371   : > { %v3430_v9 = vadd.f32 %v8905_v38, %v3415_v52  ;;  %v3443_v48 = vpack.c.bf16 %v3435_v28, %v3435_v28  ;;  %v3444_v15 = vpack.c.bf16 %v3436_v32, %v3436_v32  ;;  %v3445_v18 = vpack.c.bf16 %v3437_v13, %v3437_v13 }
 0x372   : > { %v5176_v7 = vunpack.c.l.b16 %v10696_v40  ;;  %v5177_v35 = vunpack.c.l.b16 %v3440_v6  ;;  %v5178_v43 = vunpack.c.l.b16 %v3441_v29  ;;  %v7798_v61 = vrot.slane %v7797_v36, 4 }
 0x373   : > { %v3438_v12 = vmax.f32 %v3430_v9, 0.0  ;;  %v5179_v10 = vunpack.c.l.b16 %v3442_v50  ;;  %v5180_v46 = vunpack.c.l.b16 %v3443_v48  ;;  %v5181_v55 = vunpack.c.l.b16 %v3444_v15  ;;  %v8885_v9 = vld [vmem:[#allocation13 + $0x8] sm:$0xff]  }
 0x374   : > { %v5182_v0 = vunpack.c.l.b16 %v3445_v18  ;;  %v5184_v30 = vrot.slane %v5177_v35, 7  ;;  %v5186_v2 = vrot.slane %v5178_v43, 6  ;;  %v7799_v11 = vmax.f32 %v7797_v36, %v7798_v61  ;;  %v8886_v43 = vld [vmem:[#allocation13 + $0x10] sm:$0xff]  }
 0x375   : > { %v3446_v23 = vpack.c.bf16 %v3438_v12, %v3438_v12  ;;  %v5188_v27 = vrot.slane %v5179_v10, 5  ;;  %v5190_v62 = vrot.slane %v5180_v46, 4  ;;  %v5192_v42 = vrot.slane %v5181_v55, 3  ;;  %v8887_v55 = vld [vmem:[#allocation13 + $0x18] sm:$0xff]  }
 0x376   : > { %v5185_v59 = vsel %vm5058_vm6, %v5184_v30, %v5176_v7  ;;  %v5194_v14 = vrot.slane %v5182_v0, 2  ;;  %v7787_v40 = vmax.f32 %v11303_v54, %v7786_v33  ;;  %v7800_v45 = vrot.slane %v7799_v11, 2  ;;  %v8888_v30 = vld [vmem:[#allocation13 + $0x20] sm:$0xff]  }
 0x377   : > { %v5183_v22 = vunpack.c.l.b16 %v3446_v23  ;;  %v5187_v49 = vsel %vm5061_vm7, %v5186_v2, %v5185_v59  ;;  %v7794_v38 = vrot.slane %v7793_v16, 1  ;;  %v7814_v20 = vadd.f32 %v11121_v51, %v11227_v44  ;;  %v8889_v2 = vld [vmem:[#allocation13 + $0x28] sm:$0xff]   ;;  %v8891_v23 = vld [vmem:[#allocation13 + $0x38] sm:$0xff]  }
 0x378   : > { %v5189_v53 = vsel %vm5064_vm9, %v5188_v27, %v5187_v49  ;;  %v7816_v4 = vadd.f32 %v11121_v51, %v7787_v40  ;;  %v7823_v41 = vmax.f32 %v11265_v47, 0.0  ;;  %v7801_v8 = vmax.f32 %v7799_v11, %v7800_v45  ;;  %v8890_v11 = vld [vmem:[#allocation13 + $0x30] sm:$0xff]   ;;  %v8893_v59 = vld [vmem:[#allocation14 + $0x8] sm:$0xff]   ;;  %v8896_v40 = vld [vmem:[#allocation14 + $0x20] sm:$0xff]  }
 0x379   : > { %v5191_v5 = vsel %vm5067_vm10, %v5190_v62, %v5189_v53  ;;  %v5196_v26 = vrot.slane %v5183_v22, 1  ;;  %v7795_v34 = vmax.f32 %v7793_v16, %v7794_v38  ;;  %v7822_v33 = vmax.f32 %v7814_v20, 0.0  ;;  %v8892_v62 = vld [vmem:[#allocation14] sm:$0xff]   ;;  %v8897_v45 = vld [vmem:[#allocation14 + $0x28] sm:$0xff]   ;;  %v8898_v22 = vld [vmem:[#allocation14 + $0x30] sm:$0xff]  }
 0x37a   : > { %v5193_v54 = vsel %vm5070_vm11, %v5192_v42, %v5191_v5  ;;  %v7824_v57 = vmax.f32 %v7816_v4, 0.0  ;;  %v7829_v21 = vpack.c.bf16 %v7821_v19, %v7821_v19  ;;  %v7802_v44 = vrot.slane %v7801_v8, 1  ;;  %8697 = vmatpush3.bf16.msra.mxu1 %v8892_v62  ;;  %v8894_v42 = vld [vmem:[#allocation14 + $0x10] sm:$0xff]   ;;  %v8899_v49 = vld [vmem:[#allocation14 + $0x38] sm:$0xff]  }
 0x37b   : > { %v5195_v39 = vsel %vm5073_vm12, %v5194_v14, %v5193_v54  ;;  %v7817_v24 = vadd.f32 %v11121_v51, %v7795_v34  ;;  %v7831_v31 = vpack.c.bf16 %v7823_v41, %v7823_v41  ;;  %v7830_v58 = vpack.c.bf16 %v7822_v33, %v7822_v33  ;;  %8698 = vmatprep.subr.bf16.mxu1 %v11485_v56  ;;  %v8895_v14 = vld [vmem:[#allocation14 + $0x18] sm:$0xff]   ;;  %v8436_v33 = vld [vmem:[%s11492_s20] ss:$0 sm:$0xff]  ;;  %s8100_s20 = scalar_lea.sflag [#allocation4], %s9595_s30 }
 0x37c   : > { %v5197_v47 = vsel %vm5076_vm13, %v5196_v26, %v5195_v39  ;;  %v7832_v17 = vpack.c.bf16 %v7824_v57, %v7824_v57  ;;  %v7861_v28 = vunpack.c.l.b16 %v7829_v21  ;;  %v7803_v32 = vmax.f32 %v7801_v8, %v7802_v44 }
 0x37d   : > { %v5198_v52 = vpack.c.b16 %v5197_v47, %v5197_v47  ;;  %v7825_v13 = vmax.f32 %v7817_v24, 0.0  ;;  %v7863_v6 = vunpack.c.l.b16 %v7831_v31  ;;  %v7862_v16 = vunpack.c.l.b16 %v7830_v58  ;;  %v8437_v47 = vld [vmem:[%s11493_s10] ss:$0 sm:$0xff]  ;;  %s9138_s10 = scalar_lea.vmem %s9137_s1, 256 }
 0x37e   : > { %v7864_v1 = vunpack.c.l.b16 %v7832_v17  ;;  %v7868_v19 = vsel %vm5058_vm6, %v11170_v63, %v7859_v3  ;;  %v7869_v37 = vrot.slane %v7861_v28, 6  ;;  %v7818_v29 = vadd.f32 %v11121_v51, %v7803_v32  ;;  %8699 = vmatpush3.bf16.msra.mxu1 %v8893_v59  ;;  %p9140_p8 = scmp.lt.s32.totalorder %s9138_s10, %s9132_s18 }
 0x37f   : > { %8629 = vmatmul.mubr.bf16.vlgmr.msra.gmra.mrb[20].mxu0 %v5198_v52  ;;  %v7833_v50 = vpack.c.bf16 %v7825_v13, %v7825_v13  ;;  %v7873_v36 = vrot.slane %v7863_v6, 4  ;;  %v7871_v15 = vrot.slane %v7862_v16, 5  ;;  %8700 = vmatprep.subr.bf16.mxu1 %v11485_v56 }
 0x380   : > { %8677 = vmatpush3.bf16.msra.mxu0 %v8884_v60  ;;  %8692 = vmatprep.mubr.msk.bf16.mxu0 %vm9229_vm0, %v11485_v56  ;;  %v7870_v48 = vsel %vm5061_vm7, %v7869_v37, %v7868_v19  ;;  %v7875_v18 = vrot.slane %v7864_v1, 3  ;;  %v7826_v25 = vmax.f32 %v7818_v29, 0.0  ;;  %p9141_p6 = por %p9140_p8, %p9139_p2 }
 0x381   : > { %8678 = vmatprep.subr.bf16.mxu0 %v11485_v56  ;;  %v7865_v7 = vunpack.c.l.b16 %v7833_v50  ;;  %v7872_v3 = vsel %vm5064_vm9, %v7871_v15, %v7870_v48 }
 0x382   : > { %v7834_v63 = vpack.c.bf16 %v7826_v25, %v7826_v25  ;;  %v7874_v51 = vsel %vm5067_vm10, %v7873_v36, %v7872_v3  ;;  %8701 = vmatpush3.bf16.msra.mxu1 %v8894_v42  ;;  %p9142_p10 = pnand %p9141_p6, %p9135_p0 }
 0x383   : > { %v7877_v35 = vrot.slane %v7865_v7, 2  ;;  %v7876_v61 = vsel %vm5070_vm11, %v7875_v18, %v7874_v51  ;;  %8702 = vmatprep.subr.bf16.mxu1 %v11485_v56 }
 0x384   : > { %8679 = vmatpush3.bf16.msra.mxu0 %v8885_v9  ;;  %v7866_v12 = vunpack.c.l.b16 %v7834_v63 }
 0x385   : > { %8680 = vmatprep.subr.bf16.mxu0 %v11485_v56  ;;  %v7878_v10 = vsel %vm5073_vm12, %v7877_v35, %v7876_v61 }
 0x386   : > { %v7879_v46 = vrot.slane %v7866_v12, 1  ;;  %8703 = vmatpush3.bf16.msra.mxu1 %v8895_v14 }
 0x387   : > { %8704 = vmatprep.subr.bf16.mxu1 %v11485_v56 }
 0x388   : > { %8681 = vmatpush3.bf16.msra.mxu0 %v8886_v43  ;;  %v7880_v0 = vsel %vm5076_vm13, %v7879_v46, %v7878_v10 }
 0x389   : > { %8682 = vmatprep.subr.bf16.mxu0 %v11485_v56  ;;  %v7881_v27 = vpack.c.b16 %v7880_v0, %v7880_v0 }
 0x38a   : > { %8705 = vmatpush3.bf16.msra.mxu1 %v8896_v40 }
 0x38b   : > { %8706 = vmatprep.subr.bf16.mxu1 %v11485_v56 }
 0x38c   : > { %8683 = vmatpush3.bf16.msra.mxu0 %v8887_v55 }
 0x38d   : > { %8684 = vmatprep.subr.bf16.mxu0 %v11485_v56 }
 0x38e   : > { %8707 = vmatpush3.bf16.msra.mxu1 %v8897_v45 }
 0x38f   : > { %8708 = vmatprep.subr.bf16.mxu1 %v11485_v56 }
 0x390   : > { %8685 = vmatpush3.bf16.msra.mxu0 %v8888_v30 }
 0x391   : > { %8686 = vmatprep.subr.bf16.mxu0 %v11485_v56 }
 0x392   : > { %8709 = vmatpush3.bf16.msra.mxu1 %v8898_v22 }
 0x393   : > { %8710 = vmatprep.subr.bf16.mxu1 %v11485_v56 }
 0x394   : > { %8687 = vmatpush3.bf16.msra.mxu0 %v8889_v2 }
 0x395   : > { %8688 = vmatprep.subr.bf16.mxu0 %v11485_v56 }
 0x396   : > { %8711 = vmatpush3.bf16.msra.mxu1 %v8899_v49 }
 0x398   : > { %8689 = vmatpush3.bf16.msra.mxu0 %v8890_v11 }
 0x399   : > { %8690 = vmatprep.subr.bf16.mxu0 %v11485_v56 }
 0x39c   : > { %8691 = vmatpush3.bf16.msra.mxu0 %v8891_v23 }
 0x39f   : > { %8693 = vmatmul.mubr.bf16.vlgmr.msra.gmra.mrb[24].mxu0 %v7881_v27 }
 0x420   : > { %v5162_v38 = vpop.f32.mrb[16].mxu0 }
 0x421   : > { %v8610_v53 = vpop.f32.mrb[17].mxu0 }
 0x422   : > { %v5165_v20 = vpop.f32.mrb[18].mxu0 }
 0x423   : > { %v8611_v4 = vpop.f32.mrb[19].mxu0 }
 0x452   : > { %v5282_v41 = vpop.f32.mrb[20].mxu0 }
 0x453   : > { %v5283_v5 = vadd.f32 %v5282_v41, %v5162_v38  ;;  %v8630_v26 = vpop.f32.mrb[21].mxu0 }
 0x454   : > { %v5285_v34 = vpop.f32.mrb[22].mxu0 }
 0x455   : > { %v8631_v8 = vpop.f32.mrb[23].mxu0 }
 0x472   : > { %v7965_v54 = vpop.f32.mrb[24].mxu0 }
 0x473   : > { %v7971_v57 = vadd.f32 %v7965_v54, %v5283_v5  ;;  %v8694_v21 = vpop.f32.mrb[25].mxu0 }
 0x474   : > { %v7968_v39 = vpop.f32.mrb[26].mxu0 }
 0x475   : > { %v7979_v56 = vadd.f32 %v8436_v33, %v7971_v57  ;;  %v8695_v44 = vpop.f32.mrb[27].mxu0 }
 0x477   : > { %v7980_v24 = vmax.f32 %v7979_v56, 0.0 }
 0x479   : > { %v7981_v31 = vpack.c.bf16 %v7980_v24, %v7980_v24 }
 0x47b   : > { %8713 = vmatmul.mubr.bf16.vlgmr.msra.gmra.mrb[56].mxu1 %v7981_v31 }
 0x54e   : > { %v8087_v60 = vpop.f32.mrb[56].mxu1 }
 0x54f   : > { %v8088_v58 = vadd.f32 %v8437_v47, %v8087_v60  ;;  %v8714_v17 = vpop.f32.mrb[57].mxu1 }
 0x550   : > { %v8090_v28 = vpop.f32.mrb[58].mxu1 }
 0x551   : > { %v8093_v52 = vsub.f32 0.0, %v8088_v58  ;;  %v8715_v32 = vpop.f32.mrb[59].mxu1 }
 0x553   : > { %v8094_v13 = vmul.f32 1.442695, %v8093_v52 }
 0x555   : > { %8900 = vpow2.f32 %v8094_v13 }
 0x55f   : > { %v8901_v6 = vpop.eup %8900 }
 0x560   : > { %v8096_v16 = vadd.f32 1.0, %v8901_v6 }
 0x562   : > { %8902 = vrcp.f32 %v8096_v16 }
 0x56c   : > { %v8903_v1 = vpop.eup %8902 }
 0x56d   : > { %8098 = vst [vmem:[%s561_s29] sm:$0xff] %v8903_v1 }
 0x56e   : > { %9145 = shalt.err (!%p9142_p10)
}
 0x56f   : > { %s9146_s30 = scalar_lea.hbm %s11387_s2, 128  ;;  %s9150_s29 = scalar_lea.hbm %s11494_s24, 256 }
 0x570   : > { %p9147_p11 = scmp.ne.s32.totalorder %s11387_s2, %s9146_s30  ;;  %p9151_p9 = scmp.lt.u32.totalorder %s11387_s2, %s11494_s24 }
 0x571   : > { %p9152_p7 = scmp.lt.u32.totalorder %s9150_s29, %s9146_s30  ;;  %p9154_p12 = scmp.lt.u32.totalorder %s9146_s30, %s11387_s2 }
 0x572   : > { %p9148_p3 = pnand %p9147_p11, %p11495_p1 }
 0x573   : > { %p9153_p4 = por %p9152_p7, %p9151_p9 }
 0x574   : > { %p9149_p5 = pneg %p9148_p3 }
 0x575   : > { %p9155_p13 = por %p9154_p12, %p9153_p4 }
 0x577   : > { %p9156_p0 = pnand %p9155_p13, %p9149_p5 }
 0x579   : > { %9159 = shalt.err (!%p9156_p0)
}
 0x57a   : > { %8746 = dma.vmem_to_hbm [thread:$0]  (%p11495_p1), %s11389_s21, 128, %s11387_s2, %s8100_s20  }
 0x57b PF: > { %s8125_s18 = sand.u32 1, %s9202_s25   ;;  %p11496_p2 = scmp.ne.s32.totalorder %s11467_s19, 0 }
 0x57c   : > { %p11497_p8 = scmp.ge.s32.totalorder %s9214_s28, 2  ;;  %s8126_s14 = scalar_lea.sflag [#allocation4], %s8125_s18 }
 0x57e   : > { %p8775_p6 = pnand %p11497_p8, %p11496_p2 }
 0x580   : > { %9197 = dma.done.wait (!%p8775_p6), %s8126_s14, 128  }
 0x581   : > { %9199 = vsyncadd (!%p8775_p6), %s8126_s14, 4294967168  ;;  %p30_p10 = scmp.ge.s32.totalorder %s9519_s16, 4   ;;  %s11498_s25 = smov %s9206_s26 }
 0x582   : > { %s11499_s26 = smov %s9210_s27  ;;  %s11500_s27 = smov %s9531_s8 }
 0x583   : > { %s11501_s28 = smov %s9519_s16  ;;  %32 = sbr.rel (!%p30_p10) target bundleno = 16 (0x10), region = 145 }
 0x58a   :  { %8131 = vsyncpa [#allocation3], 1 }
 0x58b   :  { %8133 = vsyncpa [#allocation3 + $0x1], 1 }
 0x58c   :  { %8134 = vsyncpa [#allocation6], 1 }
 0x58d   :  { %8135 = vsyncpa [#allocation9], 1 }
 0x58e   :  { %8136 = vsyncpa [#allocation12], 1 }
 0x58f   :  { %8137 = vsyncpa [#allocation15], 1 }
 0x590   :  { %8138 = vsyncpa [#allocation4], 1 }
 0x591   :  { %8140 = vsyncpa [#allocation4 + $0x1], 1 }

</bundles_post_ra>
